<compile_context>
chip_gen: v6e
topology: v6e:2x2x1
jax: 0.10.0
libtpu: 0.0.40
codegen_flags: <defaults>
</compile_context>

<pallas_src>
import functools

import jax
import jax.numpy as jnp
from jax.experimental import pallas as pl
from jax.experimental.pallas import tpu as pltpu


_VMEM_LIMIT = 48 * 1024 * 1024      # explicit scoped-VMEM budget (review item)
_TILE_BUDGET = 24 * 1024 * 1024     # per-step tile budget used by the choosers


# ---------------------------------------------------------------------------
# Pallas kernels
# ---------------------------------------------------------------------------
def _conv3x3_kernel(relu, taps, x_ref, w_ref, b_ref, o_ref, acc_ref):
    """3x3 'same' conv over a row-flattened, zero-padded frame.

    x_ref:  (D, L, Cin)  bf16  -- D stacked views of the flattened frame
    w_ref:  (9, Cin, Cout) bf16 -- VMEM-resident tap weights
    b_ref:  (1, Cout) f32
    o_ref:  (L, Cout) or (1, L, Cout) bf16
    acc_ref:(L, Cout) f32 scratch
    taps:   static tuple of 9 (view_index, row_shift) pairs; for each tap the
            contribution acc[u] += x[view][u + shift] @ w[t] is realized as a
            dot over a statically sliced operand accumulated into a statically
            sliced region of acc.  The rows skipped at the block edges are
            padding rows of the frame and are discarded by the caller.
    """
    L = acc_ref.shape[0]
    acc_ref[...] = jnp.zeros_like(acc_ref)
    for t, (v, s) in enumerate(taps):
        w_t = w_ref[t]
        if s == 0:
            acc_ref[...] += jnp.dot(x_ref[v], w_t,
                                    preferred_element_type=jnp.float32)
        elif s > 0:
            acc_ref[0:L - s, :] += jnp.dot(x_ref[v, s:L, :], w_t,
                                           preferred_element_type=jnp.float32)
        else:
            k = -s
            acc_ref[k:L, :] += jnp.dot(x_ref[v, 0:L - k, :], w_t,
                                       preferred_element_type=jnp.float32)
    r = acc_ref[...] + b_ref[...]            # f32 epilogue (v5e-friendly)
    if relu:
        r = jnp.maximum(r, 0.0)
    y = r.astype(o_ref.dtype)
    if len(o_ref.shape) == 3:
        o_ref[0] = y
    else:
        o_ref[...] = y


def _matmul_bias_kernel(relu, x_ref, w_ref, b_ref, o_ref):
    """(TM, K) @ (K, Cout) + bias (+ReLU); bf16 inputs, f32 accumulation."""
    r = jnp.dot(x_ref[...], w_ref[...],
                preferred_element_type=jnp.float32) + b_ref[...]
    if relu:
        r = jnp.maximum(r, 0.0)
    o_ref[...] = r.astype(o_ref.dtype)


def _maxpool_kernel(a_ref, b_ref, c_ref, d_ref, o_ref):
    """2x2 max-pool: the four window corners arrive as four BlockSpec views."""
    o_ref[...] = jnp.maximum(jnp.maximum(a_ref[...], b_ref[...]),
                             jnp.maximum(c_ref[...], d_ref[...]))


# ---------------------------------------------------------------------------
# Tile choosers
# ---------------------------------------------------------------------------
def _whole_image_vmem(L, cin, cout):
    return (2 * L * cin * 2            # input block (double-buffered, bf16)
            + 2 * L * cout * 2         # output block
            + L * cout * 4             # f32 accumulator scratch
            + 2 * 9 * cin * cout * 2)  # resident tap weights


def _pick_conv_rows(n_rows, wp, cin, cout):
    """Rows-per-tile for the row-tiled conv fallback (TM2 = rows * wp)."""
    fallback = None
    for r in range(n_rows, 0, -1):
        if n_rows % r:
            continue
        tm = r * wp
        if tm % 8 != 0 and r != n_rows:
            continue
        vmem = (2 * 3 * tm * cin * 2 + 2 * tm * cout * 2 + tm * cout * 4
                + 2 * 9 * cin * cout * 2)
        if vmem <= _TILE_BUDGET:
            return r
        fallback = r
    return fallback if fallback is not None else n_rows


def _pick_tm(M, K, Cout):
    for tm in range(min(M, 4096), 0, -1):
        if M % tm:
            continue
        if tm % 8 != 0 and tm != M:
            continue
        vmem = 2 * tm * K * 2 + 2 * tm * Cout * 4 + 2 * K * Cout * 2
        if vmem <= _TILE_BUDGET:
            return tm
    return M


def _pick_pool_rows(ho, wo, c):
    for th in range(ho, 0, -1):
        if ho % th:
            continue
        if 2 * 5 * th * wo * c * 2 <= _TILE_BUDGET:
            return th
    return 1


# ---------------------------------------------------------------------------
# Wrappers around pallas_call
# ---------------------------------------------------------------------------
def conv3x3(x, w, b, relu=True, force_variant=None, force_rows=None):
    """3x3 'same' conv + ReLU.  x: (N,H,W,Cin) bf16; w: (3,3,Cin,Cout) f32."""
    N, H, W, Cin = x.shape
    Cout = w.shape[3]
    Wp = W + 2
    wt = w.reshape(9, Cin, Cout).astype(jnp.bfloat16)
    bt = b.reshape(1, Cout).astype(jnp.float32)
    xp = jnp.pad(x, ((0, 0), (1, 1), (1, 1), (0, 0)))   # (N, H+2, Wp, Cin) bf16

    L_img = (H + 2) * Wp
    if force_variant == "whole":
        whole_ok = True
    elif force_variant == "tiled":
        whole_ok = False
    else:
        whole_ok = _whole_image_vmem(L_img, Cin, Cout) <= _TILE_BUDGET

    if whole_ok:
        # Variant A: one padded image per grid step (batch-parallel grid);
        # zero extra activation copies in HBM.
        xf = xp.reshape(N, L_img, Cin)
        taps = tuple((0, (dy - 1) * Wp + (dx - 1))
                     for dy in range(3) for dx in range(3))
        grid = (N,)
        in_specs = [
            pl.BlockSpec((1, L_img, Cin), lambda n: (n, 0, 0)),
            pl.BlockSpec((9, Cin, Cout), lambda n: (0, 0, 0)),
            pl.BlockSpec((1, Cout), lambda n: (0, 0)),
        ]
        out_shape = jax.ShapeDtypeStruct((N, L_img, Cout), jnp.bfloat16)
        out_spec = pl.BlockSpec((1, L_img, Cout), lambda n: (n, 0, 0))
        acc_shape = (L_img, Cout)
        operand = xf
        rows_total = N * L_img
        n_views = 1
    else:
        # Variant B: 3 row-shifted views, flattened row tiling (VMEM-scalable).
        xv = jnp.stack([xp[:, d:d + H] for d in range(3)], axis=0)
        xv = xv.reshape(3, N * H * Wp, Cin)
        if force_rows is not None and (N * H) % force_rows == 0:
            R = force_rows
        else:
            R = _pick_conv_rows(N * H, Wp, Cin, Cout)
        TM2 = R * Wp
        taps = tuple((dy, dx - 1) for dy in range(3) for dx in range(3))
        grid = (N * H // R,)
        in_specs = [
            pl.BlockSpec((3, TM2, Cin), lambda m: (0, m, 0)),
            pl.BlockSpec((9, Cin, Cout), lambda m: (0, 0, 0)),
            pl.BlockSpec((1, Cout), lambda m: (0, 0)),
        ]
        out_shape = jax.ShapeDtypeStruct((N * H * Wp, Cout), jnp.bfloat16)
        out_spec = pl.BlockSpec((TM2, Cout), lambda m: (m, 0))
        acc_shape = (TM2, Cout)
        operand = xv
        rows_total = N * H * Wp
        n_views = 3

    cost = pl.CostEstimate(
        flops=2 * 9 * rows_total * Cin * Cout,
        transcendentals=0,
        bytes_accessed=(n_views * rows_total * Cin * 2
                        + 9 * Cin * Cout * 2 + rows_total * Cout * 2))

    out = pl.pallas_call(
        functools.partial(_conv3x3_kernel, relu, taps),
        out_shape=out_shape,
        grid_spec=pltpu.PrefetchScalarGridSpec(
            num_scalar_prefetch=0,
            grid=grid,
            in_specs=in_specs,
            out_specs=out_spec,
            scratch_shapes=[pltpu.VMEM(acc_shape, jnp.float32)],
        ),
        compiler_params=pltpu.CompilerParams(
            dimension_semantics=("parallel",),
            vmem_limit_bytes=_VMEM_LIMIT),
        cost_estimate=cost,
    )(operand, wt, bt)

    if whole_ok:
        return out.reshape(N, H + 2, Wp, Cout)[:, 1:H + 1, 1:W + 1, :]
    return out.reshape(N, H, Wp, Cout)[:, :, 1:W + 1, :]


def matmul_bias_act(x2d, w2d, b, relu, out_dtype):
    """Tiled (M,K)@(K,Cout)+bias(+ReLU) used by the stem and the 1x1 head."""
    M, K = x2d.shape
    Cout = w2d.shape[1]
    TM = _pick_tm(M, K, Cout)
    itemsize = 4 if out_dtype == jnp.float32 else 2
    cost = pl.CostEstimate(flops=2 * M * K * Cout, transcendentals=0,
                           bytes_accessed=M * K * 2 + K * Cout * 2
                           + M * Cout * itemsize)
    return pl.pallas_call(
        functools.partial(_matmul_bias_kernel, relu),
        out_shape=jax.ShapeDtypeStruct((M, Cout), out_dtype),
        grid_spec=pltpu.PrefetchScalarGridSpec(
            num_scalar_prefetch=0,
            grid=(M // TM,),
            in_specs=[
                pl.BlockSpec((TM, K), lambda m: (m, 0)),
                pl.BlockSpec((K, Cout), lambda m: (0, 0)),
                pl.BlockSpec((1, Cout), lambda m: (0, 0)),
            ],
            out_specs=pl.BlockSpec((TM, Cout), lambda m: (m, 0)),
        ),
        compiler_params=pltpu.CompilerParams(
            dimension_semantics=("parallel",),
            vmem_limit_bytes=_VMEM_LIMIT),
        cost_estimate=cost,
    )(x2d.astype(jnp.bfloat16), w2d.astype(jnp.bfloat16),
      b.reshape(1, Cout).astype(jnp.float32))


def conv3x3_folded(x, w, b, relu=True):
    """3x3 conv for tiny Cin (the stem): fold the 9 taps into K = 9*Cin."""
    N, H, W, Cin = x.shape
    Cout = w.shape[3]
    xp = jnp.pad(x, ((0, 0), (1, 1), (1, 1), (0, 0)))
    taps = [xp[:, dy:dy + H, dx:dx + W, :] for dy in range(3) for dx in range(3)]
    patches = jnp.concatenate(taps, axis=-1).reshape(N * H * W, 9 * Cin)
    w2 = w.reshape(9 * Cin, Cout)
    out = matmul_bias_act(patches, w2, b, relu=relu, out_dtype=jnp.bfloat16)
    return out.reshape(N, H, W, Cout)


def conv1x1_lane_padded(x, w, b):
    """Final 1x1 conv: compute into a 128-wide lane-dense slab, slice after."""
    N, H, W, Cin = x.shape
    ncls = w.shape[3]
    cpad = max(128, -(-ncls // 128) * 128)
    w2 = jnp.zeros((Cin, cpad), jnp.float32).at[:, :ncls].set(
        w.reshape(Cin, ncls))
    b2 = jnp.zeros((cpad,), jnp.float32).at[:ncls].set(b)
    out = matmul_bias_act(x.reshape(N * H * W, Cin), w2, b2, relu=False,
                          out_dtype=jnp.float32)
    return out[:, :ncls].reshape(N, H, W, ncls)


def maxpool2x2(x):
    """MaxPool2d(2, 2).  The 4 window corners are selected by BlockSpec index
    maps over a free reshape of x (no stacked copies in HBM)."""
    N, H, W, C = x.shape
    Ho, Wo = H // 2, W // 2
    xr = x.reshape(N, Ho, 2, Wo, 2, C)
    TH = _pick_pool_rows(Ho, Wo, C)

    def corner_spec(i, j):
        return pl.BlockSpec((1, TH, None, Wo, None, C),
                            lambda n, m: (n, m, i, 0, j, 0))

    return pl.pallas_call(
        _maxpool_kernel,
        out_shape=jax.ShapeDtypeStruct((N, Ho, Wo, C), x.dtype),
        grid_spec=pltpu.PrefetchScalarGridSpec(
            num_scalar_prefetch=0,
            grid=(N, Ho // TH),
            in_specs=[corner_spec(0, 0), corner_spec(0, 1),
                      corner_spec(1, 0), corner_spec(1, 1)],
            out_specs=pl.BlockSpec((1, TH, Wo, C), lambda n, m: (n, m, 0, 0)),
        ),
        compiler_params=pltpu.CompilerParams(
            dimension_semantics=("parallel", "parallel"),
            vmem_limit_bytes=_VMEM_LIMIT),
    )(xr, xr, xr, xr)


# ---------------------------------------------------------------------------
# Plain-JAX glue (layout / tiny ops): bilinear upsample (align_corners=True)
# ---------------------------------------------------------------------------
def _interp_matrix(n_in, n_out):
    if n_in == 1:
        return jnp.ones((n_out, 1), jnp.float32)
    pos = jnp.arange(n_out, dtype=jnp.float32) * (n_in - 1) / (n_out - 1)
    lo = jnp.floor(pos).astype(jnp.int32)
    hi = jnp.minimum(lo + 1, n_in - 1)
    frac = pos - lo.astype(jnp.float32)
    m = jnp.zeros((n_out, n_in), jnp.float32)
    m = m.at[jnp.arange(n_out), lo].add(1.0 - frac)
    m = m.at[jnp.arange(n_out), hi].add(frac)
    return m


def upsample_bilinear_x2(x):
    # TODO(synk): left to XLA (separable matmuls); negligible next to the convs.
    N, H, W, C = x.shape
    mh = _interp_matrix(H, 2 * H)
    mw = _interp_matrix(W, 2 * W)
    xf = x.astype(jnp.float32)
    y = jnp.einsum('ph,nhwc->npwc', mh, xf)
    y = jnp.einsum('qw,npwc->npqc', mw, y)
    return y.astype(jnp.bfloat16)


# ---------------------------------------------------------------------------
# Parameters (deterministic synthetic init; no pretrained checkpoint loading)
# ---------------------------------------------------------------------------
def init_params(key, n_classes):
    cfg = {
        'enc1': [(3, 64), (64, 64)],
        'enc2': [(64, 128), (128, 128)],
        'enc3': [(128, 256), (256, 256), (256, 256)],
        'enc4': [(256, 512), (512, 512), (512, 512)],
        'enc5': [(512, 512), (512, 512), (512, 512)],
        'up4': [(1024, 512), (512, 512)],
        'up3': [(768, 256), (256, 256)],
        'up2': [(384, 128), (128, 128)],
        'up1': [(192, 64), (64, 64)],
    }
    params = {}
    for name, layers in cfg.items():
        lp = []
        for cin, cout in layers:
            key, kw_, kb_ = jax.random.split(key, 3)
            std = (2.0 / (9 * cin)) ** 0.5
            w = jax.random.normal(kw_, (3, 3, cin, cout), jnp.float32) * std
            b_ = 0.01 * jax.random.normal(kb_, (cout,), jnp.float32)
            lp.append((w, b_))
        params[name] = lp
    key, kw_, kb_ = jax.random.split(key, 3)
    wf = jax.random.normal(kw_, (1, 1, 64, n_classes), jnp.float32) * (2.0 / 64) ** 0.5
    bf = 0.01 * jax.random.normal(kb_, (n_classes,), jnp.float32)
    params['final'] = (wf, bf)
    return params


# ---------------------------------------------------------------------------
# Forward pass (mirrors Unet.forward; NCHW in, NCHW out)
# ---------------------------------------------------------------------------
def _run_convs(f, layer_params):
    for w, b in layer_params:
        cin = w.shape[2]
        if cin * 9 <= 32:                       # the 3-channel stem
            f = conv3x3_folded(f, w, b, relu=True)
        else:
            f = conv3x3(f, w, b, relu=True)
    return f


def unet_forward(params, x_nchw):
    x = jnp.transpose(x_nchw, (0, 2, 3, 1)).astype(jnp.bfloat16)

    f = _run_convs(x, params['enc1']); feat1 = f
    f = _run_convs(maxpool2x2(f), params['enc2']); feat2 = f
    f = _run_convs(maxpool2x2(f), params['enc3']); feat3 = f
    f = _run_convs(maxpool2x2(f), params['enc4']); feat4 = f
    f = _run_convs(maxpool2x2(f), params['enc5']); feat5 = f

    def unet_up(skip, deep, convs):
        y = jnp.concatenate([skip, upsample_bilinear_x2(deep)], axis=-1)
        return _run_convs(y, convs)

    u4 = unet_up(feat4, feat5, params['up4'])
    u3 = unet_up(feat3, u4, params['up3'])
    u2 = unet_up(feat2, u3, params['up2'])
    u1 = unet_up(feat1, u2, params['up1'])

    wf, bf = params['final']
    out = conv1x1_lane_padded(u1, wf, bf)
    return jnp.transpose(out, (0, 3, 1, 2))


# ---------------------------------------------------------------------------
# Pure-JAX reference (same bf16 policy) used only for self-checking.
# ---------------------------------------------------------------------------
def _ref_conv(x, w, b, relu=True, out_dtype=jnp.bfloat16):
    y = jax.lax.conv_general_dilated(
        x, w.astype(x.dtype), (1, 1), 'SAME',
        dimension_numbers=('NHWC', 'HWIO', 'NHWC'),
        preferred_element_type=jnp.float32)
    y = y + b
    if relu:
        y = jnp.maximum(y, 0.0)
    return y.astype(out_dtype)


def _ref_pool(x):
    N, H, W, C = x.shape
    return jnp.max(x.reshape(N, H // 2, 2, W // 2, 2, C), axis=(2, 4))


def unet_forward_ref(params, x_nchw):
    x = jnp.transpose(x_nchw, (0, 2, 3, 1)).astype(jnp.bfloat16)

    def run(f, lp):
        for w, b in lp:
            f = _ref_conv(f, w, b, relu=True)
        return f

    f = run(x, params['enc1']); feat1 = f
    f = run(_ref_pool(f), params['enc2']); feat2 = f
    f = run(_ref_pool(f), params['enc3']); feat3 = f
    f = run(_ref_pool(f), params['enc4']); feat4 = f
    f = run(_ref_pool(f), params['enc5']); feat5 = f

    def up(skip, deep, convs):
        return run(jnp.concatenate([skip, upsample_bilinear_x2(deep)], axis=-1),
                   convs)

    u4 = up(feat4, feat5, params['up4'])
    u3 = up(feat3, u4, params['up3'])
    u2 = up(feat2, u3, params['up2'])
    u1 = up(feat1, u2, params['up1'])

    wf, bf = params['final']
    out = _ref_conv(u1, wf, bf, relu=False, out_dtype=jnp.float32)
    return jnp.transpose(out, (0, 3, 1, 2))


# ---------------------------------------------------------------------------
if __name__ == "__main__":
    n_classes = 4
    root = jax.random.PRNGKey(0)
    kp, kx, ku = jax.random.split(root, 3)
    params = init_params(kp, n_classes)
    x = jax.random.normal(kx, (2, 3, 32, 32), jnp.float32)   # NCHW like PyTorch

    # --- unit checks: both conv variants and the pool kernel vs. XLA ---
    k1, k2, k3 = jax.random.split(ku, 3)
    xin = jax.random.normal(k1, (2, 16, 16, 32), jnp.float32).astype(jnp.bfloat16)
    wtest = jax.random.normal(k2, (3, 3, 32, 48), jnp.float32) * 0.1
    btest = jax.random.normal(k3, (48,), jnp.float32) * 0.1
    ref = _ref_conv(xin, wtest, btest, relu=True).astype(jnp.float32)
    for variant in ("whole", "tiled"):
        got = conv3x3(xin, wtest, btest, relu=True,
                      force_variant=variant, force_rows=4).astype(jnp.float32)
        err = float(jnp.max(jnp.abs(got - ref)))
        scale = float(jnp.max(jnp.abs(ref)))
        assert err <= 0.03 * scale + 0.02, (variant, err, scale)
    assert bool(jnp.all(maxpool2x2(xin) == _ref_pool(xin)))

    # --- full forward ---
    out = jax.block_until_ready(jax.jit(unet_forward)(params, x))
    ref_out = jax.block_until_ready(jax.jit(unet_forward_ref)(params, x))

    assert out.shape == (2, n_classes, 32, 32), out.shape
    assert bool(jnp.all(jnp.isfinite(out)))
    err = float(jnp.max(jnp.abs(out - ref_out)))
    scale = float(jnp.max(jnp.abs(ref_out)))
    assert err <= 0.1 * scale + 0.05, (err, scale)
    print("KERNEL_OK")
</pallas_src>

<mosaic_0001>
module attributes {stable_mosaic.version = 11 : i64} {
  func.func @_conv3x3_kernel(%arg0: i32, %arg1: memref<1x324x32xbf16, #tpu.memory_space<vmem>>, %arg2: memref<9x32x48xbf16, #tpu.memory_space<vmem>>, %arg3: memref<1x48xf32, #tpu.memory_space<vmem>>, %arg4: memref<1x324x48xbf16, #tpu.memory_space<vmem>>, %arg5: memref<324x48xf32, #tpu.memory_space<vmem>>) attributes {dimension_semantics = [#tpu.dimension_semantics<parallel>], iteration_bounds = array<i64: 2>, scalar_prefetch = 0 : i64, scratch_operands = 1 : i64, tpu.core_type = #tpu.core_type<tc>, window_params = [{transform_indices = @transform_0, window_bounds = array<i64: 1, 324, 32>}, {pipeline_mode = #tpu.pipeline_mode<synchronous>, transform_indices = @transform_1, window_bounds = array<i64: 9, 32, 48>}, {pipeline_mode = #tpu.pipeline_mode<synchronous>, transform_indices = @transform_2, window_bounds = array<i64: 1, 48>}, {transform_indices = @transform_3, window_bounds = array<i64: 1, 324, 48>}]} {
    %cst = arith.constant 0.000000e+00 : f32
    %0 = vector.broadcast %cst : f32 to vector<324x48xf32>
    %c0 = arith.constant 0 : index
    %c0_0 = arith.constant 0 : index
    %1 = vector.load %arg5[%c0, %c0_0] : memref<324x48xf32, #tpu.memory_space<vmem>>, vector<324x48xf32>
    tpu.vector_store %arg5[%c0, %c0_0], %0 {strides = array<i32>} : memref<324x48xf32, #tpu.memory_space<vmem>>, vector<324x48xf32>,
    %c0_1 = arith.constant 0 : index
    %c0_2 = arith.constant 0 : index
    %c0_3 = arith.constant 0 : index
    %2 = vector.load %arg2[%c0_1, %c0_2, %c0_3] : memref<9x32x48xbf16, #tpu.memory_space<vmem>>, vector<1x32x48xbf16>
    %3 = vector.shape_cast %2 : vector<1x32x48xbf16> to vector<32x48xbf16>
    %c19 = arith.constant 19 : index
    %c0_4 = arith.constant 0 : index
    %4 = vector.load %arg5[%c19, %c0_4] : memref<324x48xf32, #tpu.memory_space<vmem>>, vector<305x48xf32>
    %c0_5 = arith.constant 0 : index
    %c0_6 = arith.constant 0 : index
    %c0_7 = arith.constant 0 : index
    %5 = vector.load %arg1[%c0_5, %c0_6, %c0_7] : memref<1x324x32xbf16, #tpu.memory_space<vmem>>, vector<1x305x32xbf16>
    %6 = vector.shape_cast %5 : vector<1x305x32xbf16> to vector<305x32xbf16>
    %cst_8 = arith.constant dense<0.000000e+00> : vector<305x48xf32>
    %7 = tpu.matmul %6, %3, %cst_8 {dimension_numbers = #tpu.dot_dimension_numbers<[1], [0], [0], [1], [0, 0, 1, 1], [], []>} : vector<305x32xbf16>, vector<32x48xbf16>, vector<305x48xf32> -> vector<305x48xf32>
    %8 = arith.addf %4, %7 : vector<305x48xf32>
    %c19_9 = arith.constant 19 : index
    %c0_10 = arith.constant 0 : index
    %9 = vector.load %arg5[%c19_9, %c0_10] : memref<324x48xf32, #tpu.memory_space<vmem>>, vector<305x48xf32>
    tpu.vector_store %arg5[%c19_9, %c0_10], %8 {strides = array<i32>} : memref<324x48xf32, #tpu.memory_space<vmem>>, vector<305x48xf32>,
    %c1 = arith.constant 1 : index
    %c0_11 = arith.constant 0 : index
    %c0_12 = arith.constant 0 : index
    %10 = vector.load %arg2[%c1, %c0_11, %c0_12] : memref<9x32x48xbf16, #tpu.memory_space<vmem>>, vector<1x32x48xbf16>
    %11 = vector.shape_cast %10 : vector<1x32x48xbf16> to vector<32x48xbf16>
    %c18 = arith.constant 18 : index
    %c0_13 = arith.constant 0 : index
    %12 = vector.load %arg5[%c18, %c0_13] : memref<324x48xf32, #tpu.memory_space<vmem>>, vector<306x48xf32>
    %c0_14 = arith.constant 0 : index
    %c0_15 = arith.constant 0 : index
    %c0_16 = arith.constant 0 : index
    %13 = vector.load %arg1[%c0_14, %c0_15, %c0_16] : memref<1x324x32xbf16, #tpu.memory_space<vmem>>, vector<1x306x32xbf16>
    %14 = vector.shape_cast %13 : vector<1x306x32xbf16> to vector<306x32xbf16>
    %cst_17 = arith.constant dense<0.000000e+00> : vector<306x48xf32>
    %15 = tpu.matmul %14, %11, %cst_17 {dimension_numbers = #tpu.dot_dimension_numbers<[1], [0], [0], [1], [0, 0, 1, 1], [], []>} : vector<306x32xbf16>, vector<32x48xbf16>, vector<306x48xf32> -> vector<306x48xf32>
    %16 = arith.addf %12, %15 : vector<306x48xf32>
    %c18_18 = arith.constant 18 : index
    %c0_19 = arith.constant 0 : index
    %17 = vector.load %arg5[%c18_18, %c0_19] : memref<324x48xf32, #tpu.memory_space<vmem>>, vector<306x48xf32>
    tpu.vector_store %arg5[%c18_18, %c0_19], %16 {strides = array<i32>} : memref<324x48xf32, #tpu.memory_space<vmem>>, vector<306x48xf32>,
    %c2 = arith.constant 2 : index
    %c0_20 = arith.constant 0 : index
    %c0_21 = arith.constant 0 : index
    %18 = vector.load %arg2[%c2, %c0_20, %c0_21] : memref<9x32x48xbf16, #tpu.memory_space<vmem>>, vector<1x32x48xbf16>
    %19 = vector.shape_cast %18 : vector<1x32x48xbf16> to vector<32x48xbf16>
    %c17 = arith.constant 17 : index
    %c0_22 = arith.constant 0 : index
    %20 = vector.load %arg5[%c17, %c0_22] : memref<324x48xf32, #tpu.memory_space<vmem>>, vector<307x48xf32>
    %c0_23 = arith.constant 0 : index
    %c0_24 = arith.constant 0 : index
    %c0_25 = arith.constant 0 : index
    %21 = vector.load %arg1[%c0_23, %c0_24, %c0_25] : memref<1x324x32xbf16, #tpu.memory_space<vmem>>, vector<1x307x32xbf16>
    %22 = vector.shape_cast %21 : vector<1x307x32xbf16> to vector<307x32xbf16>
    %cst_26 = arith.constant dense<0.000000e+00> : vector<307x48xf32>
    %23 = tpu.matmul %22, %19, %cst_26 {dimension_numbers = #tpu.dot_dimension_numbers<[1], [0], [0], [1], [0, 0, 1, 1], [], []>} : vector<307x32xbf16>, vector<32x48xbf16>, vector<307x48xf32> -> vector<307x48xf32>
    %24 = arith.addf %20, %23 : vector<307x48xf32>
    %c17_27 = arith.constant 17 : index
    %c0_28 = arith.constant 0 : index
    %25 = vector.load %arg5[%c17_27, %c0_28] : memref<324x48xf32, #tpu.memory_space<vmem>>, vector<307x48xf32>
    tpu.vector_store %arg5[%c17_27, %c0_28], %24 {strides = array<i32>} : memref<324x48xf32, #tpu.memory_space<vmem>>, vector<307x48xf32>,
    %c3 = arith.constant 3 : index
    %c0_29 = arith.constant 0 : index
    %c0_30 = arith.constant 0 : index
    %26 = vector.load %arg2[%c3, %c0_29, %c0_30] : memref<9x32x48xbf16, #tpu.memory_space<vmem>>, vector<1x32x48xbf16>
    %27 = vector.shape_cast %26 : vector<1x32x48xbf16> to vector<32x48xbf16>
    %c1_31 = arith.constant 1 : index
    %c0_32 = arith.constant 0 : index
    %28 = vector.load %arg5[%c1_31, %c0_32] : memref<324x48xf32, #tpu.memory_space<vmem>>, vector<323x48xf32>
    %c0_33 = arith.constant 0 : index
    %c0_34 = arith.constant 0 : index
    %c0_35 = arith.constant 0 : index
    %29 = vector.load %arg1[%c0_33, %c0_34, %c0_35] : memref<1x324x32xbf16, #tpu.memory_space<vmem>>, vector<1x323x32xbf16>
    %30 = vector.shape_cast %29 : vector<1x323x32xbf16> to vector<323x32xbf16>
    %cst_36 = arith.constant dense<0.000000e+00> : vector<323x48xf32>
    %31 = tpu.matmul %30, %27, %cst_36 {dimension_numbers = #tpu.dot_dimension_numbers<[1], [0], [0], [1], [0, 0, 1, 1], [], []>} : vector<323x32xbf16>, vector<32x48xbf16>, vector<323x48xf32> -> vector<323x48xf32>
    %32 = arith.addf %28, %31 : vector<323x48xf32>
    %c1_37 = arith.constant 1 : index
    %c0_38 = arith.constant 0 : index
    %33 = vector.load %arg5[%c1_37, %c0_38] : memref<324x48xf32, #tpu.memory_space<vmem>>, vector<323x48xf32>
    tpu.vector_store %arg5[%c1_37, %c0_38], %32 {strides = array<i32>} : memref<324x48xf32, #tpu.memory_space<vmem>>, vector<323x48xf32>,
    %c4 = arith.constant 4 : index
    %c0_39 = arith.constant 0 : index
    %c0_40 = arith.constant 0 : index
    %34 = vector.load %arg2[%c4, %c0_39, %c0_40] : memref<9x32x48xbf16, #tpu.memory_space<vmem>>, vector<1x32x48xbf16>
    %35 = vector.shape_cast %34 : vector<1x32x48xbf16> to vector<32x48xbf16>
    %c0_41 = arith.constant 0 : index
    %c0_42 = arith.constant 0 : index
    %36 = vector.load %arg5[%c0_41, %c0_42] : memref<324x48xf32, #tpu.memory_space<vmem>>, vector<324x48xf32>
    %c0_43 = arith.constant 0 : index
    %c0_44 = arith.constant 0 : index
    %c0_45 = arith.constant 0 : index
    %37 = vector.load %arg1[%c0_43, %c0_44, %c0_45] : memref<1x324x32xbf16, #tpu.memory_space<vmem>>, vector<1x324x32xbf16>
    %38 = vector.shape_cast %37 : vector<1x324x32xbf16> to vector<324x32xbf16>
    %cst_46 = arith.constant dense<0.000000e+00> : vector<324x48xf32>
    %39 = tpu.matmul %38, %35, %cst_46 {dimension_numbers = #tpu.dot_dimension_numbers<[1], [0], [0], [1], [0, 0, 1, 1], [], []>} : vector<324x32xbf16>, vector<32x48xbf16>, vector<324x48xf32> -> vector<324x48xf32>
    %40 = arith.addf %36, %39 : vector<324x48xf32>
    %c0_47 = arith.constant 0 : index
    %c0_48 = arith.constant 0 : index
    %41 = vector.load %arg5[%c0_47, %c0_48] : memref<324x48xf32, #tpu.memory_space<vmem>>, vector<324x48xf32>
    tpu.vector_store %arg5[%c0_47, %c0_48], %40 {strides = array<i32>} : memref<324x48xf32, #tpu.memory_space<vmem>>, vector<324x48xf32>,
    %c5 = arith.constant 5 : index
    %c0_49 = arith.constant 0 : index
    %c0_50 = arith.constant 0 : index
    %42 = vector.load %arg2[%c5, %c0_49, %c0_50] : memref<9x32x48xbf16, #tpu.memory_space<vmem>>, vector<1x32x48xbf16>
    %43 = vector.shape_cast %42 : vector<1x32x48xbf16> to vector<32x48xbf16>
    %c0_51 = arith.constant 0 : index
    %c0_52 = arith.constant 0 : index
    %44 = vector.load %arg5[%c0_51, %c0_52] : memref<324x48xf32, #tpu.memory_space<vmem>>, vector<323x48xf32>
    %c0_53 = arith.constant 0 : index
    %c1_54 = arith.constant 1 : index
    %c0_55 = arith.constant 0 : index
    %45 = vector.load %arg1[%c0_53, %c1_54, %c0_55] : memref<1x324x32xbf16, #tpu.memory_space<vmem>>, vector<1x323x32xbf16>
    %46 = vector.shape_cast %45 : vector<1x323x32xbf16> to vector<323x32xbf16>
    %cst_56 = arith.constant dense<0.000000e+00> : vector<323x48xf32>
    %47 = tpu.matmul %46, %43, %cst_56 {dimension_numbers = #tpu.dot_dimension_numbers<[1], [0], [0], [1], [0, 0, 1, 1], [], []>} : vector<323x32xbf16>, vector<32x48xbf16>, vector<323x48xf32> -> vector<323x48xf32>
    %48 = arith.addf %44, %47 : vector<323x48xf32>
    %c0_57 = arith.constant 0 : index
    %c0_58 = arith.constant 0 : index
    %49 = vector.load %arg5[%c0_57, %c0_58] : memref<324x48xf32, #tpu.memory_space<vmem>>, vector<323x48xf32>
    tpu.vector_store %arg5[%c0_57, %c0_58], %48 {strides = array<i32>} : memref<324x48xf32, #tpu.memory_space<vmem>>, vector<323x48xf32>,
    %c6 = arith.constant 6 : index
    %c0_59 = arith.constant 0 : index
    %c0_60 = arith.constant 0 : index
    %50 = vector.load %arg2[%c6, %c0_59, %c0_60] : memref<9x32x48xbf16, #tpu.memory_space<vmem>>, vector<1x32x48xbf16>
    %51 = vector.shape_cast %50 : vector<1x32x48xbf16> to vector<32x48xbf16>
    %c0_61 = arith.constant 0 : index
    %c0_62 = arith.constant 0 : index
    %52 = vector.load %arg5[%c0_61, %c0_62] : memref<324x48xf32, #tpu.memory_space<vmem>>, vector<307x48xf32>
    %c0_63 = arith.constant 0 : index
    %c17_64 = arith.constant 17 : index
    %c0_65 = arith.constant 0 : index
    %53 = vector.load %arg1[%c0_63, %c17_64, %c0_65] : memref<1x324x32xbf16, #tpu.memory_space<vmem>>, vector<1x307x32xbf16>
    %54 = vector.shape_cast %53 : vector<1x307x32xbf16> to vector<307x32xbf16>
    %cst_66 = arith.constant dense<0.000000e+00> : vector<307x48xf32>
    %55 = tpu.matmul %54, %51, %cst_66 {dimension_numbers = #tpu.dot_dimension_numbers<[1], [0], [0], [1], [0, 0, 1, 1], [], []>} : vector<307x32xbf16>, vector<32x48xbf16>, vector<307x48xf32> -> vector<307x48xf32>
    %56 = arith.addf %52, %55 : vector<307x48xf32>
    %c0_67 = arith.constant 0 : index
    %c0_68 = arith.constant 0 : index
    %57 = vector.load %arg5[%c0_67, %c0_68] : memref<324x48xf32, #tpu.memory_space<vmem>>, vector<307x48xf32>
    tpu.vector_store %arg5[%c0_67, %c0_68], %56 {strides = array<i32>} : memref<324x48xf32, #tpu.memory_space<vmem>>, vector<307x48xf32>,
    %c7 = arith.constant 7 : index
    %c0_69 = arith.constant 0 : index
    %c0_70 = arith.constant 0 : index
    %58 = vector.load %arg2[%c7, %c0_69, %c0_70] : memref<9x32x48xbf16, #tpu.memory_space<vmem>>, vector<1x32x48xbf16>
    %59 = vector.shape_cast %58 : vector<1x32x48xbf16> to vector<32x48xbf16>
    %c0_71 = arith.constant 0 : index
    %c0_72 = arith.constant 0 : index
    %60 = vector.load %arg5[%c0_71, %c0_72] : memref<324x48xf32, #tpu.memory_space<vmem>>, vector<306x48xf32>
    %c0_73 = arith.constant 0 : index
    %c18_74 = arith.constant 18 : index
    %c0_75 = arith.constant 0 : index
    %61 = vector.load %arg1[%c0_73, %c18_74, %c0_75] : memref<1x324x32xbf16, #tpu.memory_space<vmem>>, vector<1x306x32xbf16>
    %62 = vector.shape_cast %61 : vector<1x306x32xbf16> to vector<306x32xbf16>
    %cst_76 = arith.constant dense<0.000000e+00> : vector<306x48xf32>
    %63 = tpu.matmul %62, %59, %cst_76 {dimension_numbers = #tpu.dot_dimension_numbers<[1], [0], [0], [1], [0, 0, 1, 1], [], []>} : vector<306x32xbf16>, vector<32x48xbf16>, vector<306x48xf32> -> vector<306x48xf32>
    %64 = arith.addf %60, %63 : vector<306x48xf32>
    %c0_77 = arith.constant 0 : index
    %c0_78 = arith.constant 0 : index
    %65 = vector.load %arg5[%c0_77, %c0_78] : memref<324x48xf32, #tpu.memory_space<vmem>>, vector<306x48xf32>
    tpu.vector_store %arg5[%c0_77, %c0_78], %64 {strides = array<i32>} : memref<324x48xf32, #tpu.memory_space<vmem>>, vector<306x48xf32>,
    %c8 = arith.constant 8 : index
    %c0_79 = arith.constant 0 : index
    %c0_80 = arith.constant 0 : index
    %66 = vector.load %arg2[%c8, %c0_79, %c0_80] : memref<9x32x48xbf16, #tpu.memory_space<vmem>>, vector<1x32x48xbf16>
    %67 = vector.shape_cast %66 : vector<1x32x48xbf16> to vector<32x48xbf16>
    %c0_81 = arith.constant 0 : index
    %c0_82 = arith.constant 0 : index
    %68 = vector.load %arg5[%c0_81, %c0_82] : memref<324x48xf32, #tpu.memory_space<vmem>>, vector<305x48xf32>
    %c0_83 = arith.constant 0 : index
    %c19_84 = arith.constant 19 : index
    %c0_85 = arith.constant 0 : index
    %69 = vector.load %arg1[%c0_83, %c19_84, %c0_85] : memref<1x324x32xbf16, #tpu.memory_space<vmem>>, vector<1x305x32xbf16>
    %70 = vector.shape_cast %69 : vector<1x305x32xbf16> to vector<305x32xbf16>
    %cst_86 = arith.constant dense<0.000000e+00> : vector<305x48xf32>
    %71 = tpu.matmul %70, %67, %cst_86 {dimension_numbers = #tpu.dot_dimension_numbers<[1], [0], [0], [1], [0, 0, 1, 1], [], []>} : vector<305x32xbf16>, vector<32x48xbf16>, vector<305x48xf32> -> vector<305x48xf32>
    %72 = arith.addf %68, %71 : vector<305x48xf32>
    %c0_87 = arith.constant 0 : index
    %c0_88 = arith.constant 0 : index
    %73 = vector.load %arg5[%c0_87, %c0_88] : memref<324x48xf32, #tpu.memory_space<vmem>>, vector<305x48xf32>
    tpu.vector_store %arg5[%c0_87, %c0_88], %72 {strides = array<i32>} : memref<324x48xf32, #tpu.memory_space<vmem>>, vector<305x48xf32>,
    %c0_89 = arith.constant 0 : index
    %c0_90 = arith.constant 0 : index
    %74 = vector.load %arg5[%c0_89, %c0_90] : memref<324x48xf32, #tpu.memory_space<vmem>>, vector<324x48xf32>
    %c0_91 = arith.constant 0 : index
    %c0_92 = arith.constant 0 : index
    %75 = vector.load %arg3[%c0_91, %c0_92] : memref<1x48xf32, #tpu.memory_space<vmem>>, vector<1x48xf32>
    %76 = vector.broadcast %75 : vector<1x48xf32> to vector<324x48xf32>
    %77 = arith.addf %74, %76 : vector<324x48xf32>
    %cst_93 = arith.constant 0.000000e+00 : f32
    %78 = vector.broadcast %cst_93 : f32 to vector<324x48xf32>
    %79 = arith.maximumf %77, %78 : vector<324x48xf32>
    %80 = arith.truncf %79 : vector<324x48xf32> to vector<324x48xbf16>
    %c0_94 = arith.constant 0 : index
    %c0_95 = arith.constant 0 : index
    %c0_96 = arith.constant 0 : index
    %81 = vector.load %arg4[%c0_94, %c0_95, %c0_96] : memref<1x324x48xbf16, #tpu.memory_space<vmem>>, vector<1x324x48xbf16>
    %82 = vector.shape_cast %81 : vector<1x324x48xbf16> to vector<324x48xbf16>
    %83 = vector.shape_cast %80 : vector<324x48xbf16> to vector<1x324x48xbf16>
    tpu.vector_store %arg4[%c0_94, %c0_95, %c0_96], %83 {strides = array<i32>} : memref<1x324x48xbf16, #tpu.memory_space<vmem>>, vector<1x324x48xbf16>,
    return
  }
  func.func @transform_0(%arg0: i32) -> (i32, i32, i32) {
    %c0_i32 = arith.constant 0 : i32
    %c0_i32_0 = arith.constant 0 : i32
    %c0_i32_1 = arith.constant 0 : i32
    return %arg0, %c0_i32, %c0_i32_0 : i32, i32, i32
  }
  func.func @transform_1(%arg0: i32) -> (i32, i32, i32) {
    %c0_i32 = arith.constant 0 : i32
    %c0_i32_0 = arith.constant 0 : i32
    %c0_i32_1 = arith.constant 0 : i32
    %c0_i32_2 = arith.constant 0 : i32
    return %c0_i32, %c0_i32_0, %c0_i32_1 : i32, i32, i32
  }
  func.func @transform_2(%arg0: i32) -> (i32, i32) {
    %c0_i32 = arith.constant 0 : i32
    %c0_i32_0 = arith.constant 0 : i32
    %c0_i32_1 = arith.constant 0 : i32
    return %c0_i32, %c0_i32_0 : i32, i32
  }
  func.func @transform_3(%arg0: i32) -> (i32, i32, i32) {
    %c0_i32 = arith.constant 0 : i32
    %c0_i32_0 = arith.constant 0 : i32
    %c0_i32_1 = arith.constant 0 : i32
    return %arg0, %c0_i32, %c0_i32_0 : i32, i32, i32
  }
}

</mosaic_0001>

<bundles_post_ra>
// kernel: tpu_custom_call.1
= control target key start
LH: loop header
LB: loop body
LE: loop exit
PB: predicated region body
PF: predicated region fallthrough
CT: control target
= control target key end

     0   :  { %s7415_s12 = smov 0   ;;  %s8851_s0 = inlined_call_operand.vmem [shape: bf16[2,324,32], index: 0, kind: input, shape index: {}]   ;;  %s8852_s1 = inlined_call_operand.vmem [shape: bf16[9,32,48], index: 1, kind: input, shape index: {}]   ;;  %s8853_s2 = inlined_call_operand.vmem [shape: f32[1,48], index: 2, kind: input, shape index: {}]   ;;  %s8854_s3 = inlined_call_operand.vmem [shape: bf16[2,324,48], index: 3, kind: output, shape index: {}]  }
   0x1 LB: > { %s5935_s13 = sadd.s32 4294967295, %s7391_s12   ;;  %p5939_p0 = scmp.ge.s32.totalorder %s7391_s12, 1  ;;  %s7391_s12 = sphi %s7415_s12, %s13_s12  }
   0x2   : > { %p137_p1 = scmp.lt.s32.totalorder %s7391_s12, 3 }
   0x4   : > { %p138_p2 = pnand %p5939_p0, %p137_p1 }
   0x5   : > { %p161_p3 = scmp.lt.s32.totalorder (!%p138_p2), %s5935_s13, 1 }
   0x6   : > { %141 = sbr.rel (%p138_p2) target bundleno = 728 (0x2d8), region = 32 }
   0xb   : > { %v7183_v0 = vld [vmem:[%s8852_s1 + $0x8] sm:$0xff]   ;;  %v7184_v1 = vld [vmem:[%s8852_s1 + $0x18] sm:$0xff]   ;;  %v7185_v2 = vld [vmem:[%s8852_s1] sm:$0xff]   ;;  %s8856_s13 = smov (!%p161_p3, %s5935_s13), 1  ;;  %vm407_vm0 = vcmask 261120   ;;  %v7393_v10 = vmov 0.0  }
   0xc   : > { %6644 = vmatprep.subr.bf16.mxu0 %v7183_v0  ;;  %6688 = vmatprep.subr.bf16.mxu1 %v7184_v1  ;;  %v7186_v3 = vld [vmem:[%s8852_s1 + $0x10] sm:$0xff]   ;;  %s7172_s22 = smul.u32 164, %s8856_s13  ;;  %v7191_v4 = vld [vmem:[%s8852_s1 + $0x28] sm:$0xff]   ;;  %v7192_v6 = vld [vmem:[%s8852_s1 + $0x38] sm:$0xff]   ;;  %vm172_vm1 = vcmask 392192   ;;  %vm7394_vm2 = vmmov 0  }
   0xd   : > { %6645 = vmatpush3.bf16.msra.mxu0 %v7183_v0  ;;  %6689 = vmatpush3.bf16.msra.mxu1 %v7184_v1  ;;  %v7213_v8 = vld [vmem:[%s8852_s1 + $0x20] sm:$0xff]   ;;  %v7214_v24 = vld [vmem:[%s8852_s1 + $0x30] sm:$0xff]   ;;  %177 = vst.msk [vmem:[#allocation2 + $0x20] sm:$0xff] %vm172_vm1, %v7393_v10  ;;  %178 = vst.msk [vmem:[#allocation2 + $0x28] sm:$0xff] %vm172_vm1, %v7393_v10  ;;  %vm213_vm3 = vcmask 388096   ;;  %vm737_vm5 = vcmask 385024  }
   0xe   : > { %6646 = vmatprep.subr.bf16.mxu0 %v7185_v2  ;;  %6690 = vmatprep.subr.bf16.mxu1 %v7186_v3  ;;  %s7446_s27 = scalar_lea.vmem %s8851_s0, %s7172_s22  ;;  %173 = vst.msk [vmem:[#allocation2] sm:$0xff] %vm172_vm1, %v7393_v10  ;;  %174 = vst.msk [vmem:[#allocation2 + $0x8] sm:$0xff] %vm172_vm1, %v7393_v10  ;;  %v7234_v52 = vld [vmem:[%s8852_s1 + $0x48] sm:$0xff]   ;;  %v7235_v53 = vld [vmem:[%s8852_s1 + $0x58] sm:$0xff]   ;;  %vm3071_vm4 = vsmask.f32 7424  ;;  %s8650_s9 = scalar_lea.vmem %s8854_s3, %s7172_s22 }
   0xf   : > { %v7187_v5 = vld [vmem:[%s7446_s27] sm:$0xff]   ;;  %v7189_v9 = vld [vmem:[%s7446_s27 + $0x8] sm:$0xff]   ;;  %v7193_v12 = vld [vmem:[%s7446_s27 + $0x10] sm:$0xff]   ;;  %175 = vst.msk [vmem:[#allocation2 + $0x10] sm:$0xff] %vm172_vm1, %v7393_v10  ;;  %vm1261_vm6 = vcmask 386048   ;;  %vm1785_vm7 = vcmask 387072  }
  0x10   : > { %v7188_v7 = vld [vmem:[%s7446_s27] sm:$0xff]   ;;  %6648 = vmatprep.mubr.msk.bf16.mxu0 %vm407_vm0, %v7187_v5  ;;  %v7190_v11 = vld [vmem:[%s7446_s27 + $0x8] sm:$0xff]   ;;  %v7194_v13 = vld [vmem:[%s7446_s27 + $0x10] sm:$0xff]   ;;  %176 = vst.msk [vmem:[#allocation2 + $0x18] sm:$0xff] %vm172_vm1, %v7393_v10  ;;  %vm4459_vm8 = vcmask 1046528  }
  0x11   : > { %6647 = vmatpush3.bf16.msra.mxu0 %v7185_v2  ;;  %6691 = vmatpush3.bf16.msra.mxu1 %v7186_v3  ;;  %v7195_v14 = vld [vmem:[%s7446_s27 + $0x18] sm:$0xff]   ;;  %v7197_v16 = vld [vmem:[%s7446_s27 + $0x20] sm:$0xff]   ;;  %v7199_v18 = vld [vmem:[%s7446_s27 + $0x28] sm:$0xff]   ;;  %179 = vst.msk [vmem:[#allocation2 + $0x30] sm:$0xff] %vm172_vm1, %v7393_v10  ;;  %vm5022_vm9 = vsmask.f32 6400 }
  0x12   : > { %6732 = vmatprep.subr.bf16.mxu0 %v7191_v4  ;;  %6776 = vmatprep.subr.bf16.mxu1 %v7393_v10  ;;  %v7196_v15 = vld [vmem:[%s7446_s27 + $0x18] sm:$0xff]   ;;  %v7198_v17 = vld [vmem:[%s7446_s27 + $0x20] sm:$0xff]   ;;  %v7200_v19 = vld [vmem:[%s7446_s27 + $0x28] sm:$0xff]   ;;  %180 = vst.msk [vmem:[#allocation2 + $0x38] sm:$0xff] %vm172_vm1, %v7393_v10 }
  0x13   : > { %6692 = vmatprep.mubr.msk.bf16.mxu1 %vm407_vm0, %v7188_v7  ;;  %v7201_v20 = vld [vmem:[%s7446_s27 + $0x30] sm:$0xff]   ;;  %v7203_v22 = vld [vmem:[%s7446_s27 + $0x38] sm:$0xff]   ;;  %v7205_v25 = vld [vmem:[%s7446_s27 + $0x40] sm:$0xff]   ;;  %181 = vst.msk [vmem:[#allocation2 + $0x40] sm:$0xff] %vm172_vm1, %v7393_v10 }
  0x14   : > { %6649 = vmatmul.mubr.msk.bf16.vlgmr.msra.gmra.mxu0 %vm407_vm0, %v7189_v9  ;;  %6693 = vmatmul.mubr.msk.bf16.vlgmr.msra.gmra.mxu1 %vm407_vm0, %v7190_v11  ;;  %v7202_v21 = vld [vmem:[%s7446_s27 + $0x30] sm:$0xff]   ;;  %v7204_v23 = vld [vmem:[%s7446_s27 + $0x38] sm:$0xff]   ;;  %v7206_v26 = vld [vmem:[%s7446_s27 + $0x40] sm:$0xff]   ;;  %182 = vst.msk [vmem:[#allocation2 + $0x48] sm:$0xff] %vm172_vm1, %v7393_v10 }
  0x15   : > { %6733 = vmatpush3.bf16.msra.mxu0 %v7191_v4  ;;  %6777 = vmatpush3.bf16.msra.mxu1 %v7192_v6  ;;  %v7207_v27 = vld [vmem:[%s7446_s27 + $0x48] sm:$0xff]   ;;  %v7209_v29 = vld [vmem:[%s7446_s27 + $0x50] sm:$0xff]   ;;  %v7211_v31 = vld [vmem:[%s7446_s27 + $0x58] sm:$0xff]   ;;  %183 = vst.msk [vmem:[#allocation2 + $0x50] sm:$0xff] %vm172_vm1, %v7393_v10 }
  0x16   : > { %6652 = vmatprep.mubr.msk.bf16.mxu0 %vm407_vm0, %v7193_v12  ;;  %6696 = vmatprep.mubr.msk.bf16.mxu1 %vm407_vm0, %v7194_v13  ;;  %v7208_v28 = vld [vmem:[%s7446_s27 + $0x48] sm:$0xff]   ;;  %v7210_v30 = vld [vmem:[%s7446_s27 + $0x50] sm:$0xff]   ;;  %v7212_v32 = vld [vmem:[%s7446_s27 + $0x58] sm:$0xff]   ;;  %184 = vst.msk [vmem:[#allocation2 + $0x58] sm:$0xff] %vm172_vm1, %v7393_v10 }
  0x17   : > { %6734 = vmatprep.subr.bf16.mxu0 %v7213_v8  ;;  %6778 = vmatprep.subr.bf16.mxu1 %v7393_v10  ;;  %v7215_v33 = vld [vmem:[%s7446_s27 + $0x60] sm:$0xff]   ;;  %v7217_v35 = vld [vmem:[%s7446_s27 + $0x68] sm:$0xff]   ;;  %v7219_v37 = vld [vmem:[%s7446_s27 + $0x70] sm:$0xff]   ;;  %185 = vst.msk [vmem:[#allocation2 + $0x60] sm:$0xff] %vm172_vm1, %v7393_v10 }
  0x18   : > { %v7216_v34 = vld [vmem:[%s7446_s27 + $0x60] sm:$0xff]   ;;  %v7218_v36 = vld [vmem:[%s7446_s27 + $0x68] sm:$0xff]   ;;  %v7220_v38 = vld [vmem:[%s7446_s27 + $0x70] sm:$0xff]   ;;  %186 = vst.msk [vmem:[#allocation2 + $0x68] sm:$0xff] %vm172_vm1, %v7393_v10 }
  0x19   : > { %6735 = vmatpush3.bf16.msra.mxu0 %v7213_v8  ;;  %6779 = vmatpush3.bf16.msra.mxu1 %v7214_v24  ;;  %v7221_v39 = vld [vmem:[%s7446_s27 + $0x78] sm:$0xff]   ;;  %v7223_v41 = vld [vmem:[%s7446_s27 + $0x80] sm:$0xff]   ;;  %187 = vst.msk [vmem:[#allocation2 + $0x70] sm:$0xff] %vm172_vm1, %v7393_v10  ;;  %188 = vst.msk [vmem:[#allocation2 + $0x78] sm:$0xff] %vm172_vm1, %v7393_v10 }
  0x1a   : > { %6864 = vmatprep.subr.bf16.mxu0 %v7393_v10  ;;  %6952 = vmatprep.subr.bf16.mxu1 %v7393_v10  ;;  %v7222_v40 = vld [vmem:[%s7446_s27 + $0x78] sm:$0xff]   ;;  %v7224_v42 = vld [vmem:[%s7446_s27 + $0x80] sm:$0xff]   ;;  %189 = vst.msk [vmem:[#allocation2 + $0x80] sm:$0xff] %vm172_vm1, %v7393_v10  ;;  %190 = vst.msk [vmem:[#allocation2 + $0x88] sm:$0xff] %vm172_vm1, %v7393_v10 }
  0x1b   : > { %191 = vst.msk [vmem:[#allocation2 + $0x90] sm:$0xff] %vm172_vm1, %v7393_v10  ;;  %192 = vst.msk [vmem:[#allocation2 + $0x98] sm:$0xff] %vm172_vm1, %v7393_v10  ;;  %v7225_v43 = vld [vmem:[%s7446_s27 + $0x88] sm:$0xff]   ;;  %v7227_v45 = vld [vmem:[%s7446_s27 + $0x90] sm:$0xff]  }
  0x1c   : > { %6653 = vmatmul.mubr.msk.bf16.gmra.mxu0 %vm407_vm0, %v7195_v14  ;;  %6697 = vmatmul.mubr.msk.bf16.gmra.mxu1 %vm407_vm0, %v7196_v15  ;;  %193 = vst.msk [vmem:[#allocation2 + $0xa0] sm:$0xff] %vm172_vm1, %v7393_v10  ;;  %194 = vst.msk [vmem:[#allocation2 + $0xa8] sm:$0xff] %vm172_vm1, %v7393_v10  ;;  %v7226_v44 = vld [vmem:[%s7446_s27 + $0x88] sm:$0xff]   ;;  %v7228_v46 = vld [vmem:[%s7446_s27 + $0x90] sm:$0xff]  }
  0x1d   : > { %6656 = vmatprep.mubr.msk.bf16.mxu0 %vm407_vm0, %v7197_v16  ;;  %6700 = vmatprep.mubr.msk.bf16.mxu1 %vm407_vm0, %v7198_v17  ;;  %195 = vst.msk [vmem:[#allocation2 + $0xb0] sm:$0xff] %vm172_vm1, %v7393_v10  ;;  %196 = vst.msk [vmem:[#allocation2 + $0xb8] sm:$0xff] %vm172_vm1, %v7393_v10  ;;  %v7229_v47 = vld [vmem:[%s7446_s27 + $0x98] ss:$0 sps:$4 sm:$0x11]   ;;  %v7231_v49 = vld [vmem:[%s7446_s27] sm:$0xff]  }
  0x1e   : > { %197 = vst.msk [vmem:[#allocation2 + $0xc0] sm:$0xff] %vm172_vm1, %v7393_v10  ;;  %198 = vst.msk [vmem:[#allocation2 + $0xc8] sm:$0xff] %vm172_vm1, %v7393_v10  ;;  %v7230_v48 = vld [vmem:[%s7446_s27 + $0x98] ss:$0 sps:$4 sm:$0x11]   ;;  %v7232_v50 = vld [vmem:[%s7446_s27 + $0x8] sm:$0xff]  }
  0x1f   : > { %199 = vst.msk [vmem:[#allocation2 + $0xd0] sm:$0xff] %vm172_vm1, %v7393_v10  ;;  %200 = vst.msk [vmem:[#allocation2 + $0xd8] sm:$0xff] %vm172_vm1, %v7393_v10  ;;  %v7233_v51 = vld [vmem:[%s7446_s27] sm:$0xff]   ;;  %v7236_v54 = vld [vmem:[%s7446_s27 + $0x10] sm:$0xff]  }
  0x20   : > { %201 = vst.msk [vmem:[#allocation2 + $0xe0] sm:$0xff] %vm172_vm1, %v7393_v10  ;;  %202 = vst.msk [vmem:[#allocation2 + $0xe8] sm:$0xff] %vm172_vm1, %v7393_v10  ;;  %v7251_v55 = vld [vmem:[%s8852_s1 + $0x40] sm:$0xff]   ;;  %v7643_v56 = vld [vmem:[%s8852_s1 + $0x68] sm:$0xff]  }
  0x21   : > { %203 = vst.msk [vmem:[#allocation2 + $0xf0] sm:$0xff] %vm172_vm1, %v7393_v10  ;;  %204 = vst.msk [vmem:[#allocation2 + $0xf8] sm:$0xff] %vm172_vm1, %v7393_v10  ;;  %v7267_v57 = vld [vmem:[%s8852_s1 + $0x50] sm:$0xff]   ;;  %v7237_v58 = vld [vmem:[%s7446_s27 + $0x18] sm:$0xff]  }
  0x22   : > { %205 = vst.msk [vmem:[#allocation2 + $0x100] sm:$0xff] %vm172_vm1, %v7393_v10  ;;  %206 = vst.msk [vmem:[#allocation2 + $0x108] sm:$0xff] %vm172_vm1, %v7393_v10  ;;  %v7238_v59 = vld [vmem:[%s7446_s27 + $0x8] sm:$0xff]   ;;  %v7239_v60 = vld [vmem:[%s7446_s27 + $0x20] sm:$0xff]  }
  0x23   : > { %207 = vst.msk [vmem:[#allocation2 + $0x110] sm:$0xff] %vm172_vm1, %v7393_v10  ;;  %208 = vst.msk [vmem:[#allocation2 + $0x118] sm:$0xff] %vm172_vm1, %v7393_v10  ;;  %v7240_v61 = vld [vmem:[%s7446_s27 + $0x28] sm:$0xff]   ;;  %v7241_v62 = vld [vmem:[%s7446_s27 + $0x10] sm:$0xff]  }
  0x24   : > { %6657 = vmatmul.mubr.msk.bf16.gmra.mxu0 %vm407_vm0, %v7199_v18  ;;  %6701 = vmatmul.mubr.msk.bf16.gmra.mxu1 %vm407_vm0, %v7200_v19  ;;  %209 = vst.msk [vmem:[#allocation2 + $0x120] sm:$0xff] %vm172_vm1, %v7393_v10  ;;  %210 = vst.msk [vmem:[#allocation2 + $0x128] sm:$0xff] %vm172_vm1, %v7393_v10  ;;  %v7242_v63 = vld [vmem:[%s7446_s27 + $0x30] sm:$0xff]   ;;  %v7243_v0 = vld [vmem:[%s7446_s27 + $0x38] sm:$0xff]  }
  0x25   : > { %6660 = vmatprep.mubr.msk.bf16.mxu0 %vm407_vm0, %v7201_v20  ;;  %6704 = vmatprep.mubr.msk.bf16.mxu1 %vm407_vm0, %v7202_v21  ;;  %211 = vst.msk [vmem:[#allocation2 + $0x130] sm:$0xff] %vm172_vm1, %v7393_v10  ;;  %212 = vst.msk [vmem:[#allocation2 + $0x138] sm:$0xff] %vm172_vm1, %v7393_v10  ;;  %v7244_v1 = vld [vmem:[%s7446_s27 + $0x18] sm:$0xff]   ;;  %v7245_v2 = vld [vmem:[%s7446_s27 + $0x40] sm:$0xff]  }
  0x26   : > { %v7246_v3 = vld [vmem:[%s7446_s27 + $0x48] sm:$0xff]   ;;  %v7247_v4 = vld [vmem:[%s7446_s27 + $0x20] sm:$0xff]   ;;  %v7248_v5 = vld [vmem:[%s7446_s27 + $0x50] sm:$0xff]   ;;  %214 = vst.msk [vmem:[#allocation2 + $0x140] sm:$0xf] %vm213_vm3, %v7393_v10 }
  0x27   : > { %v7249_v6 = vld [vmem:[%s7446_s27 + $0x58] sm:$0xff]   ;;  %v7250_v7 = vld [vmem:[%s7446_s27 + $0x28] sm:$0xff]   ;;  %v7252_v8 = vld [vmem:[%s7446_s27 + $0x60] sm:$0xff]  }
  0x28   : > { %v7253_v9 = vld [vmem:[%s7446_s27 + $0x68] sm:$0xff]   ;;  %v7254_v11 = vld [vmem:[%s7446_s27 + $0x30] sm:$0xff]   ;;  %v7256_v13 = vld [vmem:[%s7446_s27 + $0x78] sm:$0xff]  }
  0x29   : > { %v7255_v12 = vld [vmem:[%s7446_s27 + $0x70] sm:$0xff]   ;;  %v7257_v14 = vld [vmem:[%s7446_s27 + $0x38] sm:$0xff]   ;;  %v7258_v15 = vld [vmem:[%s7446_s27 + $0x80] sm:$0xff]  }
  0x2a   : > { %v7709_v16 = vld [vmem:[%s8852_s1 + $0x88] sm:$0xff]   ;;  %v7260_v18 = vld [vmem:[%s7446_s27 + $0x40] sm:$0xff]   ;;  %v7261_v19 = vld [vmem:[%s7446_s27 + $0x90] sm:$0xff]  }
  0x2b   : > { %v7259_v17 = vld [vmem:[%s7446_s27 + $0x88] sm:$0xff]   ;;  %v7262_v20 = vld [vmem:[%s7446_s27 + $0x98] ss:$0 sps:$4 sm:$0x33]   ;;  %v7288_v24 = vld [vmem:[%s8852_s1 + $0x60] sm:$0xff]  }
  0x2c   : > { %6661 = vmatmul.mubr.msk.bf16.gmra.mxu0 %vm407_vm0, %v7203_v22  ;;  %6705 = vmatmul.mubr.msk.bf16.gmra.mxu1 %vm407_vm0, %v7204_v23  ;;  %v7263_v21 = vld [vmem:[%s7446_s27 + $0x48] sm:$0xff]   ;;  %v7264_v22 = vld [vmem:[%s7446_s27 + $0x50] sm:$0xff]   ;;  %v7265_v23 = vld [vmem:[%s7446_s27] sm:$0xff]  }
  0x2d   : > { %6664 = vmatprep.mubr.msk.bf16.mxu0 %vm407_vm0, %v7205_v25  ;;  %6708 = vmatprep.mubr.msk.bf16.mxu1 %vm407_vm0, %v7206_v26  ;;  %v7268_v25 = vld [vmem:[%s7446_s27 + $0x58] sm:$0xff]   ;;  %v7269_v26 = vld [vmem:[%s7446_s27 + $0x8] sm:$0xff]  }
  0x34   : > { %6665 = vmatmul.mubr.msk.bf16.gmra.mxu0 %vm407_vm0, %v7207_v27  ;;  %6709 = vmatmul.mubr.msk.bf16.gmra.mxu1 %vm407_vm0, %v7208_v28  ;;  %v7270_v27 = vld [vmem:[%s7446_s27 + $0x60] sm:$0xff]   ;;  %v7271_v28 = vld [vmem:[%s7446_s27 + $0x10] sm:$0xff]  }
  0x35   : > { %6668 = vmatprep.mubr.msk.bf16.mxu0 %vm407_vm0, %v7209_v29  ;;  %6712 = vmatprep.mubr.msk.bf16.mxu1 %vm407_vm0, %v7210_v30  ;;  %v7273_v29 = vld [vmem:[%s7446_s27 + $0x18] sm:$0xff]   ;;  %v7272_v30 = vld [vmem:[%s7446_s27 + $0x68] sm:$0xff]  }
  0x3c   : > { %6669 = vmatmul.mubr.msk.bf16.gmra.mxu0 %vm407_vm0, %v7211_v31  ;;  %6713 = vmatmul.mubr.msk.bf16.gmra.mxu1 %vm407_vm0, %v7212_v32  ;;  %v7275_v31 = vld [vmem:[%s7446_s27 + $0x20] sm:$0xff]   ;;  %v7274_v32 = vld [vmem:[%s7446_s27 + $0x70] sm:$0xff]  }
  0x3d   : > { %6672 = vmatprep.mubr.msk.bf16.mxu0 %vm407_vm0, %v7215_v33  ;;  %6716 = vmatprep.mubr.msk.bf16.mxu1 %vm407_vm0, %v7216_v34  ;;  %v221_v33 = vld [vmem:[#allocation2 + $0x23] sm:$0xff] }
  0x44   : > { %6673 = vmatmul.mubr.msk.bf16.gmra.mxu0 %vm407_vm0, %v7217_v35  ;;  %6717 = vmatmul.mubr.msk.bf16.gmra.mxu1 %vm407_vm0, %v7218_v36  ;;  %v219_v35 = vld [vmem:[#allocation2 + $0x13] sm:$0xff] }
  0x45   : > { %6676 = vmatprep.mubr.msk.bf16.mxu0 %vm407_vm0, %v7219_v37  ;;  %6720 = vmatprep.mubr.msk.bf16.mxu1 %vm407_vm0, %v7220_v38 }
  0x4c   : > { %6677 = vmatmul.mubr.msk.bf16.gmra.mxu0 %vm407_vm0, %v7221_v39  ;;  %6721 = vmatmul.mubr.msk.bf16.gmra.mxu1 %vm407_vm0, %v7222_v40  ;;  %v222_v39 = vld [vmem:[#allocation2 + $0x2b] sm:$0xff] }
  0x4d   : > { %6680 = vmatprep.mubr.msk.bf16.mxu0 %vm407_vm0, %v7223_v41  ;;  %6724 = vmatprep.mubr.msk.bf16.mxu1 %vm407_vm0, %v7224_v42 }
  0x54   : > { %6681 = vmatmul.mubr.msk.bf16.gmra.mxu0 %vm407_vm0, %v7225_v43  ;;  %6725 = vmatmul.mubr.msk.bf16.gmra.mxu1 %vm407_vm0, %v7226_v44  ;;  %v220_v43 = vld [vmem:[#allocation2 + $0x1b] sm:$0xff]  ;;  %v7277_v44 = vld [vmem:[%s7446_s27 + $0x28] sm:$0xff]  }
  0x55   : > { %6684 = vmatprep.mubr.msk.bf16.mxu0 %vm407_vm0, %v7227_v45  ;;  %6728 = vmatprep.mubr.msk.bf16.mxu1 %vm407_vm0, %v7228_v46 }
  0x5c   : > { %6685 = vmatmul.mubr.msk.bf16.gmra.mxu0 %vm407_vm0, %v7229_v47  ;;  %6729 = vmatmul.mubr.msk.bf16.gmra.mxu1 %vm407_vm0, %v7230_v48  ;;  %v7276_v47 = vld [vmem:[%s7446_s27 + $0x78] sm:$0xff]  }
  0x5d   : > { %6736 = vmatprep.mubr.msk.bf16.mxu0 %vm407_vm0, %v7231_v49  ;;  %6780 = vmatprep.mubr.msk.bf16.mxu1 %vm7394_vm2, %v7393_v10  ;;  %v225_v49 = vld [vmem:[#allocation2 + $0x43] sm:$0xff] }
  0x64   : > { %6737 = vmatmul.mubr.msk.bf16.vlgmr.msra.gmra.mxu0 %vm407_vm0, %v7232_v50  ;;  %6781 = vmatmul.mubr.msk.bf16.vlgmr.msra.gmra.mxu1 %vm407_vm0, %v7233_v51 }
  0x65   : > { %6865 = vmatpush3.bf16.msra.mxu0 %v7234_v52  ;;  %6953 = vmatpush3.bf16.msra.mxu1 %v7235_v53  ;;  %v223_v53 = vld [vmem:[#allocation2 + $0x33] sm:$0xff] }
  0x66   : > { %6740 = vmatprep.mubr.msk.bf16.mxu0 %vm407_vm0, %v7236_v54  ;;  %6784 = vmatprep.mubr.msk.bf16.mxu1 %vm7394_vm2, %v7393_v10 }
  0x67   : > { %6866 = vmatprep.subr.bf16.mxu0 %v7393_v10  ;;  %6954 = vmatprep.subr.bf16.mxu1 %v7393_v10 }
  0x69   : > { %6867 = vmatpush3.bf16.msra.mxu0 %v7251_v55  ;;  %6955 = vmatpush3.bf16.msra.mxu1 %v7267_v57  ;;  %v226_v57 = vld [vmem:[#allocation2 + $0x4b] sm:$0xff] }
  0x6a   : > { %7040 = vmatprep.subr.bf16.mxu0 %v7643_v56  ;;  %7128 = vmatprep.subr.bf16.mxu1 %v7709_v16 }
  0x6c   : > { %6741 = vmatmul.mubr.msk.bf16.gmra.mxu0 %vm407_vm0, %v7237_v58  ;;  %6785 = vmatmul.mubr.msk.bf16.gmra.mxu1 %vm407_vm0, %v7238_v59 }
  0x6d   : > { %6744 = vmatprep.mubr.msk.bf16.mxu0 %vm407_vm0, %v7239_v60  ;;  %6788 = vmatprep.mubr.msk.bf16.mxu1 %vm7394_vm2, %v7393_v10  ;;  %v224_v60 = vld [vmem:[#allocation2 + $0x3b] sm:$0xff] }
  0x74   : > { %6745 = vmatmul.mubr.msk.bf16.gmra.mxu0 %vm407_vm0, %v7240_v61  ;;  %6789 = vmatmul.mubr.msk.bf16.gmra.mxu1 %vm407_vm0, %v7241_v62 }
  0x75   : > { %6748 = vmatprep.mubr.msk.bf16.mxu0 %vm407_vm0, %v7242_v63  ;;  %6792 = vmatprep.mubr.msk.bf16.mxu1 %vm7394_vm2, %v7393_v10  ;;  %v7279_v63 = vld [vmem:[%s7446_s27 + $0x30] sm:$0xff]  }
  0x7c   : > { %6749 = vmatmul.mubr.msk.bf16.gmra.mxu0 %vm407_vm0, %v7243_v0  ;;  %6793 = vmatmul.mubr.msk.bf16.gmra.mxu1 %vm407_vm0, %v7244_v1  ;;  %v7315_v0 = vld [vmem:[%s8852_s1 + $0x78] sm:$0xff]  }
  0x7d   : > { %6752 = vmatprep.mubr.msk.bf16.mxu0 %vm407_vm0, %v7245_v2  ;;  %6796 = vmatprep.mubr.msk.bf16.mxu1 %vm7394_vm2, %v7393_v10 }
  0x84   : > { %6753 = vmatmul.mubr.msk.bf16.gmra.mxu0 %vm407_vm0, %v7246_v3  ;;  %6797 = vmatmul.mubr.msk.bf16.gmra.mxu1 %vm407_vm0, %v7247_v4  ;;  %v7278_v4 = vld [vmem:[%s7446_s27 + $0x80] sm:$0xff]  }
  0x85   : > { %6756 = vmatprep.mubr.msk.bf16.mxu0 %vm407_vm0, %v7248_v5  ;;  %6800 = vmatprep.mubr.msk.bf16.mxu1 %vm7394_vm2, %v7393_v10 }
  0x8c   : > { %6757 = vmatmul.mubr.msk.bf16.gmra.mxu0 %vm407_vm0, %v7249_v6  ;;  %6801 = vmatmul.mubr.msk.bf16.gmra.mxu1 %vm407_vm0, %v7250_v7  ;;  %v229_v7 = vld [vmem:[#allocation2 + $0x63] sm:$0xff] }
  0x8d   : > { %6760 = vmatprep.mubr.msk.bf16.mxu0 %vm407_vm0, %v7252_v8  ;;  %6804 = vmatprep.mubr.msk.bf16.mxu1 %vm7394_vm2, %v7393_v10 }
  0x94   : > { %6761 = vmatmul.mubr.msk.bf16.gmra.mxu0 %vm407_vm0, %v7253_v9  ;;  %6805 = vmatmul.mubr.msk.bf16.gmra.mxu1 %vm407_vm0, %v7254_v11 }
  0x95   : > { %6764 = vmatprep.mubr.msk.bf16.mxu0 %vm407_vm0, %v7255_v12  ;;  %6808 = vmatprep.mubr.msk.bf16.mxu1 %vm7394_vm2, %v7393_v10 }
  0x9c   : > { %6765 = vmatmul.mubr.msk.bf16.gmra.mxu0 %vm407_vm0, %v7256_v13  ;;  %6809 = vmatmul.mubr.msk.bf16.gmra.mxu1 %vm407_vm0, %v7257_v14 }
  0x9d   : > { %6768 = vmatprep.mubr.msk.bf16.mxu0 %vm407_vm0, %v7258_v15  ;;  %6812 = vmatprep.mubr.msk.bf16.mxu1 %vm7394_vm2, %v7393_v10  ;;  %v227_v15 = vld [vmem:[#allocation2 + $0x53] sm:$0xff] }
  0xa4   : > { %6769 = vmatmul.mubr.msk.bf16.gmra.mxu0 %vm407_vm0, %v7259_v17  ;;  %6813 = vmatmul.mubr.msk.bf16.gmra.mxu1 %vm407_vm0, %v7260_v18 }
  0xa5   : > { %6772 = vmatprep.mubr.msk.bf16.mxu0 %vm407_vm0, %v7261_v19  ;;  %6816 = vmatprep.mubr.msk.bf16.mxu1 %vm7394_vm2, %v7393_v10 }
  0xac   : > { %6773 = vmatmul.mubr.msk.bf16.gmra.mxu0 %vm407_vm0, %v7262_v20  ;;  %6817 = vmatmul.mubr.msk.bf16.gmra.mxu1 %vm407_vm0, %v7263_v21 }
  0xad   : > { %6868 = vmatprep.mubr.msk.bf16.mxu0 %vm7394_vm2, %v7393_v10  ;;  %6820 = vmatprep.mubr.msk.bf16.mxu1 %vm7394_vm2, %v7393_v10 }
  0xb4   : > { %6869 = vmatmul.mubr.msk.bf16.vlgmr.msra.gmra.mxu0 %vm407_vm0, %v7265_v23  ;;  %6821 = vmatmul.mubr.msk.bf16.gmra.mxu1 %vm407_vm0, %v7264_v22  ;;  %v230_v22 = vld [vmem:[#allocation2 + $0x6b] sm:$0xff] }
  0xb5   : > { %7041 = vmatpush3.bf16.msra.mxu0 %v7643_v56  ;;  %6824 = vmatprep.mubr.msk.bf16.mxu1 %vm7394_vm2, %v7393_v10 }
  0xb6   : > { %6872 = vmatprep.mubr.msk.bf16.mxu0 %vm7394_vm2, %v7393_v10  ;;  %7042 = vmatprep.subr.bf16.mxu0 %v7288_v24 }
  0xb9   : > { %7043 = vmatpush3.bf16.msra.mxu0 %v7288_v24 }
  0xba   : > { %7084 = vmatprep.subr.bf16.mxu0 %v7315_v0 }
  0xbc   : > { %6873 = vmatmul.mubr.msk.bf16.gmra.mxu0 %vm407_vm0, %v7269_v26  ;;  %6825 = vmatmul.mubr.msk.bf16.gmra.mxu1 %vm407_vm0, %v7268_v25 }
  0xbd   : > { %6876 = vmatprep.mubr.msk.bf16.mxu0 %vm7394_vm2, %v7393_v10  ;;  %6828 = vmatprep.mubr.msk.bf16.mxu1 %vm7394_vm2, %v7393_v10 }
  0xc4   : > { %6877 = vmatmul.mubr.msk.bf16.gmra.mxu0 %vm407_vm0, %v7271_v28  ;;  %6829 = vmatmul.mubr.msk.bf16.gmra.mxu1 %vm407_vm0, %v7270_v27  ;;  %v228_v27 = vld [vmem:[#allocation2 + $0x5b] sm:$0xff] }
  0xc5   : > { %6880 = vmatprep.mubr.msk.bf16.mxu0 %vm7394_vm2, %v7393_v10  ;;  %6832 = vmatprep.mubr.msk.bf16.mxu1 %vm7394_vm2, %v7393_v10  ;;  %v7281_v28 = vld [vmem:[%s7446_s27 + $0x38] sm:$0xff]  }
  0xcc   : > { %6881 = vmatmul.mubr.msk.bf16.gmra.mxu0 %vm407_vm0, %v7273_v29  ;;  %6833 = vmatmul.mubr.msk.bf16.gmra.mxu1 %vm407_vm0, %v7272_v30 }
  0xcd   : > { %6884 = vmatprep.mubr.msk.bf16.mxu0 %vm7394_vm2, %v7393_v10  ;;  %6836 = vmatprep.mubr.msk.bf16.mxu1 %vm7394_vm2, %v7393_v10 }
  0xd4   : > { %v6650_v34 = vpop.f32.mrf.mxu0  ;;  %6885 = vmatmul.mubr.msk.bf16.gmra.mxu0 %vm407_vm0, %v7275_v31  ;;  %v6694_v37 = vpop.f32.mrf.mxu1  ;;  %6837 = vmatmul.mubr.msk.bf16.gmra.mxu1 %vm407_vm0, %v7274_v32  ;;  %v7280_v32 = vld [vmem:[%s7446_s27 + $0x88] sm:$0xff]  }
  0xd5   : > { %v662_v36 = vadd.f32 %v6650_v34, %v221_v33  ;;  %6888 = vmatprep.mubr.msk.bf16.mxu0 %vm7394_vm2, %v7393_v10  ;;  %6840 = vmatprep.mubr.msk.bf16.mxu1 %vm7394_vm2, %v7393_v10 }
  0xd6   : > { %v502_v38 = vpop.f32.mrf.mxu0  ;;  %v1026_v41 = vpop.f32.mrf.mxu1 }
  0xd7   : > { %701 = vst.msk [vmem:[#allocation2 + $0x23] sm:$0xff] %vm172_vm1, %v662_v36  ;;  %v660_v40 = vadd.f32 %v502_v38, %v219_v35  ;;  %v233_v35 = vld [vmem:[#allocation2 + $0x83] sm:$0xff] }
  0xd8   : > { %v6651_v42 = vpop.f32.mrf.mxu0  ;;  %v6695_v46 = vpop.f32.mrf.mxu1 }
  0xd9   : > { %699 = vst.msk [vmem:[#allocation2 + $0x13] sm:$0xff] %vm172_vm1, %v660_v40  ;;  %v663_v45 = vadd.f32 %v6651_v42, %v222_v39  ;;  %v231_v42 = vld [vmem:[#allocation2 + $0x73] sm:$0xff] }
  0xda   : > { %v505_v48 = vpop.f32.mrf.mxu0  ;;  %v1029_v51 = vpop.f32.mrf.mxu1 }
  0xdb   : > { %702 = vst.msk [vmem:[#allocation2 + $0x2b] sm:$0xff] %vm172_vm1, %v663_v45  ;;  %v661_v50 = vadd.f32 %v505_v48, %v220_v43  ;;  %v234_v48 = vld [vmem:[#allocation2 + $0x8b] sm:$0xff] }
  0xdc   : > { %v6654_v52 = vpop.f32.mrf.mxu0  ;;  %6889 = vmatmul.mubr.msk.bf16.gmra.mxu0 %vm407_vm0, %v7277_v44  ;;  %v7784_v55 = vpop.f32.mrf.mxu1  ;;  %6841 = vmatmul.mubr.msk.bf16.gmra.mxu1 %vm407_vm0, %v7276_v47 }
  0xdd   : > { %700 = vst.msk [vmem:[#allocation2 + $0x1b] sm:$0xff] %vm172_vm1, %v661_v50  ;;  %v666_v54 = vadd.f32 %v6654_v52, %v225_v49  ;;  %6892 = vmatprep.mubr.msk.bf16.mxu0 %vm7394_vm2, %v7393_v10  ;;  %6844 = vmatprep.mubr.msk.bf16.mxu1 %vm7394_vm2, %v7393_v10 }
  0xde   : > { %v518_v56 = vpop.f32.mrf.mxu0  ;;  %v1042_v59 = vpop.f32.mrf.mxu1 }
  0xdf   : > { %705 = vst.msk [vmem:[#allocation2 + $0x43] sm:$0xff] %vm172_vm1, %v666_v54  ;;  %v664_v58 = vadd.f32 %v518_v56, %v223_v53  ;;  %v232_v53 = vld [vmem:[#allocation2 + $0x7b] sm:$0xff] }
  0xe0   : > { %v744_v61 = vld [vmem:[#allocation2 + $0x12] sm:$0xff]  ;;  %v6655_v62 = vpop.f32.mrf.mxu0  ;;  %v6699_v3 = vpop.f32.mrf.mxu1  ;;  %v7283_v54 = vld [vmem:[%s7446_s27 + $0x40] sm:$0xff]  }
  0xe1   : > { %v1184_v1 = vadd.f32 %v1026_v41, %v744_v61  ;;  %703 = vst.msk [vmem:[#allocation2 + $0x33] sm:$0xff] %vm172_vm1, %v664_v58  ;;  %v667_v2 = vadd.f32 %v6655_v62, %v226_v57  ;;  %v7282_v58 = vld [vmem:[%s7446_s27 + $0x90] sm:$0xff]   ;;  %v237_v61 = vld [vmem:[#allocation2 + $0xa3] sm:$0xff] }
  0xe2   : > { %v747_v5 = vld [vmem:[#allocation2 + $0x2a] sm:$0xff]  ;;  %v521_v6 = vpop.f32.mrf.mxu0  ;;  %v1045_v11 = vpop.f32.mrf.mxu1 }
  0xe3   : > { %1223 = vst.msk [vmem:[#allocation2 + $0x12] sm:$0xff] %vm172_vm1, %v1184_v1  ;;  %v1187_v8 = vadd.f32 %v6695_v46, %v747_v5  ;;  %706 = vst.msk [vmem:[#allocation2 + $0x4b] sm:$0xff] %vm172_vm1, %v667_v2  ;;  %v665_v9 = vadd.f32 %v521_v6, %v224_v60 }
  0xe4   : > { %v746_v12 = vld [vmem:[#allocation2 + $0x22] sm:$0xff]  ;;  %v745_v13 = vld [vmem:[#allocation2 + $0x1a] sm:$0xff]  ;;  %v6658_v14 = vpop.f32.mrf.mxu0  ;;  %6893 = vmatmul.mubr.msk.bf16.gmra.mxu0 %vm407_vm0, %v7279_v63  ;;  %v7803_v20 = vpop.f32.mrf.mxu1  ;;  %6845 = vmatmul.mubr.msk.bf16.gmra.mxu1 %vm407_vm0, %v7278_v4 }
  0xe5   : > { %1226 = vst.msk [vmem:[#allocation2 + $0x2a] sm:$0xff] %vm172_vm1, %v1187_v8  ;;  %v1186_v17 = vadd.f32 %v6694_v37, %v746_v12  ;;  %v1185_v18 = vadd.f32 %v1029_v51, %v745_v13  ;;  %704 = vst.msk [vmem:[#allocation2 + $0x3b] sm:$0xff] %vm172_vm1, %v665_v9  ;;  %v670_v19 = vadd.f32 %v6658_v14, %v229_v7  ;;  %6896 = vmatprep.mubr.msk.bf16.mxu0 %vm7394_vm2, %v7393_v10  ;;  %v235_v4 = vld [vmem:[#allocation2 + $0x93] sm:$0xff] }
  0xe6   : > { %v534_v21 = vpop.f32.mrf.mxu0  ;;  %6848 = vmatprep.mubr.msk.bf16.mxu1 %vm7394_vm2, %v7393_v10  ;;  %v1058_v24 = vpop.f32.mrf.mxu1 }
  0xe7   : > { %1225 = vst.msk [vmem:[#allocation2 + $0x22] sm:$0xff] %vm172_vm1, %v1186_v17  ;;  %1224 = vst.msk [vmem:[#allocation2 + $0x1a] sm:$0xff] %vm172_vm1, %v1185_v18  ;;  %v668_v23 = vadd.f32 %v534_v21, %v227_v15  ;;  %v236_v17 = vld [vmem:[#allocation2 + $0x9b] sm:$0xff]  ;;  %v7285_v18 = vld [vmem:[%s7446_s27 + $0x48] sm:$0xff]  }
  0xe8   : > { %709 = vst.msk [vmem:[#allocation2 + $0x63] sm:$0xff] %vm172_vm1, %v670_v19  ;;  %v748_v25 = vld [vmem:[#allocation2 + $0x32] sm:$0xff]  ;;  %v6659_v26 = vpop.f32.mrf.mxu0  ;;  %v6703_v31 = vpop.f32.mrf.mxu1 }
  0xe9   : > { %v1188_v29 = vadd.f32 %v1042_v59, %v748_v25  ;;  %707 = vst.msk [vmem:[#allocation2 + $0x53] sm:$0xff] %vm172_vm1, %v668_v23  ;;  %v671_v30 = vadd.f32 %v6659_v26, %v230_v22  ;;  %v7284_v22 = vld [vmem:[%s7446_s27 + $0x98] sm:$0xff]   ;;  %v241_v25 = vld [vmem:[#allocation2 + $0xc3] sm:$0xff] }
  0xea   : > { %v751_v33 = vld [vmem:[#allocation2 + $0x4a] sm:$0xff]  ;;  %v537_v34 = vpop.f32.mrf.mxu0  ;;  %v1061_v38 = vpop.f32.mrf.mxu1  ;;  %v7855_v26 = vld [vmem:[%s7446_s27] sm:$0xff]  }
  0xeb   : > { %1227 = vst.msk [vmem:[#allocation2 + $0x32] sm:$0xff] %vm172_vm1, %v1188_v29  ;;  %v1191_v36 = vadd.f32 %v6699_v3, %v751_v33  ;;  %710 = vst.msk [vmem:[#allocation2 + $0x6b] sm:$0xff] %vm172_vm1, %v671_v30  ;;  %v669_v37 = vadd.f32 %v537_v34, %v228_v27  ;;  %v239_v33 = vld [vmem:[#allocation2 + $0xb3] sm:$0xff] }
  0xec   : > { %v750_v39 = vld [vmem:[#allocation2 + $0x42] sm:$0xff]  ;;  %v749_v40 = vld [vmem:[#allocation2 + $0x3a] sm:$0xff]  ;;  %v6662_v41 = vpop.f32.mrf.mxu0  ;;  %6897 = vmatmul.mubr.msk.bf16.gmra.mxu0 %vm407_vm0, %v7281_v28  ;;  %v7822_v46 = vpop.f32.mrf.mxu1  ;;  %6849 = vmatmul.mubr.msk.bf16.gmra.mxu1 %vm407_vm0, %v7280_v32 }
  0xed   : > { %1230 = vst.msk [vmem:[#allocation2 + $0x4a] sm:$0xff] %vm172_vm1, %v1191_v36  ;;  %v1190_v43 = vadd.f32 %v7784_v55, %v750_v39  ;;  %v1189_v44 = vadd.f32 %v1045_v11, %v749_v40  ;;  %708 = vst.msk [vmem:[#allocation2 + $0x5b] sm:$0xff] %vm172_vm1, %v669_v37  ;;  %v674_v45 = vadd.f32 %v6662_v41, %v233_v35  ;;  %6900 = vmatprep.mubr.msk.bf16.mxu0 %vm7394_vm2, %v7393_v10  ;;  %v238_v11 = vld [vmem:[#allocation2 + $0xab] sm:$0xff] }
  0xee   : > { %v550_v47 = vpop.f32.mrf.mxu0  ;;  %6852 = vmatprep.mubr.msk.bf16.mxu1 %vm7394_vm2, %v7393_v10  ;;  %v1074_v50 = vpop.f32.mrf.mxu1  ;;  %v242_v39 = vld [vmem:[#allocation2 + $0xcb] sm:$0xff]  ;;  %v3075_v41 = vshll.u32 %v7855_v26, 16 }
  0xef   : > { %1229 = vst.msk [vmem:[#allocation2 + $0x42] sm:$0xff] %vm172_vm1, %v1190_v43  ;;  %1228 = vst.msk [vmem:[#allocation2 + $0x3a] sm:$0xff] %vm172_vm1, %v1189_v44  ;;  %v672_v49 = vadd.f32 %v550_v47, %v231_v42  ;;  %v7871_v40 = vld [vmem:[%s7446_s27 + $0x8] sm:$0xff]   ;;  %v7287_v47 = vld [vmem:[%s7446_s27 + $0x50] sm:$0xff]  }
  0xf0   : > { %713 = vst.msk [vmem:[#allocation2 + $0x83] sm:$0xff] %vm172_vm1, %v674_v45  ;;  %v752_v51 = vld [vmem:[#allocation2 + $0x52] sm:$0xff]  ;;  %v6663_v52 = vpop.f32.mrf.mxu0  ;;  %v6707_v57 = vpop.f32.mrf.mxu1 }
  0xf1   : > { %v1192_v55 = vadd.f32 %v1058_v24, %v752_v51  ;;  %711 = vst.msk [vmem:[#allocation2 + $0x73] sm:$0xff] %vm172_vm1, %v672_v49  ;;  %v675_v56 = vadd.f32 %v6663_v52, %v234_v48  ;;  %v7286_v51 = vld [vmem:[%s7446_s27 + $0xa0] ss:$0 sps:$4 sm:$0x33]  }
  0xf2   : > { %v755_v59 = vld [vmem:[#allocation2 + $0x6a] sm:$0xff]  ;;  %v553_v60 = vpop.f32.mrf.mxu0  ;;  %v1077_v0 = vpop.f32.mrf.mxu1 }
  0xf3   : > { %1231 = vst.msk [vmem:[#allocation2 + $0x52] sm:$0xff] %vm172_vm1, %v1192_v55  ;;  %v1195_v62 = vadd.f32 %v6703_v31, %v755_v59  ;;  %714 = vst.msk [vmem:[#allocation2 + $0x8b] sm:$0xff] %vm172_vm1, %v675_v56  ;;  %v673_v63 = vadd.f32 %v553_v60, %v232_v53  ;;  %v3073_v55 = vshrl.u32 %v7855_v26, 16  ;;  %v3077_v56 = vrot.slane %v3075_v41, 1  ;;  %v250_v41 = vld [vmem:[#allocation2 + $0x10b] sm:$0xff] }
  0xf4   : > { %v754_v1 = vld [vmem:[#allocation2 + $0x62] sm:$0xff]  ;;  %v753_v2 = vld [vmem:[#allocation2 + $0x5a] sm:$0xff]  ;;  %v6666_v3 = vpop.f32.mrf.mxu0  ;;  %6901 = vmatmul.mubr.msk.bf16.gmra.mxu0 %vm407_vm0, %v7283_v54  ;;  %v7841_v8 = vpop.f32.mrf.mxu1  ;;  %6853 = vmatmul.mubr.msk.bf16.gmra.mxu1 %vm407_vm0, %v7282_v58 }
  0xf5   : > { %1234 = vst.msk [vmem:[#allocation2 + $0x6a] sm:$0xff] %vm172_vm1, %v1195_v62  ;;  %v1194_v5 = vadd.f32 %v7803_v20, %v754_v1  ;;  %v1193_v6 = vadd.f32 %v1061_v38, %v753_v2  ;;  %712 = vst.msk [vmem:[#allocation2 + $0x7b] sm:$0xff] %vm172_vm1, %v673_v63  ;;  %v678_v7 = vadd.f32 %v6666_v3, %v237_v61  ;;  %6904 = vmatprep.mubr.msk.bf16.mxu0 %vm7394_vm2, %v7393_v10  ;;  %v245_v54 = vld [vmem:[#allocation2 + $0xe3] sm:$0xff] }
  0xf6   : > { %v566_v9 = vpop.f32.mrf.mxu0  ;;  %6856 = vmatprep.mubr.msk.bf16.mxu1 %vm7394_vm2, %v7393_v10  ;;  %v1090_v13 = vpop.f32.mrf.mxu1 }
  0xf7   : > { %1233 = vst.msk [vmem:[#allocation2 + $0x62] sm:$0xff] %vm172_vm1, %v1194_v5  ;;  %1232 = vst.msk [vmem:[#allocation2 + $0x5a] sm:$0xff] %vm172_vm1, %v1193_v6  ;;  %v676_v12 = vadd.f32 %v566_v9, %v235_v4  ;;  %v246_v6 = vld [vmem:[#allocation2 + $0xeb] sm:$0xff] }
  0xf8   : > { %717 = vst.msk [vmem:[#allocation2 + $0xa3] sm:$0xff] %vm172_vm1, %v678_v7  ;;  %v756_v14 = vld [vmem:[#allocation2 + $0x72] sm:$0xff]  ;;  %v6667_v15 = vpop.f32.mrf.mxu0  ;;  %v6711_v21 = vpop.f32.mrf.mxu1  ;;  %v3078_v7 = vor.u32 %v3077_v56, %v3073_v55 }
  0xf9   : > { %v1196_v19 = vadd.f32 %v1074_v50, %v756_v14  ;;  %715 = vst.msk [vmem:[#allocation2 + $0x93] sm:$0xff] %vm172_vm1, %v676_v12  ;;  %v679_v20 = vadd.f32 %v6667_v15, %v238_v11  ;;  %v244_v15 = vld [vmem:[#allocation2 + $0xdb] sm:$0xff] }
  0xfa   : > { %v759_v23 = vld [vmem:[#allocation2 + $0x8a] sm:$0xff]  ;;  %v569_v24 = vpop.f32.mrf.mxu0  ;;  %v1093_v29 = vpop.f32.mrf.mxu1 }
  0xfb   : > { %1235 = vst.msk [vmem:[#allocation2 + $0x72] sm:$0xff] %vm172_vm1, %v1196_v19  ;;  %v1199_v27 = vadd.f32 %v6707_v57, %v759_v23  ;;  %718 = vst.msk [vmem:[#allocation2 + $0xab] sm:$0xff] %vm172_vm1, %v679_v20  ;;  %v677_v28 = vadd.f32 %v569_v24, %v236_v17  ;;  %v3080_v57 = vshll.u32 %v7871_v40, 16  ;;  %v7289_v17 = vld [vmem:[%s7446_s27 + $0x58] sm:$0xff]   ;;  %v249_v23 = vld [vmem:[#allocation2 + $0x103] sm:$0xff] }
  0xfc   : > { %v758_v30 = vld [vmem:[#allocation2 + $0x82] sm:$0xff]  ;;  %v757_v31 = vld [vmem:[#allocation2 + $0x7a] sm:$0xff]  ;;  %v6670_v32 = vpop.f32.mrf.mxu0  ;;  %6905 = vmatmul.mubr.msk.bf16.gmra.mxu0 %vm407_vm0, %v7285_v18  ;;  %v7863_v37 = vpop.f32.mrf.mxu1  ;;  %6857 = vmatmul.mubr.msk.bf16.gmra.mxu1 %vm407_vm0, %v7284_v22 }
  0xfd   : > { %1238 = vst.msk [vmem:[#allocation2 + $0x8a] sm:$0xff] %vm172_vm1, %v1199_v27  ;;  %v1198_v34 = vadd.f32 %v7822_v46, %v758_v30  ;;  %v1197_v35 = vadd.f32 %v1077_v0, %v757_v31  ;;  %716 = vst.msk [vmem:[#allocation2 + $0x9b] sm:$0xff] %vm172_vm1, %v677_v28  ;;  %v682_v36 = vadd.f32 %v6670_v32, %v241_v25  ;;  %6908 = vmatprep.mubr.msk.bf16.mxu0 %vm7394_vm2, %v7393_v10  ;;  %v240_v46 = vld [vmem:[#allocation2 + $0xbb] sm:$0xff]  ;;  %v243_v0 = vld [vmem:[#allocation2 + $0xd3] sm:$0xff] }
  0xfe   : > { %v582_v38 = vpop.f32.mrf.mxu0  ;;  %6860 = vmatprep.mubr.msk.bf16.mxu1 %vm7394_vm2, %v7393_v10  ;;  %v1106_v43 = vpop.f32.mrf.mxu1  ;;  %v3082_v9 = vrot.slane %v3080_v57, 1  ;;  %v3084_v25 = vshrl.u32 %v7871_v40, 16  ;;  %v7316_v30 = vld [vmem:[%s8852_s1 + $0x80] sm:$0xff]  }
  0xff   : > { %1237 = vst.msk [vmem:[#allocation2 + $0x82] sm:$0xff] %vm172_vm1, %v1198_v34  ;;  %1236 = vst.msk [vmem:[#allocation2 + $0x7a] sm:$0xff] %vm172_vm1, %v1197_v35  ;;  %v680_v42 = vadd.f32 %v582_v38, %v239_v33  ;;  %v247_v34 = vld [vmem:[#allocation2 + $0xf3] sm:$0xff] }
 0x100   : > { %721 = vst.msk [vmem:[#allocation2 + $0xc3] sm:$0xff] %vm172_vm1, %v682_v36  ;;  %v760_v44 = vld [vmem:[#allocation2 + $0x92] sm:$0xff]  ;;  %v6671_v45 = vpop.f32.mrf.mxu0  ;;  %v6715_v50 = vpop.f32.mrf.mxu1  ;;  %v3083_v24 = vsel %vm3071_vm4, %v3078_v7, %v3082_v9 }
 0x101   : > { %v1200_v48 = vadd.f32 %v1090_v13, %v760_v44  ;;  %719 = vst.msk [vmem:[#allocation2 + $0xb3] sm:$0xff] %vm172_vm1, %v680_v42  ;;  %v683_v49 = vadd.f32 %v6671_v45, %v242_v39  ;;  %v254_v7 = vld [vmem:[#allocation2 + $0x12b] sm:$0xff] }
 0x102   : > { %v763_v52 = vld [vmem:[#allocation2 + $0xaa] sm:$0xff]  ;;  %v585_v53 = vpop.f32.mrf.mxu0  ;;  %v1109_v60 = vpop.f32.mrf.mxu1 }
 0x103   : > { %1239 = vst.msk [vmem:[#allocation2 + $0x92] sm:$0xff] %vm172_vm1, %v1200_v48  ;;  %v1203_v58 = vadd.f32 %v6711_v21, %v763_v52  ;;  %722 = vst.msk [vmem:[#allocation2 + $0xcb] sm:$0xff] %vm172_vm1, %v683_v49  ;;  %v681_v59 = vadd.f32 %v585_v53, %v240_v46  ;;  %v7293_v48 = vld [vmem:[%s7446_s27 + $0x60] sm:$0xff]  }
 0x104   : > { %v762_v61 = vld [vmem:[#allocation2 + $0xa2] sm:$0xff]  ;;  %v761_v62 = vld [vmem:[#allocation2 + $0x9a] sm:$0xff]  ;;  %v6674_v63 = vpop.f32.mrf.mxu0  ;;  %6909 = vmatmul.mubr.msk.bf16.gmra.mxu0 %vm407_vm0, %v7287_v47  ;;  %v7888_v4 = vpop.f32.mrf.mxu1  ;;  %6861 = vmatmul.mubr.msk.bf16.gmra.mxu1 %vm407_vm0, %v7286_v51 }
 0x105   : > { %1242 = vst.msk [vmem:[#allocation2 + $0xaa] sm:$0xff] %vm172_vm1, %v1203_v58  ;;  %v1202_v1 = vadd.f32 %v7841_v8, %v762_v61  ;;  %v1201_v2 = vadd.f32 %v1093_v29, %v761_v62  ;;  %720 = vst.msk [vmem:[#allocation2 + $0xbb] sm:$0xff] %vm172_vm1, %v681_v59  ;;  %v686_v3 = vadd.f32 %v6674_v63, %v245_v54  ;;  %6912 = vmatprep.mubr.msk.bf16.mxu0 %vm7394_vm2, %v7393_v10  ;;  %v7896_v8 = vld [vmem:[%s7446_s27 + $0x10] sm:$0xff]   ;;  %v253_v54 = vld [vmem:[#allocation2 + $0x123] sm:$0xff] }
 0x106   : > { %v598_v5 = vpop.f32.mrf.mxu0  ;;  %6956 = vmatprep.mubr.msk.bf16.mxu1 %vm7394_vm2, %v7393_v10  ;;  %v1122_v12 = vpop.f32.mrf.mxu1  ;;  %v3088_v26 = vshll.u32 %v7896_v8, 16  ;;  %v3092_v56 = vshrl.u32 %v7896_v8, 16 }
 0x107   : > { %1241 = vst.msk [vmem:[#allocation2 + $0xa2] sm:$0xff] %vm172_vm1, %v1202_v1  ;;  %1240 = vst.msk [vmem:[#allocation2 + $0x9a] sm:$0xff] %vm172_vm1, %v1201_v2  ;;  %v684_v11 = vadd.f32 %v598_v5, %v243_v0  ;;  %v251_v0 = vld [vmem:[#allocation2 + $0x113] sm:$0xff] }
 0x108   : > { %725 = vst.msk [vmem:[#allocation2 + $0xe3] sm:$0xff] %vm172_vm1, %v686_v3  ;;  %v764_v13 = vld [vmem:[#allocation2 + $0xb2] sm:$0xff]  ;;  %v6675_v14 = vpop.f32.mrf.mxu0  ;;  %v6719_v20 = vpop.f32.mrf.mxu1  ;;  %v3090_v42 = vrot.slane %v3088_v26, 1 }
 0x109   : > { %v1204_v18 = vadd.f32 %v1106_v43, %v764_v13  ;;  %723 = vst.msk [vmem:[#allocation2 + $0xd3] sm:$0xff] %vm172_vm1, %v684_v11  ;;  %v687_v19 = vadd.f32 %v6675_v14, %v246_v6  ;;  %v7924_v43 = vld [vmem:[%s7446_s27 + $0x18] sm:$0xff]  }
 0x10a   : > { %v767_v21 = vld [vmem:[#allocation2 + $0xca] sm:$0xff]  ;;  %v601_v22 = vpop.f32.mrf.mxu0  ;;  %v1125_v29 = vpop.f32.mrf.mxu1  ;;  %v3096_v57 = vshll.u32 %v7924_v43, 16 }
 0x10b   : > { %1243 = vst.msk [vmem:[#allocation2 + $0xb2] sm:$0xff] %vm172_vm1, %v1204_v18  ;;  %v1207_v27 = vadd.f32 %v6715_v50, %v767_v21  ;;  %726 = vst.msk [vmem:[#allocation2 + $0xeb] sm:$0xff] %vm172_vm1, %v687_v19  ;;  %v685_v28 = vadd.f32 %v601_v22, %v244_v15  ;;  %v252_v15 = vld [vmem:[#allocation2 + $0x11b] sm:$0xff] }
 0x10c   : > { %v766_v31 = vld [vmem:[#allocation2 + $0xc2] sm:$0xff]  ;;  %v765_v32 = vld [vmem:[#allocation2 + $0xba] sm:$0xff]  ;;  %v6678_v33 = vpop.f32.mrf.mxu0  ;;  %6913 = vmatmul.mubr.msk.bf16.gmra.mxu0 %vm407_vm0, %v7289_v17  ;;  %v7915_v39 = vpop.f32.mrf.mxu1  ;;  %6957 = vmatmul.mubr.msk.bf16.vlgmr.msra.gmra.mxu1 %vm407_vm0, %v3083_v24  ;;  %v3098_v8 = vrot.slane %v3096_v57, 1 }
 0x10d   : > { %1246 = vst.msk [vmem:[#allocation2 + $0xca] sm:$0xff] %vm172_vm1, %v1207_v27  ;;  %v1206_v35 = vadd.f32 %v7863_v37, %v766_v31  ;;  %v1205_v36 = vadd.f32 %v1109_v60, %v765_v32  ;;  %724 = vst.msk [vmem:[#allocation2 + $0xdb] sm:$0xff] %vm172_vm1, %v685_v28  ;;  %v690_v38 = vadd.f32 %v6678_v33, %v249_v23  ;;  %6916 = vmatprep.mubr.msk.bf16.mxu0 %vm7394_vm2, %v7393_v10  ;;  %v7295_v17 = vld [vmem:[%s7446_s27 + $0x68] sm:$0xff]   ;;  %v257_v23 = vld [vmem:[#allocation2 + $0x143] sm:$0x1] }
 0x10e   : > { %v614_v40 = vpop.f32.mrf.mxu0  ;;  %7129 = vmatpush3.bf16.msra.mxu1 %v7709_v16  ;;  %6960 = vmatprep.mubr.msk.bf16.mxu1 %vm7394_vm2, %v7393_v10  ;;  %v3086_v37 = vor.u32 %v3084_v25, %v3082_v9  ;;  %v1138_v45 = vpop.f32.mrf.mxu1  ;;  %v248_v16 = vld [vmem:[#allocation2 + $0xfb] sm:$0xff]  ;;  %v3094_v9 = vor.u32 %v3092_v56, %v3090_v42  ;;  %v3100_v25 = vshrl.u32 %v7924_v43, 16  ;;  %v255_v33 = vld [vmem:[#allocation2 + $0x133] sm:$0xff] }
 0x10f   : > { %1245 = vst.msk [vmem:[#allocation2 + $0xc2] sm:$0xff] %vm172_vm1, %v1206_v35  ;;  %1244 = vst.msk [vmem:[#allocation2 + $0xba] sm:$0xff] %vm172_vm1, %v1205_v36  ;;  %v688_v44 = vadd.f32 %v614_v40, %v247_v34  ;;  %7130 = vmatprep.subr.bf16.mxu1 %v7316_v30  ;;  %v1792_v57 = vld [vmem:[#allocation2 + $0x1] sm:$0xff] }
 0x110   : > { %729 = vst.msk [vmem:[#allocation2 + $0x103] sm:$0xff] %vm172_vm1, %v690_v38  ;;  %v768_v46 = vld [vmem:[#allocation2 + $0xd2] sm:$0xff]  ;;  %v6679_v47 = vpop.f32.mrf.mxu0  ;;  %v6723_v51 = vpop.f32.mrf.mxu1  ;;  %v3091_v55 = vsel %vm3071_vm4, %v3086_v37, %v3090_v42  ;;  %v3099_v24 = vsel %vm3071_vm4, %v3094_v9, %v3098_v8  ;;  %v7972_v42 = vld [vmem:[%s7446_s27 + $0x28] sm:$0xff]  }
 0x111   : > { %v1208_v49 = vadd.f32 %v1122_v12, %v768_v46  ;;  %727 = vst.msk [vmem:[#allocation2 + $0xf3] sm:$0xff] %vm172_vm1, %v688_v44  ;;  %v691_v50 = vadd.f32 %v6679_v47, %v250_v41  ;;  %v3102_v41 = vor.u32 %v3100_v25, %v3098_v8  ;;  %v256_v46 = vld [vmem:[#allocation2 + $0x13b] sm:$0xff]  ;;  %v7297_v47 = vld [vmem:[%s7446_s27 + $0x70] sm:$0xff]  }
 0x112   : > { %v771_v52 = vld [vmem:[#allocation2 + $0xea] sm:$0xff]  ;;  %v617_v53 = vpop.f32.mrf.mxu0  ;;  %7131 = vmatpush3.bf16.msra.mxu1 %v7316_v30  ;;  %v1141_v60 = vpop.f32.mrf.mxu1 }
 0x113   : > { %1247 = vst.msk [vmem:[#allocation2 + $0xd2] sm:$0xff] %vm172_vm1, %v1208_v49  ;;  %v1211_v58 = vadd.f32 %v6719_v20, %v771_v52  ;;  %730 = vst.msk [vmem:[#allocation2 + $0x10b] sm:$0xff] %vm172_vm1, %v691_v50  ;;  %v689_v59 = vadd.f32 %v617_v53, %v248_v16  ;;  %v3112_v53 = vshll.u32 %v7972_v42, 16 }
 0x114   : > { %v770_v61 = vld [vmem:[#allocation2 + $0xe2] sm:$0xff]  ;;  %v769_v62 = vld [vmem:[#allocation2 + $0xda] sm:$0xff]  ;;  %v6682_v63 = vpop.f32.mrf.mxu0  ;;  %6917 = vmatmul.mubr.msk.bf16.gmra.mxu0 %vm407_vm0, %v7293_v48  ;;  %v7940_v5 = vpop.f32.mrf.mxu1  ;;  %6961 = vmatmul.mubr.msk.bf16.gmra.mxu1 %vm407_vm0, %v3091_v55 }
 0x115   : > { %1250 = vst.msk [vmem:[#allocation2 + $0xea] sm:$0xff] %vm172_vm1, %v1211_v58  ;;  %v1210_v1 = vadd.f32 %v7888_v4, %v770_v61  ;;  %v1209_v2 = vadd.f32 %v1125_v29, %v769_v62  ;;  %728 = vst.msk [vmem:[#allocation2 + $0xfb] sm:$0xff] %vm172_vm1, %v689_v59  ;;  %v694_v3 = vadd.f32 %v6682_v63, %v253_v54  ;;  %6920 = vmatprep.mubr.msk.bf16.mxu0 %vm7394_vm2, %v7393_v10  ;;  %v7948_v4 = vld [vmem:[%s7446_s27 + $0x20] sm:$0xff]  }
 0x116   : > { %v630_v6 = vpop.f32.mrf.mxu0  ;;  %6964 = vmatprep.mubr.msk.bf16.mxu1 %vm7394_vm2, %v7393_v10  ;;  %v1154_v12 = vpop.f32.mrf.mxu1  ;;  %v3104_v26 = vshll.u32 %v7948_v4, 16  ;;  %v3108_v52 = vshrl.u32 %v7948_v4, 16  ;;  %v3114_v9 = vrot.slane %v3112_v53, 1 }
 0x117   : > { %1249 = vst.msk [vmem:[#allocation2 + $0xe2] sm:$0xff] %vm172_vm1, %v1210_v1  ;;  %1248 = vst.msk [vmem:[#allocation2 + $0xda] sm:$0xff] %vm172_vm1, %v1209_v2  ;;  %v692_v11 = vadd.f32 %v630_v6, %v251_v0 }
 0x118   : > { %733 = vst.msk [vmem:[#allocation2 + $0x123] sm:$0xff] %vm172_vm1, %v694_v3  ;;  %v772_v13 = vld [vmem:[#allocation2 + $0xf2] sm:$0xff]  ;;  %v6683_v14 = vpop.f32.mrf.mxu0  ;;  %v6727_v20 = vpop.f32.mrf.mxu1  ;;  %v3106_v37 = vrot.slane %v3104_v26, 1 }
 0x119   : > { %v1212_v18 = vadd.f32 %v1138_v45, %v772_v13  ;;  %731 = vst.msk [vmem:[#allocation2 + $0x113] sm:$0xff] %vm172_vm1, %v692_v11  ;;  %v695_v19 = vadd.f32 %v6683_v14, %v254_v7  ;;  %v1268_v3 = vld [vmem:[#allocation2 + $0x11] sm:$0xff]  ;;  %v1793_v11 = vld [vmem:[#allocation2 + $0x9] sm:$0xff] }
 0x11a   : > { %v775_v21 = vld [vmem:[#allocation2 + $0x10a] sm:$0xff]  ;;  %v633_v22 = vpop.f32.mrf.mxu0  ;;  %v1157_v29 = vpop.f32.mrf.mxu1  ;;  %v3110_v7 = vor.u32 %v3108_v52, %v3106_v37 }
 0x11b   : > { %1251 = vst.msk [vmem:[#allocation2 + $0xf2] sm:$0xff] %vm172_vm1, %v1212_v18  ;;  %v1215_v27 = vadd.f32 %v6723_v51, %v775_v21  ;;  %734 = vst.msk [vmem:[#allocation2 + $0x12b] sm:$0xff] %vm172_vm1, %v695_v19  ;;  %v693_v28 = vadd.f32 %v633_v22, %v252_v15  ;;  %v3107_v51 = vsel %vm3071_vm4, %v3102_v41, %v3106_v37  ;;  %v1271_v13 = vld [vmem:[#allocation2 + $0x29] sm:$0xff]  ;;  %v7299_v15 = vld [vmem:[%s7446_s27 + $0x78] sm:$0xff]  }
 0x11c   : > { %v774_v30 = vld [vmem:[#allocation2 + $0x102] sm:$0xff]  ;;  %v773_v31 = vld [vmem:[#allocation2 + $0xfa] sm:$0xff]  ;;  %v6686_v32 = vpop.f32.mrf.mxu0  ;;  %6921 = vmatmul.mubr.msk.bf16.gmra.mxu0 %vm407_vm0, %v7295_v17  ;;  %v7964_v38 = vpop.f32.mrf.mxu1  ;;  %6965 = vmatmul.mubr.msk.bf16.gmra.mxu1 %vm407_vm0, %v3099_v24  ;;  %v3116_v24 = vshrl.u32 %v7972_v42, 16 }
 0x11d   : > { %1254 = vst.msk [vmem:[#allocation2 + $0x10a] sm:$0xff] %vm172_vm1, %v1215_v27  ;;  %v1214_v34 = vadd.f32 %v7915_v39, %v774_v30  ;;  %v1213_v35 = vadd.f32 %v1141_v60, %v773_v31  ;;  %732 = vst.msk [vmem:[#allocation2 + $0x11b] sm:$0xff] %vm172_vm1, %v693_v28  ;;  %v698_v36 = vadd.f32 %v6686_v32, %v257_v23  ;;  %6924 = vmatprep.mubr.msk.bf16.mxu0 %vm7394_vm2, %v7393_v10  ;;  %v1270_v60 = vld [vmem:[#allocation2 + $0x21] sm:$0xff]  ;;  %v1269_v21 = vld [vmem:[#allocation2 + $0x19] sm:$0xff] }
 0x11e   : > { %v646_v40 = vpop.f32.mrf.mxu0  ;;  %6968 = vmatprep.mubr.msk.bf16.mxu1 %vm7394_vm2, %v7393_v10  ;;  %v1170_v43 = vpop.f32.mrf.mxu1  ;;  %v3115_v23 = vsel %vm3071_vm4, %v3110_v7, %v3114_v9  ;;  %v1274_v30 = vld [vmem:[#allocation2 + $0x41] sm:$0xff]  ;;  %v3118_v41 = vor.u32 %v3116_v24, %v3114_v9  ;;  %v8016_v42 = vld [vmem:[%s7446_s27 + $0x38] sm:$0xff]  }
 0x11f   : > { %1253 = vst.msk [vmem:[#allocation2 + $0x102] sm:$0xff] %vm172_vm1, %v1214_v34  ;;  %1252 = vst.msk [vmem:[#allocation2 + $0xfa] sm:$0xff] %vm172_vm1, %v1213_v35  ;;  %v696_v39 = vadd.f32 %v646_v40, %v255_v33  ;;  %v3128_v53 = vshll.u32 %v8016_v42, 16 }
 0x120   : > { %738 = vst.msk [vmem:[#allocation2 + $0x143] sm:$0x1] %vm737_vm5, %v698_v36  ;;  %v776_v44 = vld [vmem:[#allocation2 + $0x112] sm:$0xff]  ;;  %v6687_v45 = vpop.f32.mrf.mxu0  ;;  %v6731_v48 = vpop.f32.mrf.mxu1 }
 0x121   : > { %v1216_v16 = vadd.f32 %v1154_v12, %v776_v44  ;;  %735 = vst.msk [vmem:[#allocation2 + $0x133] sm:$0xff] %vm172_vm1, %v696_v39  ;;  %v1272_v36 = vld [vmem:[#allocation2 + $0x31] sm:$0xff]  ;;  %v1275_v44 = vld [vmem:[#allocation2 + $0x49] sm:$0xff] }
 0x122   : > { %v779_v49 = vld [vmem:[#allocation2 + $0x12a] sm:$0xff]  ;;  %v649_v50 = vpop.f32.mrf.mxu0  ;;  %v1173_v56 = vpop.f32.mrf.mxu1 }
 0x123   : > { %1255 = vst.msk [vmem:[#allocation2 + $0x112] sm:$0xff] %vm172_vm1, %v1216_v16  ;;  %v1219_v54 = vadd.f32 %v6727_v20, %v779_v49  ;;  %v697_v55 = vadd.f32 %v649_v50, %v256_v46  ;;  %v7301_v46 = vld [vmem:[%s7446_s27 + $0x80] sm:$0xff]  }
 0x124   : > { %v778_v58 = vld [vmem:[#allocation2 + $0x122] sm:$0xff]  ;;  %v777_v59 = vld [vmem:[#allocation2 + $0x11a] sm:$0xff]  ;;  %v6738_v61 = vpop.f32.mrf.mxu0  ;;  %6925 = vmatmul.mubr.msk.bf16.gmra.mxu0 %vm407_vm0, %v7297_v47  ;;  %v2086_v1 = vpop.f32.mrf.mxu1  ;;  %6969 = vmatmul.mubr.msk.bf16.gmra.mxu1 %vm407_vm0, %v3107_v51 }
 0x125   : > { %1258 = vst.msk [vmem:[#allocation2 + $0x12a] sm:$0xff] %vm172_vm1, %v1219_v54  ;;  %v1218_v62 = vadd.f32 %v7940_v5, %v778_v58  ;;  %v1217_v63 = vadd.f32 %v1157_v29, %v777_v59  ;;  %736 = vst.msk [vmem:[#allocation2 + $0x13b] sm:$0xff] %vm172_vm1, %v697_v55  ;;  %v1710_v0 = vadd.f32 %v6738_v61, %v1270_v60  ;;  %6928 = vmatprep.mubr.msk.bf16.mxu0 %vm7394_vm2, %v7393_v10  ;;  %v7993_v5 = vld [vmem:[%s7446_s27 + $0x30] sm:$0xff]   ;;  %v1273_v49 = vld [vmem:[#allocation2 + $0x39] sm:$0xff] }
 0x126   : > { %v2252_v2 = vadd.f32 %v2086_v1, %v1792_v57  ;;  %v1550_v6 = vpop.f32.mrf.mxu0  ;;  %6972 = vmatprep.mubr.msk.bf16.mxu1 %vm7394_vm2, %v7393_v10  ;;  %v6782_v4 = vpop.f32.mrf.mxu1  ;;  %v3120_v25 = vshll.u32 %v7993_v5, 16  ;;  %v3124_v52 = vshrl.u32 %v7993_v5, 16  ;;  %v1278_v57 = vld [vmem:[#allocation2 + $0x61] sm:$0xff]  ;;  %v1279_v5 = vld [vmem:[#allocation2 + $0x69] sm:$0xff] }
 0x127   : > { %1257 = vst.msk [vmem:[#allocation2 + $0x122] sm:$0xff] %vm172_vm1, %v1218_v62  ;;  %1256 = vst.msk [vmem:[#allocation2 + $0x11a] sm:$0xff] %vm172_vm1, %v1217_v63  ;;  %v1708_v8 = vadd.f32 %v1550_v6, %v1268_v3  ;;  %v3130_v3 = vrot.slane %v3128_v53, 1  ;;  %v8036_v6 = vld [vmem:[%s7446_s27 + $0x40] sm:$0xff]   ;;  %v7303_v4 = vld [vmem:[%s7446_s27 + $0x88] sm:$0xff]  }
 0x128   : > { %1749 = vst.msk [vmem:[#allocation2 + $0x21] sm:$0xff] %vm172_vm1, %v1710_v0  ;;  %v780_v12 = vld [vmem:[#allocation2 + $0x132] sm:$0xff]  ;;  %2293 = vst.msk [vmem:[#allocation2 + $0x1] sm:$0xff] %vm172_vm1, %v2252_v2  ;;  %v6739_v14 = vpop.f32.mrf.mxu0  ;;  %v2089_v19 = vpop.f32.mrf.mxu1  ;;  %v3122_v37 = vrot.slane %v3120_v25, 1 }
 0x129   : > { %v1220_v17 = vadd.f32 %v1170_v43, %v780_v12  ;;  %1747 = vst.msk [vmem:[#allocation2 + $0x11] sm:$0xff] %vm172_vm1, %v1708_v8  ;;  %v1711_v18 = vadd.f32 %v6739_v14, %v1271_v13  ;;  %v2253_v20 = vadd.f32 %v2089_v19, %v1793_v11  ;;  %v1276_v0 = vld [vmem:[#allocation2 + $0x51] sm:$0xff]  ;;  %v3132_v19 = vshrl.u32 %v8016_v42, 16 }
 0x12a   : > { %v1553_v22 = vpop.f32.mrf.mxu0  ;;  %v6783_v27 = vpop.f32.mrf.mxu1  ;;  %v3123_v51 = vsel %vm3071_vm4, %v3118_v41, %v3122_v37  ;;  %v3126_v2 = vor.u32 %v3124_v52, %v3122_v37  ;;  %v7305_v41 = vld [vmem:[%s7446_s27 + $0x90] sm:$0xff]  }
 0x12b   : > { %1259 = vst.msk [vmem:[#allocation2 + $0x132] sm:$0xff] %vm172_vm1, %v1220_v17  ;;  %1750 = vst.msk [vmem:[#allocation2 + $0x29] sm:$0xff] %vm172_vm1, %v1711_v18  ;;  %v1709_v26 = vadd.f32 %v1553_v22, %v1269_v21 }
 0x12c   : > { %v782_v28 = vld [vmem:[#allocation2 + $0x142] sm:$0x3]  ;;  %v781_v29 = vld [vmem:[#allocation2 + $0x13a] sm:$0xff]  ;;  %2294 = vst.msk [vmem:[#allocation2 + $0x9] sm:$0xff] %vm172_vm1, %v2253_v20  ;;  %v6742_v31 = vpop.f32.mrf.mxu0  ;;  %6929 = vmatmul.mubr.msk.bf16.gmra.mxu0 %vm407_vm0, %v7299_v15  ;;  %v2094_v35 = vpop.f32.mrf.mxu1  ;;  %6973 = vmatmul.mubr.msk.bf16.gmra.mxu1 %vm407_vm0, %v3115_v23  ;;  %v3131_v18 = vsel %vm3071_vm4, %v3126_v2, %v3130_v3  ;;  %v3136_v20 = vshll.u32 %v8036_v6, 16 }
 0x12d   : > { %v1222_v32 = vadd.f32 %v7964_v38, %v782_v28  ;;  %v1221_v33 = vadd.f32 %v1173_v56, %v781_v29  ;;  %1748 = vst.msk [vmem:[#allocation2 + $0x19] sm:$0xff] %vm172_vm1, %v1709_v26  ;;  %v1714_v34 = vadd.f32 %v6742_v31, %v1274_v30  ;;  %6932 = vmatprep.mubr.msk.bf16.mxu0 %vm7394_vm2, %v7393_v10  ;;  %v1277_v15 = vld [vmem:[#allocation2 + $0x59] sm:$0xff]  ;;  %v1282_v23 = vld [vmem:[#allocation2 + $0x81] sm:$0xff]  ;;  %v1280_v30 = vld [vmem:[#allocation2 + $0x71] sm:$0xff] }
 0x12e   : > { %v1566_v40 = vpop.f32.mrf.mxu0  ;;  %6976 = vmatprep.mubr.msk.bf16.mxu1 %vm7394_vm2, %v7393_v10  ;;  %v6786_v39 = vpop.f32.mrf.mxu1  ;;  %v8054_v28 = vld [vmem:[%s7446_s27 + $0x48] sm:$0xff]  }
 0x12f   : > { %1262 = vst.msk [vmem:[#allocation2 + $0x142] sm:$0x3] %vm1261_vm6, %v1222_v32  ;;  %v1712_v38 = vadd.f32 %v1566_v40, %v1272_v36  ;;  %v1796_v61 = vld [vmem:[#allocation2 + $0x21] sm:$0xff]  ;;  %v3134_v32 = vor.u32 %v3132_v19, %v3130_v3  ;;  %v1283_v36 = vld [vmem:[#allocation2 + $0x89] sm:$0xff]  ;;  %v3140_v39 = vshrl.u32 %v8036_v6, 16  ;;  %v7307_v3 = vld [vmem:[%s7446_s27 + $0x98] sm:$0xff]  }
 0x130   : > { %1260 = vst.msk [vmem:[#allocation2 + $0x13a] sm:$0xff] %vm172_vm1, %v1221_v33  ;;  %1753 = vst.msk [vmem:[#allocation2 + $0x41] sm:$0xff] %vm172_vm1, %v1714_v34  ;;  %v1794_v43 = vld [vmem:[#allocation2 + $0x11] sm:$0xff]  ;;  %v6743_v45 = vpop.f32.mrf.mxu0  ;;  %v2097_v48 = vpop.f32.mrf.mxu1  ;;  %v3138_v33 = vrot.slane %v3136_v20, 1  ;;  %v1290_v20 = vld [vmem:[#allocation2 + $0xc1] sm:$0xff] }
 0x131   : > { %v2254_v47 = vadd.f32 %v2094_v35, %v1794_v43  ;;  %1751 = vst.msk [vmem:[#allocation2 + $0x31] sm:$0xff] %vm172_vm1, %v1712_v38  ;;  %v1715_v16 = vadd.f32 %v6743_v45, %v1275_v44  ;;  %v3144_v43 = vshll.u32 %v8054_v28, 16  ;;  %v1281_v45 = vld [vmem:[#allocation2 + $0x79] sm:$0xff] }
 0x132   : > { %v1569_v50 = vpop.f32.mrf.mxu0  ;;  %v6787_v55 = vpop.f32.mrf.mxu1  ;;  %v1797_v12 = vld [vmem:[#allocation2 + $0x29] sm:$0xff] }
 0x133   : > { %2295 = vst.msk [vmem:[#allocation2 + $0x11] sm:$0xff] %vm172_vm1, %v2254_v47  ;;  %1754 = vst.msk [vmem:[#allocation2 + $0x49] sm:$0xff] %vm172_vm1, %v1715_v16  ;;  %v1713_v54 = vadd.f32 %v1569_v50, %v1273_v49  ;;  %v3139_v47 = vsel %vm3071_vm4, %v3134_v32, %v3138_v33  ;;  %v8066_v16 = vld [vmem:[%s7446_s27 + $0x8] sm:$0xff]   ;;  %v3142_v55 = vor.u32 %v3140_v39, %v3138_v33  ;;  %v8104_v33 = vld [vmem:[%s7446_s27 + $0x58] sm:$0xff]  }
 0x134   : > { %v1795_v56 = vld [vmem:[#allocation2 + $0x19] sm:$0xff]  ;;  %v6746_v58 = vpop.f32.mrf.mxu0  ;;  %6933 = vmatmul.mubr.msk.bf16.gmra.mxu0 %vm407_vm0, %v7301_v46  ;;  %v2102_v62 = vpop.f32.mrf.mxu1  ;;  %6977 = vmatmul.mubr.msk.bf16.gmra.mxu1 %vm407_vm0, %v3123_v51  ;;  %v1286_v50 = vld [vmem:[#allocation2 + $0xa1] sm:$0xff] }
 0x135   : > { %v2255_v59 = vadd.f32 %v2097_v48, %v1795_v56  ;;  %1752 = vst.msk [vmem:[#allocation2 + $0x39] sm:$0xff] %vm172_vm1, %v1713_v54  ;;  %v1718_v60 = vadd.f32 %v6746_v58, %v1278_v57  ;;  %6936 = vmatprep.mubr.msk.bf16.mxu0 %vm7394_vm2, %v7393_v10  ;;  %v2256_v63 = vadd.f32 %v2102_v62, %v1796_v61  ;;  %v3146_v56 = vrot.slane %v3144_v43, 1  ;;  %v8076_v57 = vld [vmem:[%s7446_s27 + $0x50] sm:$0xff]  }
 0x136   : > { %v1582_v1 = vpop.f32.mrf.mxu0  ;;  %6980 = vmatprep.mubr.msk.bf16.mxu1 %vm7394_vm2, %v7393_v10  ;;  %v6790_v9 = vpop.f32.mrf.mxu1  ;;  %v8081_v61 = vld [vmem:[%s7446_s27 + $0x10] sm:$0xff]   ;;  %v3780_v62 = vshll.u32 %v8066_v16, 16 }
 0x137   : > { %2296 = vst.msk [vmem:[#allocation2 + $0x19] sm:$0xff] %vm172_vm1, %v2255_v59  ;;  %1757 = vst.msk [vmem:[#allocation2 + $0x61] sm:$0xff] %vm172_vm1, %v1718_v60  ;;  %v1716_v7 = vadd.f32 %v1582_v1, %v1276_v0  ;;  %v1800_v53 = vld [vmem:[#allocation2 + $0x41] sm:$0xff]  ;;  %v1284_v59 = vld [vmem:[#allocation2 + $0x91] sm:$0xff] }
 0x138   : > { %2297 = vst.msk [vmem:[#allocation2 + $0x21] sm:$0xff] %vm172_vm1, %v2256_v63  ;;  %v6747_v8 = vpop.f32.mrf.mxu0  ;;  %v2105_v13 = vpop.f32.mrf.mxu1  ;;  %v1798_v26 = vld [vmem:[#allocation2 + $0x31] sm:$0xff]  ;;  %v1287_v1 = vld [vmem:[#allocation2 + $0xa9] sm:$0xff] }
 0x139   : > { %1755 = vst.msk [vmem:[#allocation2 + $0x51] sm:$0xff] %vm172_vm1, %v1716_v7  ;;  %v1719_v11 = vadd.f32 %v6747_v8, %v1279_v5  ;;  %v2257_v14 = vadd.f32 %v2105_v13, %v1797_v12  ;;  %v3147_v5 = vsel %vm3071_vm4, %v3142_v55, %v3146_v56  ;;  %v3148_v8 = vshrl.u32 %v8054_v28, 16  ;;  %v1285_v12 = vld [vmem:[#allocation2 + $0x99] sm:$0xff]  ;;  %v1294_v55 = vld [vmem:[#allocation2 + $0xe1] sm:$0xff] }
 0x13a   : > { %v1585_v17 = vpop.f32.mrf.mxu0  ;;  %v6791_v22 = vpop.f32.mrf.mxu1  ;;  %v1801_v7 = vld [vmem:[#allocation2 + $0x49] sm:$0xff] }
 0x13b   : > { %1758 = vst.msk [vmem:[#allocation2 + $0x69] sm:$0xff] %vm172_vm1, %v1719_v11  ;;  %v1717_v21 = vadd.f32 %v1585_v17, %v1277_v15  ;;  %2298 = vst.msk [vmem:[#allocation2 + $0x29] sm:$0xff] %vm172_vm1, %v2257_v14  ;;  %v3778_v14 = vshrl.u32 %v8066_v16, 16  ;;  %v3782_v15 = vrot.slane %v3780_v62, 1  ;;  %v3785_v17 = vshll.u32 %v8081_v61, 16 }
 0x13c   : > { %v6750_v24 = vpop.f32.mrf.mxu0  ;;  %6937 = vmatmul.mubr.msk.bf16.gmra.mxu0 %vm407_vm0, %v7303_v4  ;;  %v2110_v27 = vpop.f32.mrf.mxu1  ;;  %6981 = vmatmul.mubr.msk.bf16.gmra.mxu1 %vm407_vm0, %v3131_v18  ;;  %v1799_v42 = vld [vmem:[#allocation2 + $0x39] sm:$0xff]  ;;  %v3152_v4 = vshll.u32 %v8076_v57, 16 }
 0x13d   : > { %1756 = vst.msk [vmem:[#allocation2 + $0x59] sm:$0xff] %vm172_vm1, %v1717_v21  ;;  %v1722_v25 = vadd.f32 %v6750_v24, %v1282_v23  ;;  %6940 = vmatprep.mubr.msk.bf16.mxu0 %vm7394_vm2, %v7393_v10  ;;  %v2258_v29 = vadd.f32 %v2110_v27, %v1798_v26  ;;  %6984 = vmatprep.mubr.msk.bf16.mxu1 %vm7394_vm2, %v7393_v10  ;;  %v7314_v27 = vld [vmem:[%s7446_s27 + $0x18] sm:$0xff]   ;;  %v3787_v32 = vrot.slane %v3785_v17, 1 }
 0x13e   : > { %v1598_v31 = vpop.f32.mrf.mxu0  ;;  %v6794_v35 = vpop.f32.mrf.mxu1  ;;  %v3154_v26 = vrot.slane %v3152_v4, 1 }
 0x13f   : > { %1761 = vst.msk [vmem:[#allocation2 + $0x81] sm:$0xff] %vm172_vm1, %v1722_v25  ;;  %v1720_v34 = vadd.f32 %v1598_v31, %v1280_v30  ;;  %2299 = vst.msk [vmem:[#allocation2 + $0x31] sm:$0xff] %vm172_vm1, %v2258_v29  ;;  %v3150_v25 = vor.u32 %v3148_v8, %v3146_v56  ;;  %v1288_v29 = vld [vmem:[#allocation2 + $0xb1] sm:$0xff]  ;;  %v3783_v31 = vor.u32 %v3782_v15, %v3778_v14  ;;  %v3164_v14 = vshrl.u32 %v8104_v33, 16 }
 0x140   : > { %v6751_v40 = vpop.f32.mrf.mxu0  ;;  %v2113_v38 = vpop.f32.mrf.mxu1  ;;  %v1802_v23 = vld [vmem:[#allocation2 + $0x51] sm:$0xff] }
 0x141   : > { %1759 = vst.msk [vmem:[#allocation2 + $0x71] sm:$0xff] %vm172_vm1, %v1720_v34  ;;  %v1723_v37 = vadd.f32 %v6751_v40, %v1283_v36  ;;  %v2259_v44 = vadd.f32 %v2113_v38, %v1799_v42  ;;  %v8108_v36 = vld [vmem:[%s7446_s27 + $0x20] sm:$0xff]   ;;  %v1291_v40 = vld [vmem:[#allocation2 + $0xc9] sm:$0xff]  ;;  %v3155_v43 = vsel %vm3071_vm4, %v3150_v25, %v3154_v26 }
 0x142   : > { %v1601_v46 = vpop.f32.mrf.mxu0  ;;  %v6795_v49 = vpop.f32.mrf.mxu1 }
 0x143   : > { %1762 = vst.msk [vmem:[#allocation2 + $0x89] sm:$0xff] %vm172_vm1, %v1723_v37  ;;  %v1721_v48 = vadd.f32 %v1601_v46, %v1281_v45  ;;  %2300 = vst.msk [vmem:[#allocation2 + $0x39] sm:$0xff] %vm172_vm1, %v2259_v44  ;;  %v7309_v37 = vld [vmem:[%s7446_s27 + $0xa0] ss:$0 sps:$4 sm:$0x33]   ;;  %v3789_v44 = vshrl.u32 %v8081_v61, 16 }
 0x144   : > { %v6754_v51 = vpop.f32.mrf.mxu0  ;;  %6941 = vmatmul.mubr.msk.bf16.gmra.mxu0 %vm407_vm0, %v7305_v41  ;;  %v2118_v54 = vpop.f32.mrf.mxu1  ;;  %6985 = vmatmul.mubr.msk.bf16.gmra.mxu1 %vm407_vm0, %v3139_v47  ;;  %v1803_v38 = vld [vmem:[#allocation2 + $0x59] sm:$0xff]  ;;  %v3793_v45 = vshll.u32 %v7314_v27, 16  ;;  %v3156_v49 = vshrl.u32 %v8076_v57, 16 }
 0x145   : > { %1760 = vst.msk [vmem:[#allocation2 + $0x79] sm:$0xff] %vm172_vm1, %v1721_v48  ;;  %v1726_v52 = vadd.f32 %v6754_v51, %v1286_v50  ;;  %6944 = vmatprep.mubr.msk.bf16.mxu0 %vm7394_vm2, %v7393_v10  ;;  %v2260_v58 = vadd.f32 %v2118_v54, %v1800_v53  ;;  %6988 = vmatprep.mubr.msk.bf16.mxu1 %vm7394_vm2, %v7393_v10  ;;  %v1289_v47 = vld [vmem:[#allocation2 + $0xb9] sm:$0xff]  ;;  %v3160_v50 = vshll.u32 %v8104_v33, 16  ;;  %v3797_v53 = vshrl.u32 %v7314_v27, 16 }
 0x146   : > { %v1614_v60 = vpop.f32.mrf.mxu0  ;;  %v6798_v0 = vpop.f32.mrf.mxu1  ;;  %v3788_v48 = vsel %vm3071_vm4, %v3783_v31, %v3787_v32  ;;  %v3801_v54 = vshll.u32 %v8108_v36, 16  ;;  %v3791_v62 = vor.u32 %v3789_v44, %v3787_v32  ;;  %v7332_v31 = vld [vmem:[%s8852_s1 + $0x70] sm:$0xff]   ;;  %v1298_v32 = vld [vmem:[#allocation2 + $0x101] sm:$0xff] }
 0x147   : > { %1765 = vst.msk [vmem:[#allocation2 + $0xa1] sm:$0xff] %vm172_vm1, %v1726_v52  ;;  %v1724_v63 = vadd.f32 %v1614_v60, %v1284_v59  ;;  %2301 = vst.msk [vmem:[#allocation2 + $0x41] sm:$0xff] %vm172_vm1, %v2260_v58  ;;  %v8123_v58 = vld [vmem:[%s7446_s27 + $0x60] sm:$0xff]   ;;  %v8126_v59 = vld [vmem:[%s7446_s27 + $0x28] sm:$0xff]  }
 0x148   : > { %v6755_v2 = vpop.f32.mrf.mxu0  ;;  %v2121_v9 = vpop.f32.mrf.mxu1  ;;  %v1804_v60 = vld [vmem:[#allocation2 + $0x61] sm:$0xff]  ;;  %v3803_v4 = vrot.slane %v3801_v54, 1  ;;  %v3168_v15 = vshll.u32 %v8123_v58, 16  ;;  %v3809_v17 = vshll.u32 %v8126_v59, 16 }
 0x149   : > { %1763 = vst.msk [vmem:[#allocation2 + $0x91] sm:$0xff] %vm172_vm1, %v1724_v63  ;;  %v1727_v6 = vadd.f32 %v6755_v2, %v1287_v1  ;;  %v2261_v11 = vadd.f32 %v2121_v9, %v1801_v7  ;;  %v3795_v63 = vrot.slane %v3793_v45, 1  ;;  %v1292_v1 = vld [vmem:[#allocation2 + $0xd1] sm:$0xff] }
 0x14a   : > { %v1617_v13 = vpop.f32.mrf.mxu0  ;;  %v6799_v19 = vpop.f32.mrf.mxu1  ;;  %v8134_v7 = vld [vmem:[%s7446_s27 + $0x30] sm:$0xff]  }
 0x14b   : > { %1766 = vst.msk [vmem:[#allocation2 + $0xa9] sm:$0xff] %vm172_vm1, %v1727_v6  ;;  %v1725_v18 = vadd.f32 %v1617_v13, %v1285_v12  ;;  %2302 = vst.msk [vmem:[#allocation2 + $0x49] sm:$0xff] %vm172_vm1, %v2261_v11  ;;  %v3162_v6 = vrot.slane %v3160_v50, 1  ;;  %v3799_v8 = vor.u32 %v3797_v53, %v3795_v63  ;;  %v1295_v11 = vld [vmem:[#allocation2 + $0xe9] sm:$0xff]  ;;  %v3805_v13 = vshrl.u32 %v8108_v36, 16  ;;  %v1296_v45 = vld [vmem:[#allocation2 + $0xf1] sm:$0xff] }
 0x14c   : > { %v6758_v21 = vpop.f32.mrf.mxu0  ;;  %6945 = vmatmul.mubr.msk.bf16.gmra.mxu0 %vm407_vm0, %v7307_v3  ;;  %v2126_v24 = vpop.f32.mrf.mxu1  ;;  %6989 = vmatmul.mubr.msk.bf16.gmra.mxu1 %vm407_vm0, %v3147_v5  ;;  %v3158_v3 = vor.u32 %v3156_v49, %v3154_v26  ;;  %v1805_v19 = vld [vmem:[#allocation2 + $0x69] sm:$0xff]  ;;  %v3813_v26 = vshrl.u32 %v8126_v59, 16  ;;  %v3817_v27 = vshll.u32 %v8134_v7, 16  ;;  %v3170_v36 = vrot.slane %v3168_v15, 1  ;;  %v1807_v59 = vld [vmem:[#allocation2 + $0x79] sm:$0xff] }
 0x14d   : > { %1764 = vst.msk [vmem:[#allocation2 + $0x99] sm:$0xff] %vm172_vm1, %v1725_v18  ;;  %v1730_v22 = vadd.f32 %v6758_v21, %v1290_v20  ;;  %6948 = vmatprep.mubr.msk.bf16.mxu0 %vm7394_vm2, %v7393_v10  ;;  %v2262_v28 = vadd.f32 %v2126_v24, %v1802_v23  ;;  %6992 = vmatprep.mubr.msk.bf16.mxu1 %vm7394_vm2, %v7393_v10  ;;  %v1293_v23 = vld [vmem:[#allocation2 + $0xd9] sm:$0xff] }
 0x14e   : > { %v1630_v30 = vpop.f32.mrf.mxu0  ;;  %v6802_v35 = vpop.f32.mrf.mxu1  ;;  %v3796_v21 = vsel %vm3071_vm4, %v3791_v62, %v3795_v63  ;;  %v3163_v25 = vsel %vm3071_vm4, %v3158_v3, %v3162_v6 }
 0x14f   : > { %1769 = vst.msk [vmem:[#allocation2 + $0xc1] sm:$0xff] %vm172_vm1, %v1730_v22  ;;  %v1728_v34 = vadd.f32 %v1630_v30, %v1288_v29  ;;  %2303 = vst.msk [vmem:[#allocation2 + $0x51] sm:$0xff] %vm172_vm1, %v2262_v28  ;;  %v3804_v30 = vsel %vm3071_vm4, %v3799_v8, %v3803_v4  ;;  %v3166_v35 = vor.u32 %v3164_v14, %v3162_v6 }
 0x150   : > { %v6759_v41 = vpop.f32.mrf.mxu0  ;;  %v2129_v39 = vpop.f32.mrf.mxu1 }
 0x151   : > { %1767 = vst.msk [vmem:[#allocation2 + $0xb1] sm:$0xff] %vm172_vm1, %v1728_v34  ;;  %v1731_v42 = vadd.f32 %v6759_v41, %v1291_v40  ;;  %v2263_v46 = vadd.f32 %v2129_v39, %v1803_v38  ;;  %v3807_v34 = vor.u32 %v3805_v13, %v3803_v4  ;;  %v3811_v40 = vrot.slane %v3809_v17, 1  ;;  %v8155_v41 = vld [vmem:[%s7446_s27 + $0x38] sm:$0xff]   ;;  %v8187_v4 = vld [vmem:[%s7446_s27 + $0x70] sm:$0xff]   ;;  %v1808_v13 = vld [vmem:[#allocation2 + $0x81] sm:$0xff] }
 0x152   : > { %v1633_v16 = vpop.f32.mrf.mxu0  ;;  %v6803_v52 = vpop.f32.mrf.mxu1  ;;  %v7384_v39 = vld [vmem:[%s8852_s1 + $0x78] sm:$0xff]   ;;  %v3171_v53 = vsel %vm3071_vm4, %v3166_v35, %v3170_v36  ;;  %v3829_v3 = vshrl.u32 %v8155_v41, 16 }
 0x153   : > { %1770 = vst.msk [vmem:[#allocation2 + $0xc9] sm:$0xff] %vm172_vm1, %v1731_v42  ;;  %v1729_v51 = vadd.f32 %v1633_v16, %v1289_v47  ;;  %2304 = vst.msk [vmem:[#allocation2 + $0x59] sm:$0xff] %vm172_vm1, %v2263_v46  ;;  %v1806_v42 = vld [vmem:[#allocation2 + $0x71] sm:$0xff]  ;;  %v3815_v47 = vor.u32 %v3813_v26, %v3811_v40  ;;  %v3819_v16 = vrot.slane %v3817_v27, 1  ;;  %v3812_v54 = vsel %vm3071_vm4, %v3807_v34, %v3811_v40  ;;  %v1303_v27 = vld [vmem:[#allocation2 + $0x129] sm:$0xff] }
 0x154   : > { %v6762_v56 = vpop.f32.mrf.mxu0  ;;  %6949 = vmatmul.mubr.msk.bf16.gmra.mxu0 %vm407_vm0, %v7309_v37  ;;  %v2134_v61 = vpop.f32.mrf.mxu1  ;;  %6993 = vmatmul.mubr.msk.bf16.gmra.mxu1 %vm407_vm0, %v3155_v43  ;;  %v8163_v43 = vld [vmem:[%s7446_s27 + $0x68] sm:$0xff]  }
 0x155   : > { %1768 = vst.msk [vmem:[#allocation2 + $0xb9] sm:$0xff] %vm172_vm1, %v1729_v51  ;;  %v1734_v57 = vadd.f32 %v6762_v56, %v1294_v55  ;;  %7044 = vmatprep.mubr.msk.bf16.mxu0 %vm407_vm0, %v3788_v48  ;;  %v2264_v0 = vadd.f32 %v2134_v61, %v1804_v60  ;;  %6996 = vmatprep.mubr.msk.bf16.mxu1 %vm7394_vm2, %v7393_v10  ;;  %v8169_v48 = vld [vmem:[%s7446_s27 + $0x40] sm:$0xff]   ;;  %v1299_v51 = vld [vmem:[#allocation2 + $0x109] sm:$0xff]  ;;  %v3825_v55 = vshll.u32 %v8155_v41, 16  ;;  %v3821_v60 = vshrl.u32 %v8134_v7, 16 }
 0x156   : > { %v1646_v2 = vpop.f32.mrf.mxu0  ;;  %v6806_v5 = vpop.f32.mrf.mxu1  ;;  %v3172_v61 = vshrl.u32 %v8123_v58, 16  ;;  %v3176_v62 = vshll.u32 %v8163_v43, 16  ;;  %v3833_v6 = vshll.u32 %v8169_v48, 16  ;;  %v1302_v58 = vld [vmem:[#allocation2 + $0x121] sm:$0xff]  ;;  %v3837_v40 = vshrl.u32 %v8169_v48, 16 }
 0x157   : > { %1773 = vst.msk [vmem:[#allocation2 + $0xe1] sm:$0xff] %vm172_vm1, %v1734_v57  ;;  %v1732_v9 = vadd.f32 %v1646_v2, %v1292_v1  ;;  %2305 = vst.msk [vmem:[#allocation2 + $0x61] sm:$0xff] %vm172_vm1, %v2264_v0  ;;  %v1297_v0 = vld [vmem:[#allocation2 + $0xf9] sm:$0xff]  ;;  %v3820_v2 = vsel %vm3071_vm4, %v3815_v47, %v3819_v16  ;;  %v3827_v8 = vrot.slane %v3825_v55, 1  ;;  %v3823_v15 = vor.u32 %v3821_v60, %v3819_v16 }
 0x158   : > { %v6763_v12 = vpop.f32.mrf.mxu0  ;;  %v2137_v20 = vpop.f32.mrf.mxu1  ;;  %v3174_v17 = vor.u32 %v3172_v61, %v3170_v36  ;;  %v8220_v55 = vld [vmem:[%s7446_s27 + $0x78] sm:$0xff]  }
 0x159   : > { %1771 = vst.msk [vmem:[#allocation2 + $0xd1] sm:$0xff] %vm172_vm1, %v1732_v9  ;;  %v1735_v18 = vadd.f32 %v6763_v12, %v1295_v11  ;;  %v2265_v22 = vadd.f32 %v2137_v20, %v1805_v19  ;;  %v8190_v11 = vld [vmem:[%s7446_s27 + $0x48] sm:$0xff]   ;;  %v1300_v20 = vld [vmem:[#allocation2 + $0x111] sm:$0xff]  ;;  %v3828_v36 = vsel %vm3071_vm4, %v3823_v15, %v3827_v8 }
 0x15a   : > { %v1649_v24 = vpop.f32.mrf.mxu0  ;;  %v6807_v29 = vpop.f32.mrf.mxu1 }
 0x15b   : > { %1774 = vst.msk [vmem:[#allocation2 + $0xe9] sm:$0xff] %vm172_vm1, %v1735_v18  ;;  %v1733_v28 = vadd.f32 %v1649_v24, %v1293_v23  ;;  %2306 = vst.msk [vmem:[#allocation2 + $0x69] sm:$0xff] %vm172_vm1, %v2265_v22  ;;  %v3178_v18 = vrot.slane %v3176_v62, 1  ;;  %v3831_v22 = vor.u32 %v3829_v3, %v3827_v8  ;;  %v3835_v23 = vrot.slane %v3833_v6, 1  ;;  %v8198_v24 = vld [vmem:[%s7446_s27 + $0x50] sm:$0xff]   ;;  %v8225_v62 = vld [vmem:[%s7446_s27 + $0x60] sm:$0xff]  }
 0x15c   : > { %v6766_v33 = vpop.f32.mrf.mxu0  ;;  %7045 = vmatmul.mubr.msk.bf16.vlgmr.msra.gmra.mxu0 %vm407_vm0, %v3796_v21  ;;  %v2142_v38 = vpop.f32.mrf.mxu1  ;;  %6997 = vmatmul.mubr.msk.bf16.gmra.mxu1 %vm407_vm0, %v3163_v25  ;;  %v3180_v29 = vshrl.u32 %v8163_v43, 16  ;;  %v3849_v43 = vshll.u32 %v8198_v24, 16  ;;  %v1811_v6 = vld [vmem:[#allocation2 + $0x99] sm:$0xff]  ;;  %v3192_v8 = vshll.u32 %v8220_v55, 16 }
 0x15d   : > { %1772 = vst.msk [vmem:[#allocation2 + $0xd9] sm:$0xff] %vm172_vm1, %v1733_v28  ;;  %v1738_v37 = vadd.f32 %v6766_v33, %v1298_v32  ;;  %7085 = vmatpush3.bf16.msra.mxu0 %v7384_v39  ;;  %v2266_v44 = vadd.f32 %v2142_v38, %v1806_v42  ;;  %7000 = vmatprep.mubr.msk.bf16.mxu1 %vm7394_vm2, %v7393_v10  ;;  %v1809_v33 = vld [vmem:[#allocation2 + $0x89] sm:$0xff]  ;;  %v3845_v39 = vshrl.u32 %v8190_v11, 16 }
 0x15e   : > { %v1662_v46 = vpop.f32.mrf.mxu0  ;;  %7048 = vmatprep.mubr.msk.bf16.mxu0 %vm407_vm0, %v3804_v30  ;;  %v6810_v50 = vpop.f32.mrf.mxu1  ;;  %7086 = vmatprep.subr.bf16.mxu0 %v7332_v31  ;;  %v3184_v30 = vshll.u32 %v8187_v4, 16  ;;  %v3179_v35 = vsel %vm3071_vm4, %v3174_v17, %v3178_v18  ;;  %v3836_v38 = vsel %vm3071_vm4, %v3831_v22, %v3835_v23  ;;  %v3182_v16 = vor.u32 %v3180_v29, %v3178_v18  ;;  %v8240_v22 = vld [vmem:[%s7446_s27 + $0x80] sm:$0xff]  }
 0x15f   : > { %1777 = vst.msk [vmem:[#allocation2 + $0x101] sm:$0xff] %vm172_vm1, %v1738_v37  ;;  %v1736_v49 = vadd.f32 %v1662_v46, %v1296_v45  ;;  %2307 = vst.msk [vmem:[#allocation2 + $0x71] sm:$0xff] %vm172_vm1, %v2266_v44  ;;  %v1301_v37 = vld [vmem:[#allocation2 + $0x119] sm:$0xff]  ;;  %v1306_v46 = vld [vmem:[#allocation2 + $0x141] sm:$0x7]  ;;  %v3851_v61 = vrot.slane %v3849_v43, 1 }
 0x160   : > { %v6767_v52 = vpop.f32.mrf.mxu0  ;;  %v2145_v57 = vpop.f32.mrf.mxu1  ;;  %v3186_v48 = vrot.slane %v3184_v30, 1  ;;  %v7328_v50 = vld [vmem:[%s7446_s27 + $0x58] sm:$0xff]   ;;  %v3865_v17 = vshll.u32 %v8225_v62, 16  ;;  %v3194_v29 = vrot.slane %v3192_v8, 1 }
 0x161   : > { %1775 = vst.msk [vmem:[#allocation2 + $0xf1] sm:$0xff] %vm172_vm1, %v1736_v49  ;;  %v1739_v56 = vadd.f32 %v6767_v52, %v1299_v51  ;;  %7087 = vmatpush3.bf16.msra.mxu0 %v7332_v31  ;;  %v2267_v63 = vadd.f32 %v2145_v57, %v1807_v59  ;;  %v3841_v31 = vshll.u32 %v8190_v11, 16  ;;  %v1810_v52 = vld [vmem:[#allocation2 + $0x91] sm:$0xff]  ;;  %v3857_v3 = vshll.u32 %v7328_v50, 16 }
 0x162   : > { %v1665_v1 = vpop.f32.mrf.mxu0  ;;  %v6811_v7 = vpop.f32.mrf.mxu1  ;;  %v1304_v59 = vld [vmem:[#allocation2 + $0x131] sm:$0xff]  ;;  %v3861_v15 = vshrl.u32 %v7328_v50, 16 }
 0x163   : > { %1778 = vst.msk [vmem:[#allocation2 + $0x109] sm:$0xff] %vm172_vm1, %v1739_v56  ;;  %v1737_v9 = vadd.f32 %v1665_v1, %v1297_v0  ;;  %2308 = vst.msk [vmem:[#allocation2 + $0x79] sm:$0xff] %vm172_vm1, %v2267_v63  ;;  %v3843_v49 = vrot.slane %v3841_v31, 1 }
 0x164   : > { %v6770_v5 = vpop.f32.mrf.mxu0  ;;  %7049 = vmatmul.mubr.msk.bf16.gmra.mxu0 %vm407_vm0, %v3812_v54  ;;  %v2150_v14 = vpop.f32.mrf.mxu1  ;;  %7001 = vmatmul.mubr.msk.bf16.gmra.mxu1 %vm407_vm0, %v3171_v53  ;;  %v3839_v54 = vor.u32 %v3837_v40, %v3835_v23  ;;  %v7331_v23 = vld [vmem:[%s7446_s27 + $0x68] sm:$0xff]  }
 0x165   : > { %1776 = vst.msk [vmem:[#allocation2 + $0xf9] sm:$0xff] %vm172_vm1, %v1737_v9  ;;  %v1742_v12 = vadd.f32 %v6770_v5, %v1302_v58  ;;  %7052 = vmatprep.mubr.msk.bf16.mxu0 %vm407_vm0, %v3820_v2  ;;  %v2268_v19 = vadd.f32 %v2150_v14, %v1808_v13  ;;  %7004 = vmatprep.mubr.msk.bf16.mxu1 %vm7394_vm2, %v7393_v10  ;;  %v3853_v58 = vshrl.u32 %v8198_v24, 16  ;;  %v3188_v5 = vshrl.u32 %v8187_v4, 16  ;;  %v1812_v24 = vld [vmem:[#allocation2 + $0xa1] sm:$0xff] }
 0x166   : > { %v1678_v21 = vpop.f32.mrf.mxu0  ;;  %v6814_v26 = vpop.f32.mrf.mxu1  ;;  %v3847_v60 = vor.u32 %v3845_v39, %v3843_v49  ;;  %v3187_v2 = vsel %vm3071_vm4, %v3182_v16, %v3186_v48  ;;  %v3844_v7 = vsel %vm3071_vm4, %v3839_v54, %v3843_v49  ;;  %v3859_v4 = vrot.slane %v3857_v3, 1  ;;  %v1813_v39 = vld [vmem:[#allocation2 + $0xa9] sm:$0xff] }
 0x167   : > { %1781 = vst.msk [vmem:[#allocation2 + $0x121] sm:$0xff] %vm172_vm1, %v1742_v12  ;;  %v1740_v25 = vadd.f32 %v1678_v21, %v1300_v20  ;;  %2309 = vst.msk [vmem:[#allocation2 + $0x81] sm:$0xff] %vm172_vm1, %v2268_v19  ;;  %v1305_v12 = vld [vmem:[#allocation2 + $0x139] sm:$0xff]  ;;  %v3877_v49 = vshrl.u32 %v7331_v23, 16 }
 0x168   : > { %v6771_v28 = vpop.f32.mrf.mxu0  ;;  %v2153_v34 = vpop.f32.mrf.mxu1  ;;  %v3852_v14 = vsel %vm3071_vm4, %v3847_v60, %v3851_v61  ;;  %v2339_v20 = vld [vmem:[#allocation2] sm:$0xff]  ;;  %v1814_v60 = vld [vmem:[#allocation2 + $0xb1] sm:$0xff] }
 0x169   : > { %1779 = vst.msk [vmem:[#allocation2 + $0x111] sm:$0xff] %vm172_vm1, %v1740_v25  ;;  %v1743_v32 = vadd.f32 %v6771_v28, %v1303_v27  ;;  %v2269_v41 = vadd.f32 %v2153_v34, %v1809_v33  ;;  %v3855_v27 = vor.u32 %v3853_v58, %v3851_v61  ;;  %v3190_v28 = vor.u32 %v3188_v5, %v3186_v48  ;;  %v8249_v34 = vld [vmem:[%s7446_s27 + $0x70] sm:$0xff]  }
 0x16a   : > { %v1681_v42 = vpop.f32.mrf.mxu0  ;;  %v6815_v45 = vpop.f32.mrf.mxu1  ;;  %v3867_v33 = vrot.slane %v3865_v17, 1  ;;  %v3881_v50 = vshll.u32 %v8249_v34, 16  ;;  %v3204_v17 = vshrl.u32 %v8240_v22, 16 }
 0x16b   : > { %1782 = vst.msk [vmem:[#allocation2 + $0x129] sm:$0xff] %vm172_vm1, %v1743_v32  ;;  %v1741_v44 = vadd.f32 %v1681_v42, %v1301_v37  ;;  %2310 = vst.msk [vmem:[#allocation2 + $0x89] sm:$0xff] %vm172_vm1, %v2269_v41  ;;  %v3863_v32 = vor.u32 %v3861_v15, %v3859_v4  ;;  %v3869_v41 = vshrl.u32 %v8225_v62, 16  ;;  %v3196_v37 = vshrl.u32 %v8220_v55, 16 }
 0x16c   : > { %v6774_v47 = vpop.f32.mrf.mxu0  ;;  %7053 = vmatmul.mubr.msk.bf16.gmra.mxu0 %vm407_vm0, %v3828_v36  ;;  %v2158_v53 = vpop.f32.mrf.mxu1  ;;  %7005 = vmatmul.mubr.msk.bf16.gmra.mxu1 %vm407_vm0, %v3179_v35  ;;  %v2340_v36 = vld [vmem:[#allocation2 + $0x8] sm:$0xff]  ;;  %v3200_v42 = vshll.u32 %v8240_v22, 16  ;;  %v3195_v45 = vsel %vm3071_vm4, %v3190_v28, %v3194_v29  ;;  %v3883_v3 = vrot.slane %v3881_v50, 1  ;;  %v3885_v15 = vshrl.u32 %v8249_v34, 16  ;;  %v8287_v22 = vld [vmem:[%s7446_s27 + $0x90] sm:$0xff]  }
 0x16d   : > { %1780 = vst.msk [vmem:[#allocation2 + $0x119] sm:$0xff] %vm172_vm1, %v1741_v44  ;;  %v1746_v51 = vadd.f32 %v6774_v47, %v1306_v46  ;;  %7056 = vmatprep.mubr.msk.bf16.mxu0 %vm407_vm0, %v3836_v38  ;;  %v2270_v56 = vadd.f32 %v2158_v53, %v1810_v52  ;;  %7008 = vmatprep.mubr.msk.bf16.mxu1 %vm7394_vm2, %v7393_v10  ;;  %v3873_v38 = vshll.u32 %v7331_v23, 16  ;;  %v2341_v52 = vld [vmem:[#allocation2 + $0x10] sm:$0xff]  ;;  %v7338_v28 = vld [vmem:[%s7446_s27 + $0x88] sm:$0xff]  }
 0x16e   : > { %v1694_v57 = vpop.f32.mrf.mxu0  ;;  %v6818_v0 = vpop.f32.mrf.mxu1  ;;  %v3860_v46 = vsel %vm3071_vm4, %v3855_v27, %v3859_v4  ;;  %v3868_v48 = vsel %vm3071_vm4, %v3863_v32, %v3867_v33  ;;  %v3871_v54 = vor.u32 %v3869_v41, %v3867_v33  ;;  %v3198_v55 = vor.u32 %v3196_v37, %v3194_v29  ;;  %v1816_v29 = vld [vmem:[#allocation2 + $0xc1] sm:$0xff]  ;;  %v8295_v37 = vld [vmem:[%s7446_s27 + $0x90] sm:$0xff]  }
 0x16f   : > { %1786 = vst.msk [vmem:[#allocation2 + $0x141] sm:$0x7] %vm1785_vm7, %v1746_v51  ;;  %v1744_v63 = vadd.f32 %v1694_v57, %v1304_v59  ;;  %v3875_v59 = vrot.slane %v3873_v38, 1  ;;  %v7335_v57 = vld [vmem:[%s7446_s27 + $0x78] sm:$0xff]   ;;  %v3887_v32 = vor.u32 %v3885_v15, %v3883_v3  ;;  %v2344_v38 = vld [vmem:[#allocation2 + $0x28] sm:$0xff] }
 0x170   : > { %2311 = vst.msk [vmem:[#allocation2 + $0x91] sm:$0xff] %vm172_vm1, %v2270_v56  ;;  %v6775_v1 = vpop.f32.mrf.mxu0  ;;  %v2161_v9 = vpop.f32.mrf.mxu1  ;;  %v3202_v56 = vrot.slane %v3200_v42, 1  ;;  %v3893_v4 = vshrl.u32 %v7335_v57, 16 }
 0x171   : > { %1783 = vst.msk [vmem:[#allocation2 + $0x131] sm:$0xff] %vm172_vm1, %v1744_v63  ;;  %v2271_v11 = vadd.f32 %v2161_v9, %v1811_v6  ;;  %v8267_v63 = vld [vmem:[%s7446_s27 + $0x88] sm:$0xff]   ;;  %v8272_v6 = vld [vmem:[%s7446_s27 + $0x80] sm:$0xff]   ;;  %v3876_v8 = vsel %vm3071_vm4, %v3871_v54, %v3875_v59  ;;  %v3909_v54 = vshrl.u32 %v7338_v28, 16 }
 0x172   : > { %v1697_v13 = vpop.f32.mrf.mxu0  ;;  %v6819_v19 = vpop.f32.mrf.mxu1  ;;  %v3203_v5 = vsel %vm3071_vm4, %v3198_v55, %v3202_v56  ;;  %v3897_v23 = vshll.u32 %v8272_v6, 16  ;;  %v3206_v33 = vor.u32 %v3204_v17, %v3202_v56  ;;  %v3913_v55 = vshll.u32 %v8295_v37, 16 }
 0x173   : > { %v1745_v18 = vadd.f32 %v1697_v13, %v1305_v12  ;;  %2312 = vst.msk [vmem:[#allocation2 + $0x99] sm:$0xff] %vm172_vm1, %v2271_v11  ;;  %v3889_v11 = vshll.u32 %v7335_v57, 16  ;;  %v1815_v12 = vld [vmem:[#allocation2 + $0xb9] sm:$0xff] }
 0x174   : > { %v2633_v21 = vpop.f32.mrf.mxu0  ;;  %7057 = vmatmul.mubr.msk.bf16.gmra.mxu0 %vm407_vm0, %v3844_v7  ;;  %v2166_v25 = vpop.f32.mrf.mxu1  ;;  %7009 = vmatmul.mubr.msk.bf16.gmra.mxu1 %vm407_vm0, %v3187_v2  ;;  %v3879_v2 = vor.u32 %v3877_v49, %v3875_v59  ;;  %v2342_v7 = vld [vmem:[#allocation2 + $0x18] sm:$0xff]  ;;  %v3899_v41 = vrot.slane %v3897_v23, 1  ;;  %v2345_v59 = vld [vmem:[#allocation2 + $0x30] sm:$0xff] }
 0x175   : > { %1784 = vst.msk [vmem:[#allocation2 + $0x139] sm:$0xff] %vm172_vm1, %v1745_v18  ;;  %v2799_v26 = vadd.f32 %v2633_v21, %v2339_v20  ;;  %7060 = vmatprep.mubr.msk.bf16.mxu0 %vm407_vm0, %v3852_v14  ;;  %v2272_v30 = vadd.f32 %v2166_v25, %v1812_v24  ;;  %7012 = vmatprep.mubr.msk.bf16.mxu1 %vm7394_vm2, %v7393_v10  ;;  %v3208_v18 = vshll.u32 %v8267_v63, 16  ;;  %v2343_v25 = vld [vmem:[#allocation2 + $0x20] sm:$0xff]  ;;  %v3891_v27 = vrot.slane %v3889_v11, 1 }
 0x176   : > { %v6870_v31 = vpop.f32.mrf.mxu0  ;;  %v6822_v35 = vpop.f32.mrf.mxu1  ;;  %v3884_v21 = vsel %vm3071_vm4, %v3879_v2, %v3883_v3 }
 0x177   : > { %2840 = vst.msk [vmem:[#allocation2] sm:$0xff] %vm172_vm1, %v2799_v26  ;;  %2313 = vst.msk [vmem:[#allocation2 + $0xa1] sm:$0xff] %vm172_vm1, %v2272_v30  ;;  %v3210_v34 = vrot.slane %v3208_v18, 1  ;;  %v3892_v50 = vsel %vm3071_vm4, %v3887_v32, %v3891_v27  ;;  %v1819_v18 = vld [vmem:[#allocation2 + $0xd9] sm:$0xff]  ;;  %v1820_v32 = vld [vmem:[#allocation2 + $0xe1] sm:$0xff] }
 0x178   : > { %v2636_v40 = vpop.f32.mrf.mxu0  ;;  %v2169_v43 = vpop.f32.mrf.mxu1 }
 0x179   : > { %v2800_v44 = vadd.f32 %v2636_v40, %v2340_v36  ;;  %v2273_v47 = vadd.f32 %v2169_v43, %v1813_v39  ;;  %v3895_v40 = vor.u32 %v3893_v4, %v3891_v27  ;;  %v3901_v43 = vshrl.u32 %v8272_v6, 16  ;;  %v8313_v6 = vld [vmem:[%s7446_s27 + $0x98] sm:$0xff]  }
 0x17a   : > { %v6871_v16 = vpop.f32.mrf.mxu0  ;;  %v6823_v51 = vpop.f32.mrf.mxu1  ;;  %v3211_v49 = vsel %vm3071_vm4, %v3206_v33, %v3210_v34  ;;  %v3220_v4 = vshrl.u32 %v8287_v22, 16  ;;  %v3224_v23 = vshll.u32 %v8313_v6, 16 }
 0x17b   : > { %2841 = vst.msk [vmem:[#allocation2 + $0x8] sm:$0xff] %vm172_vm1, %v2800_v44  ;;  %2314 = vst.msk [vmem:[#allocation2 + $0xa9] sm:$0xff] %vm172_vm1, %v2273_v47  ;;  %v3212_v44 = vshrl.u32 %v8267_v63, 16  ;;  %v1817_v47 = vld [vmem:[#allocation2 + $0xc9] sm:$0xff] }
 0x17c   : > { %v2641_v53 = vpop.f32.mrf.mxu0  ;;  %7061 = vmatmul.mubr.msk.bf16.gmra.mxu0 %vm407_vm0, %v3860_v46  ;;  %v2174_v61 = vpop.f32.mrf.mxu1  ;;  %7013 = vmatmul.mubr.msk.bf16.gmra.mxu1 %vm407_vm0, %v3195_v45  ;;  %v3216_v45 = vshll.u32 %v8287_v22, 16  ;;  %v3905_v46 = vshll.u32 %v7338_v28, 16 }
 0x17d   : > { %v2801_v62 = vadd.f32 %v2641_v53, %v2341_v52  ;;  %7064 = vmatprep.mubr.msk.bf16.mxu0 %vm407_vm0, %v3868_v48  ;;  %v2274_v0 = vadd.f32 %v2174_v61, %v1814_v60  ;;  %7016 = vmatprep.mubr.msk.bf16.mxu1 %vm7394_vm2, %v7393_v10  ;;  %v3900_v53 = vsel %vm3071_vm4, %v3895_v40, %v3899_v41  ;;  %v8335_v40 = vld [vmem:[%s7446_s27 + $0xa0] ss:$0 sps:$4 sm:$0x33]  }
 0x17e   : > { %v6874_v1 = vpop.f32.mrf.mxu0  ;;  %v6826_v9 = vpop.f32.mrf.mxu1  ;;  %v3903_v60 = vor.u32 %v3901_v43, %v3899_v41  ;;  %v3214_v61 = vor.u32 %v3212_v44, %v3210_v34  ;;  %v3907_v63 = vrot.slane %v3905_v46, 1  ;;  %v2348_v44 = vld [vmem:[#allocation2 + $0x48] sm:$0xff] }
 0x17f   : > { %2842 = vst.msk [vmem:[#allocation2 + $0x10] sm:$0xff] %vm172_vm1, %v2801_v62  ;;  %2315 = vst.msk [vmem:[#allocation2 + $0xb1] sm:$0xff] %vm172_vm1, %v2274_v0  ;;  %v3218_v62 = vrot.slane %v3216_v45, 1  ;;  %v7341_v0 = vld [vmem:[%s7446_s27 + $0x98] sm:$0xff]   ;;  %v1821_v46 = vld [vmem:[#allocation2 + $0xe9] sm:$0xff] }
 0x180   : > { %v2644_v58 = vpop.f32.mrf.mxu0  ;;  %v2177_v13 = vpop.f32.mrf.mxu1  ;;  %v1818_v1 = vld [vmem:[#allocation2 + $0xd1] sm:$0xff]  ;;  %v3908_v15 = vsel %vm3071_vm4, %v3903_v60, %v3907_v63  ;;  %v3921_v17 = vshll.u32 %v7341_v0, 16  ;;  %v3925_v27 = vshrl.u32 %v7341_v0, 16 }
 0x181   : > { %v2802_v14 = vadd.f32 %v2644_v58, %v2342_v7  ;;  %v2275_v19 = vadd.f32 %v2177_v13, %v1815_v12  ;;  %v3911_v58 = vor.u32 %v3909_v54, %v3907_v63  ;;  %v2346_v12 = vld [vmem:[#allocation2 + $0x38] sm:$0xff]  ;;  %v7349_v60 = vld [vmem:[%s7446_s27 + $0x10] sm:$0xff]  }
 0x182   : > { %v6875_v20 = vpop.f32.mrf.mxu0  ;;  %v6827_v24 = vpop.f32.mrf.mxu1  ;;  %v3923_v22 = vrot.slane %v3921_v17, 1  ;;  %v1822_v0 = vld [vmem:[#allocation2 + $0xf1] sm:$0xff] }
 0x183   : > { %2843 = vst.msk [vmem:[#allocation2 + $0x18] sm:$0xff] %vm172_vm1, %v2802_v14  ;;  %2316 = vst.msk [vmem:[#allocation2 + $0xb9] sm:$0xff] %vm172_vm1, %v2275_v19  ;;  %v3219_v14 = vsel %vm3071_vm4, %v3214_v61, %v3218_v62  ;;  %v2349_v61 = vld [vmem:[#allocation2 + $0x50] sm:$0xff] }
 0x184   : > { %v2649_v26 = vpop.f32.mrf.mxu0  ;;  %7065 = vmatmul.mubr.msk.bf16.gmra.mxu0 %vm407_vm0, %v3876_v8  ;;  %v2182_v30 = vpop.f32.mrf.mxu1  ;;  %7017 = vmatmul.mubr.msk.bf16.gmra.mxu1 %vm407_vm0, %v3203_v5  ;;  %v3915_v5 = vrot.slane %v3913_v55, 1  ;;  %v8318_v8 = vld [vmem:[%s7446_s27 + $0xa0] ss:$0 sps:$4 sm:$0x33]   ;;  %v7344_v55 = vld [vmem:[%s7446_s27 + $0x8] sm:$0xfe]  }
 0x185   : > { %v2803_v31 = vadd.f32 %v2649_v26, %v2343_v25  ;;  %7068 = vmatprep.mubr.msk.bf16.mxu0 %vm407_vm0, %v3884_v21  ;;  %v2276_v35 = vadd.f32 %v2182_v30, %v1816_v29  ;;  %7020 = vmatprep.mubr.msk.bf16.mxu1 %vm7394_vm2, %v7393_v10  ;;  %v3917_v21 = vshrl.u32 %v8295_v37, 16  ;;  %v3929_v28 = vshll.u32 %v8318_v8, 16  ;;  %v2347_v30 = vld [vmem:[#allocation2 + $0x40] sm:$0xff] }
 0x186   : > { %v6878_v36 = vpop.f32.mrf.mxu0  ;;  %v6830_v42 = vpop.f32.mrf.mxu1  ;;  %v3916_v26 = vsel %vm3071_vm4, %v3911_v58, %v3915_v5  ;;  %v3933_v63 = vshrl.u32 %v8318_v8, 16  ;;  %v4460_v58 = vrot.slane %v7344_v55, 1 }
 0x187   : > { %2844 = vst.msk [vmem:[#allocation2 + $0x20] sm:$0xff] %vm172_vm1, %v2803_v31  ;;  %2317 = vst.msk [vmem:[#allocation2 + $0xc1] sm:$0xff] %vm172_vm1, %v2276_v35  ;;  %v3919_v35 = vor.u32 %v3917_v21, %v3915_v5  ;;  %v3222_v36 = vor.u32 %v3220_v4, %v3218_v62  ;;  %v3226_v42 = vrot.slane %v3224_v23, 1  ;;  %v7346_v4 = vld [vmem:[%s7446_s27 + $0x18] sm:$0xff]  }
 0x188   : > { %v2652_v39 = vpop.f32.mrf.mxu0  ;;  %v2185_v16 = vpop.f32.mrf.mxu1 }
 0x189   : > { %v2804_v48 = vadd.f32 %v2652_v39, %v2344_v38  ;;  %v2277_v51 = vadd.f32 %v2185_v16, %v1817_v47  ;;  %v3927_v38 = vor.u32 %v3925_v27, %v3923_v22  ;;  %v3931_v39 = vrot.slane %v3929_v28, 1  ;;  %v8370_v27 = vld [vmem:[%s7446_s27 + $0x20] sm:$0xff]   ;;  %v7351_v28 = vld [vmem:[%s7446_s27 + $0x18] sm:$0xff]  }
 0x18a   : > { %v6879_v52 = vpop.f32.mrf.mxu0  ;;  %v6831_v56 = vpop.f32.mrf.mxu1 }
 0x18b   : > { %2845 = vst.msk [vmem:[#allocation2 + $0x28] sm:$0xff] %vm172_vm1, %v2804_v48  ;;  %2318 = vst.msk [vmem:[#allocation2 + $0xc9] sm:$0xff] %vm172_vm1, %v2277_v51  ;;  %v3924_v48 = vsel %vm3071_vm4, %v3919_v35, %v3923_v22  ;;  %v3932_v54 = vsel %vm3071_vm4, %v3927_v38, %v3931_v39  ;;  %v8348_v56 = vld [vmem:[%s7446_s27 + $0x10] sm:$0xff]   ;;  %v4463_v38 = vrot.slane %v7346_v4, 1 }
 0x18c   : > { %v2657_v57 = vpop.f32.mrf.mxu0  ;;  %7069 = vmatmul.mubr.msk.bf16.gmra.mxu0 %vm407_vm0, %v3892_v50  ;;  %v2190_v2 = vpop.f32.mrf.mxu1  ;;  %7021 = vmatmul.mubr.msk.bf16.gmra.mxu1 %vm407_vm0, %v3211_v49  ;;  %v3228_v49 = vshrl.u32 %v8313_v6, 16  ;;  %v3232_v50 = vshll.u32 %v8335_v40, 16  ;;  %v4461_v5 = vrot.slane %v8348_v56, 1  ;;  %v7350_v56 = vld [vmem:[%s7446_s27 + $0x28] sm:$0xff]  }
 0x18d   : > { %v2805_v3 = vadd.f32 %v2657_v57, %v2345_v59  ;;  %7072 = vmatprep.mubr.msk.bf16.mxu0 %vm407_vm0, %v3900_v53  ;;  %v2278_v9 = vadd.f32 %v2190_v2, %v1818_v1  ;;  %7024 = vmatprep.mubr.msk.bf16.mxu1 %vm7394_vm2, %v7393_v10  ;;  %v3227_v53 = vsel %vm3071_vm4, %v3222_v36, %v3226_v42  ;;  %v7348_v57 = vld [vmem:[%s7446_s27 + $0x8] sm:$0xfe]   ;;  %v1824_v36 = vld [vmem:[#allocation2 + $0x101] sm:$0xff] }
 0x18e   : > { %v6882_v7 = vpop.f32.mrf.mxu0  ;;  %v6834_v11 = vpop.f32.mrf.mxu1  ;;  %v8358_v6 = vrot.slane %v3232_v50, 1  ;;  %v4464_v55 = vsel %vm4459_vm8, %v4461_v5, %v4463_v38 }
 0x18f   : > { %2846 = vst.msk [vmem:[#allocation2 + $0x30] sm:$0xff] %vm172_vm1, %v2805_v3  ;;  %2319 = vst.msk [vmem:[#allocation2 + $0xd1] sm:$0xff] %vm172_vm1, %v2278_v9  ;;  %v3230_v3 = vor.u32 %v3228_v49, %v3226_v42  ;;  %v5024_v11 = vshrl.u32 %v7348_v57, 16  ;;  %v3236_v42 = vshrl.u32 %v8335_v40, 16  ;;  %v2352_v40 = vld [vmem:[#allocation2 + $0x68] sm:$0xff] }
 0x190   : > { %v2660_v13 = vpop.f32.mrf.mxu0  ;;  %v2193_v19 = vpop.f32.mrf.mxu1 }
 0x191   : > { %v2806_v20 = vadd.f32 %v2660_v13, %v2346_v12  ;;  %v2279_v24 = vadd.f32 %v2193_v19, %v1819_v18  ;;  %v5027_v12 = vshll.u32 %v7348_v57, 16  ;;  %v5032_v13 = vshrl.u32 %v7349_v60, 16  ;;  %v1823_v19 = vld [vmem:[#allocation2 + $0xf9] sm:$0xff] }
 0x192   : > { %v6883_v25 = vpop.f32.mrf.mxu0  ;;  %v6835_v29 = vpop.f32.mrf.mxu1  ;;  %v3935_v18 = vor.u32 %v3933_v63, %v3931_v39 }
 0x193   : > { %2847 = vst.msk [vmem:[#allocation2 + $0x38] sm:$0xff] %vm172_vm1, %v2806_v20  ;;  %2320 = vst.msk [vmem:[#allocation2 + $0xd9] sm:$0xff] %vm172_vm1, %v2279_v24  ;;  %v3235_v25 = vsel %vm3071_vm4, %v3230_v3, %v8358_v6  ;;  %v5034_v22 = vrot.slane %v5032_v13, 1 }
 0x194   : > { %v2665_v31 = vpop.f32.mrf.mxu0  ;;  %7073 = vmatmul.mubr.msk.bf16.gmra.mxu0 %vm407_vm0, %v3908_v15  ;;  %v2198_v33 = vpop.f32.mrf.mxu1  ;;  %7025 = vmatmul.mubr.msk.bf16.gmra.mxu1 %vm407_vm0, %v3219_v14  ;;  %v5035_v14 = vshll.u32 %v7349_v60, 16  ;;  %v2350_v15 = vld [vmem:[#allocation2 + $0x58] sm:$0xff] }
 0x195   : > { %v2807_v34 = vadd.f32 %v2665_v31, %v2347_v30  ;;  %7076 = vmatprep.mubr.msk.bf16.mxu0 %vm407_vm0, %v3916_v26  ;;  %v2280_v41 = vadd.f32 %v2198_v33, %v1820_v32  ;;  %7028 = vmatprep.mubr.msk.bf16.mxu1 %vm7394_vm2, %v7393_v10  ;;  %v4462_v26 = vsel %vm4459_vm8, %v4460_v58, %v4461_v5  ;;  %v5026_v30 = vrot.slane %v5024_v11, 1  ;;  %v7353_v33 = vld [vmem:[%s7446_s27 + $0x20] sm:$0xff]   ;;  %v1826_v5 = vld [vmem:[#allocation2 + $0x111] sm:$0xff] }
 0x196   : > { %v6886_v37 = vpop.f32.mrf.mxu0  ;;  %v6838_v43 = vpop.f32.mrf.mxu1  ;;  %v5029_v31 = vrot.slane %v5027_v12, 2  ;;  %v5037_v32 = vrot.slane %v5035_v14, 2  ;;  %v5050_v49 = vshrl.u32 %v7353_v33, 16  ;;  %v5053_v50 = vshll.u32 %v7353_v33, 16 }
 0x197   : > { %2848 = vst.msk [vmem:[#allocation2 + $0x40] sm:$0xff] %vm172_vm1, %v2807_v34  ;;  %2321 = vst.msk [vmem:[#allocation2 + $0xe1] sm:$0xff] %vm172_vm1, %v2280_v41  ;;  %v2351_v34 = vld [vmem:[#allocation2 + $0x60] sm:$0xff]  ;;  %v4467_v12 = vrot.slane %v7350_v56, 1 }
 0x198   : > { %v2668_v45 = vpop.f32.mrf.mxu0  ;;  %v2201_v47 = vpop.f32.mrf.mxu1  ;;  %v5052_v3 = vrot.slane %v5050_v49, 1 }
 0x199   : > { %v2808_v16 = vadd.f32 %v2668_v45, %v2348_v44  ;;  %v2281_v51 = vadd.f32 %v2201_v47, %v1821_v46  ;;  %v4465_v44 = vrot.slane %v8370_v27, 1  ;;  %v5041_v45 = vshrl.u32 %v7351_v28, 16 }
 0x19a   : > { %v6887_v52 = vpop.f32.mrf.mxu0  ;;  %v6839_v59 = vpop.f32.mrf.mxu1  ;;  %v5044_v46 = vshll.u32 %v7351_v28, 16 }
 0x19b   : > { %2849 = vst.msk [vmem:[#allocation2 + $0x48] sm:$0xff] %vm172_vm1, %v2808_v16  ;;  %2322 = vst.msk [vmem:[#allocation2 + $0xe9] sm:$0xff] %vm172_vm1, %v2281_v51  ;;  %v5030_v16 = vor.u32 %v5029_v31, %v5026_v30  ;;  %v7355_v59 = vld [vmem:[%s7446_s27 + $0x28] sm:$0xff]   ;;  %v7354_v30 = vld [vmem:[%s7446_s27 + $0x38] sm:$0xff]  }
 0x19c   : > { %v2673_v62 = vpop.f32.mrf.mxu0  ;;  %7077 = vmatmul.mubr.msk.bf16.gmra.mxu0 %vm407_vm0, %v3924_v48  ;;  %v2206_v1 = vpop.f32.mrf.mxu1  ;;  %7029 = vmatmul.mubr.msk.bf16.gmra.mxu1 %vm407_vm0, %v3227_v53  ;;  %v5038_v48 = vor.u32 %v5037_v32, %v5034_v22  ;;  %v5046_v63 = vrot.slane %v5044_v46, 2  ;;  %v5059_v13 = vshrl.u32 %v7355_v59, 16  ;;  %v5062_v14 = vshll.u32 %v7355_v59, 16  ;;  %v1828_v46 = vld [vmem:[#allocation2 + $0x121] sm:$0xff] }
 0x19d   : > { %v2809_v2 = vadd.f32 %v2673_v62, %v2349_v61  ;;  %7080 = vmatprep.mubr.msk.bf16.mxu0 %vm407_vm0, %v3932_v54  ;;  %v2282_v9 = vadd.f32 %v2206_v1, %v1822_v0  ;;  %7032 = vmatprep.mubr.msk.bf16.mxu1 %vm7394_vm2, %v7393_v10  ;;  %v3238_v54 = vor.u32 %v3236_v42, %v8358_v6  ;;  %v5043_v62 = vrot.slane %v5041_v45, 1  ;;  %v8391_v0 = vld [vmem:[%s7446_s27 + $0x30] sm:$0xff]   ;;  %v2356_v59 = vld [vmem:[#allocation2 + $0x88] sm:$0xff] }
 0x19e   : > { %v6890_v7 = vpop.f32.mrf.mxu0  ;;  %v6842_v8 = vpop.f32.mrf.mxu1  ;;  %v4466_v61 = vsel %vm4459_vm8, %v4463_v38, %v4465_v44  ;;  %v7357_v6 = vld [vmem:[%s7446_s27 + $0x30] sm:$0xff]   ;;  %v5061_v31 = vrot.slane %v5059_v13, 1  ;;  %v5064_v22 = vrot.slane %v5062_v14, 2 }
 0x19f   : > { %2850 = vst.msk [vmem:[#allocation2 + $0x50] sm:$0xff] %vm172_vm1, %v2809_v2  ;;  %2323 = vst.msk [vmem:[#allocation2 + $0xf1] sm:$0xff] %vm172_vm1, %v2282_v9  ;;  %v5039_v2 = vsel %vm5022_vm9, %v5030_v16, %v5038_v48  ;;  %v5055_v9 = vrot.slane %v5053_v50, 2  ;;  %v2353_v7 = vld [vmem:[#allocation2 + $0x70] sm:$0xff]  ;;  %v5068_v4 = vshrl.u32 %v7357_v6, 16 }
 0x1a0   : > { %v2676_v17 = vpop.f32.mrf.mxu0  ;;  %v2209_v20 = vpop.f32.mrf.mxu1  ;;  %v5065_v49 = vor.u32 %v5064_v22, %v5061_v31  ;;  %v7365_v14 = vld [vmem:[%s7446_s27 + $0x50] sm:$0xff]   ;;  %v2358_v22 = vld [vmem:[#allocation2 + $0x98] sm:$0xff] }
 0x1a1   : > { %v2810_v21 = vadd.f32 %v2676_v17, %v2350_v15  ;;  %v2283_v23 = vadd.f32 %v2209_v20, %v1823_v19  ;;  %v4469_v19 = vrot.slane %v8391_v0, 1  ;;  %v5070_v38 = vrot.slane %v5068_v4, 1 }
 0x1a2   : > { %v6891_v24 = vpop.f32.mrf.mxu0  ;;  %v6843_v29 = vpop.f32.mrf.mxu1  ;;  %v5107_v31 = vshll.u32 %v7365_v14, 16 }
 0x1a3   : > { %2851 = vst.msk [vmem:[#allocation2 + $0x58] sm:$0xff] %vm172_vm1, %v2810_v21  ;;  %2324 = vst.msk [vmem:[#allocation2 + $0xf9] sm:$0xff] %vm172_vm1, %v2283_v23  ;;  %v5056_v21 = vor.u32 %v5055_v9, %v5052_v3  ;;  %v5071_v23 = vshll.u32 %v7357_v6, 16  ;;  %v2354_v24 = vld [vmem:[#allocation2 + $0x78] sm:$0xff]  ;;  %v4468_v29 = vsel %vm4459_vm8, %v4465_v44, %v4467_v12  ;;  %v2355_v44 = vld [vmem:[#allocation2 + $0x80] sm:$0xff] }
 0x1a4   : > { %v2681_v35 = vpop.f32.mrf.mxu0  ;;  %7081 = vmatmul.mubr.msk.bf16.gmra.mxu0 %vm407_vm0, %v3935_v18  ;;  %v2214_v41 = vpop.f32.mrf.mxu1  ;;  %7033 = vmatmul.mubr.msk.bf16.gmra.mxu1 %vm407_vm0, %v3235_v25  ;;  %v5047_v18 = vor.u32 %v5046_v63, %v5043_v62 }
 0x1a5   : > { %v2811_v37 = vadd.f32 %v2681_v35, %v2351_v34  ;;  %7088 = vmatprep.mubr.msk.bf16.mxu0 %vm407_vm0, %v4462_v26  ;;  %v2284_v39 = vadd.f32 %v2214_v41, %v1824_v36  ;;  %7036 = vmatprep.mubr.msk.bf16.mxu1 %vm7394_vm2, %v7393_v10  ;;  %v1825_v10 = vld [vmem:[#allocation2 + $0x109] sm:$0xff]  ;;  %v1827_v26 = vld [vmem:[#allocation2 + $0x119] sm:$0xff]  ;;  %v4470_v35 = vsel %vm4459_vm8, %v4467_v12, %v4469_v19 }
 0x1a6   : > { %v6894_v43 = vpop.f32.mrf.mxu0  ;;  %v6846_v47 = vpop.f32.mrf.mxu1  ;;  %v5048_v34 = vsel %vm5022_vm9, %v5038_v48, %v5047_v18  ;;  %v8409_v36 = vld [vmem:[%s7446_s27 + $0x40] sm:$0xff]   ;;  %v7359_v41 = vld [vmem:[%s7446_s27 + $0x38] sm:$0xff]   ;;  %v5057_v42 = vsel %vm5022_vm9, %v5047_v18, %v5056_v21  ;;  %v4471_v48 = vrot.slane %v7354_v30, 1  ;;  %v5066_v0 = vsel %vm5022_vm9, %v5056_v21, %v5065_v49 }
 0x1a7   : > { %2852 = vst.msk [vmem:[#allocation2 + $0x60] sm:$0xff] %vm172_vm1, %v2811_v37  ;;  %2325 = vst.msk [vmem:[#allocation2 + $0x101] sm:$0xff] %vm172_vm1, %v2284_v39  ;;  %v5073_v39 = vrot.slane %v5071_v23, 2  ;;  %v7361_v43 = vld [vmem:[%s7446_s27 + $0x40] sm:$0xff]   ;;  %v1830_v18 = vld [vmem:[#allocation2 + $0x131] sm:$0xff]  ;;  %v5104_v30 = vshrl.u32 %v7365_v14, 16 }
 0x1a8   : > { %v2684_v51 = vpop.f32.mrf.mxu0  ;;  %v2217_v52 = vpop.f32.mrf.mxu1  ;;  %v5089_v56 = vshll.u32 %v7361_v43, 16  ;;  %v4472_v63 = vsel %vm4459_vm8, %v4469_v19, %v4471_v48 }
 0x1a9   : > { %v2812_v53 = vadd.f32 %v2684_v51, %v2352_v40  ;;  %v2285_v57 = vadd.f32 %v2217_v52, %v1825_v10  ;;  %v4473_v51 = vrot.slane %v8409_v36, 1  ;;  %v5077_v10 = vshrl.u32 %v7359_v41, 16 }
 0x1aa   : > { %v6895_v60 = vpop.f32.mrf.mxu0  ;;  %v6847_v1 = vpop.f32.mrf.mxu1  ;;  %v5080_v52 = vshll.u32 %v7359_v41, 16  ;;  %v5091_v13 = vrot.slane %v5089_v56, 2  ;;  %v7362_v41 = vld [vmem:[%s7446_s27 + $0x58] sm:$0xff]  }
 0x1ab   : > { %2853 = vst.msk [vmem:[#allocation2 + $0x68] sm:$0xff] %vm172_vm1, %v2812_v53  ;;  %2326 = vst.msk [vmem:[#allocation2 + $0x109] sm:$0xff] %vm172_vm1, %v2285_v57  ;;  %v1829_v60 = vld [vmem:[#allocation2 + $0x129] sm:$0xff]  ;;  %v4474_v6 = vsel %vm4459_vm8, %v4471_v48, %v4473_v51  ;;  %v5106_v48 = vrot.slane %v5104_v30, 1 }
 0x1ac   : > { %v2689_v58 = vpop.f32.mrf.mxu0  ;;  %7089 = vmatmul.mubr.msk.bf16.vlgmr.msra.gmra.mxu0 %vm407_vm0, %v4464_v55  ;;  %v2222_v8 = vpop.f32.mrf.mxu1  ;;  %7037 = vmatmul.mubr.msk.bf16.gmra.mxu1 %vm407_vm0, %v3238_v54  ;;  %v5074_v54 = vor.u32 %v5073_v39, %v5070_v38  ;;  %v5086_v55 = vshrl.u32 %v7361_v43, 16  ;;  %v7358_v1 = vld [vmem:[%s7446_s27 + $0x48] sm:$0xff]  }
 0x1ad   : > { %v2813_v11 = vadd.f32 %v2689_v58, %v2353_v7  ;;  %7092 = vmatprep.mubr.msk.bf16.mxu0 %vm407_vm0, %v4466_v61  ;;  %v2286_v15 = vadd.f32 %v2222_v8, %v1826_v5  ;;  %7132 = vmatprep.mubr.msk.bf16.mxu1 %vm407_vm0, %v5039_v2  ;;  %v7363_v2 = vld [vmem:[%s7446_s27 + $0x48] sm:$0xff]   ;;  %v5079_v7 = vrot.slane %v5077_v10, 1  ;;  %v5082_v58 = vrot.slane %v5080_v52, 2  ;;  %v8429_v5 = vld [vmem:[%s7446_s27 + $0x50] sm:$0xff]   ;;  %v1832_v10 = vld [vmem:[#allocation2 + $0x141] sm:$0x7] }
 0x1ae   : > { %v6898_v17 = vpop.f32.mrf.mxu0  ;;  %v6850_v20 = vpop.f32.mrf.mxu1  ;;  %v5088_v12 = vrot.slane %v5086_v55, 1  ;;  %v4475_v21 = vrot.slane %v7358_v1, 1  ;;  %v5095_v4 = vshrl.u32 %v7363_v2, 16  ;;  %v5098_v23 = vshll.u32 %v7363_v2, 16  ;;  %v2360_v2 = vld [vmem:[#allocation2 + $0xa8] sm:$0xff] }
 0x1af   : > { %2854 = vst.msk [vmem:[#allocation2 + $0x70] sm:$0xff] %vm172_vm1, %v2813_v11  ;;  %2327 = vst.msk [vmem:[#allocation2 + $0x111] sm:$0xff] %vm172_vm1, %v2286_v15  ;;  %v5075_v11 = vsel %vm5022_vm9, %v5065_v49, %v5074_v54  ;;  %v2357_v15 = vld [vmem:[#allocation2 + $0x90] sm:$0xff]  ;;  %v5109_v49 = vrot.slane %v5107_v31, 2 }
 0x1b0   : > { %v2692_v25 = vpop.f32.mrf.mxu0  ;;  %v2225_v27 = vpop.f32.mrf.mxu1  ;;  %v4476_v36 = vsel %vm4459_vm8, %v4473_v51, %v4475_v21 }
 0x1b1   : > { %v2814_v28 = vadd.f32 %v2692_v25, %v2354_v24  ;;  %v2287_v32 = vadd.f32 %v2225_v27, %v1827_v26  ;;  %v5083_v26 = vor.u32 %v5082_v58, %v5079_v7  ;;  %v4477_v27 = vrot.slane %v8429_v5, 1  ;;  %v7366_v58 = vld [vmem:[%s7446_s27 + $0x68] sm:$0xff]  }
 0x1b2   : > { %v6899_v33 = vpop.f32.mrf.mxu0  ;;  %v6851_v37 = vpop.f32.mrf.mxu1  ;;  %v7371_v5 = vld [vmem:[%s7446_s27 + $0x68] sm:$0xff]  }
 0x1b3   : > { %2855 = vst.msk [vmem:[#allocation2 + $0x78] sm:$0xff] %vm172_vm1, %v2814_v28  ;;  %2328 = vst.msk [vmem:[#allocation2 + $0x119] sm:$0xff] %vm172_vm1, %v2287_v32  ;;  %v1831_v33 = vld [vmem:[#allocation2 + $0x139] sm:$0xff]  ;;  %v5097_v37 = vrot.slane %v5095_v4, 1  ;;  %v5084_v43 = vsel %vm5022_vm9, %v5074_v54, %v5083_v26  ;;  %v4479_v54 = vrot.slane %v7362_v41, 1  ;;  %v2361_v4 = vld [vmem:[#allocation2 + $0xb0] sm:$0xff] }
 0x1b4   : > { %v2697_v45 = vpop.f32.mrf.mxu0  ;;  %7093 = vmatmul.mubr.msk.bf16.gmra.mxu0 %vm407_vm0, %v4468_v29  ;;  %v2230_v47 = vpop.f32.mrf.mxu1  ;;  %7133 = vmatmul.mubr.msk.bf16.vlgmr.msra.gmra.mxu1 %vm407_vm0, %v5048_v34  ;;  %v5092_v29 = vor.u32 %v5091_v13, %v5088_v12  ;;  %v2362_v41 = vld [vmem:[#allocation2 + $0xb8] sm:$0xff] }
 0x1b5   : > { %v2815_v16 = vadd.f32 %v2697_v45, %v2355_v44  ;;  %7096 = vmatprep.mubr.msk.bf16.mxu0 %vm407_vm0, %v4470_v35  ;;  %v2288_v50 = vadd.f32 %v2230_v47, %v1828_v46  ;;  %7136 = vmatprep.mubr.msk.bf16.mxu1 %vm407_vm0, %v5057_v42  ;;  %v5100_v42 = vrot.slane %v5098_v23, 2  ;;  %v4478_v44 = vsel %vm4459_vm8, %v4475_v21, %v4477_v27  ;;  %v8447_v45 = vld [vmem:[%s7446_s27 + $0x60] sm:$0xff]   ;;  %v7367_v46 = vld [vmem:[%s7446_s27 + $0x58] sm:$0xff]   ;;  %v7373_v21 = vld [vmem:[%s7446_s27 + $0x70] sm:$0xff]  }
 0x1b6   : > { %v6902_v40 = vpop.f32.mrf.mxu0  ;;  %v6854_v53 = vpop.f32.mrf.mxu1  ;;  %v4480_v7 = vsel %vm4459_vm8, %v4477_v27, %v4479_v54  ;;  %v4483_v27 = vrot.slane %v7366_v58, 1 }
 0x1b7   : > { %2856 = vst.msk [vmem:[#allocation2 + $0x80] sm:$0xff] %vm172_vm1, %v2815_v16  ;;  %2329 = vst.msk [vmem:[#allocation2 + $0x121] sm:$0xff] %vm172_vm1, %v2288_v50  ;;  %v5093_v16 = vsel %vm5022_vm9, %v5083_v26, %v5092_v29  ;;  %v7369_v50 = vld [vmem:[%s7446_s27 + $0x60] sm:$0xff]   ;;  %v5101_v55 = vor.u32 %v5100_v42, %v5097_v37 }
 0x1b8   : > { %v2700_v57 = vpop.f32.mrf.mxu0  ;;  %v2233_v61 = vpop.f32.mrf.mxu1  ;;  %v2359_v40 = vld [vmem:[#allocation2 + $0xa0] sm:$0xff]  ;;  %v5125_v1 = vshll.u32 %v7369_v50, 16 }
 0x1b9   : > { %v2816_v62 = vadd.f32 %v2700_v57, %v2356_v59  ;;  %v2289_v3 = vadd.f32 %v2233_v61, %v1829_v60  ;;  %v4481_v57 = vrot.slane %v8447_v45, 1  ;;  %v5113_v60 = vshrl.u32 %v7367_v46, 16 }
 0x1ba   : > { %v6903_v9 = vpop.f32.mrf.mxu0  ;;  %v6855_v8 = vpop.f32.mrf.mxu1  ;;  %v5116_v61 = vshll.u32 %v7367_v46, 16 }
 0x1bb   : > { %2857 = vst.msk [vmem:[#allocation2 + $0x88] sm:$0xff] %vm172_vm1, %v2816_v62  ;;  %2330 = vst.msk [vmem:[#allocation2 + $0x129] sm:$0xff] %vm172_vm1, %v2289_v3  ;;  %v4482_v12 = vsel %vm4459_vm8, %v4479_v54, %v4481_v57  ;;  %v5115_v13 = vrot.slane %v5113_v60, 1  ;;  %v7377_v54 = vld [vmem:[%s7446_s27 + $0x80] sm:$0xff]  }
 0x1bc   : > { %v2705_v17 = vpop.f32.mrf.mxu0  ;;  %7097 = vmatmul.mubr.msk.bf16.gmra.mxu0 %vm407_vm0, %v4472_v63  ;;  %v2238_v19 = vpop.f32.mrf.mxu1  ;;  %7137 = vmatmul.mubr.msk.bf16.gmra.mxu1 %vm407_vm0, %v5066_v0  ;;  %v5110_v63 = vor.u32 %v5109_v49, %v5106_v48  ;;  %v5122_v0 = vshrl.u32 %v7369_v50, 16  ;;  %v5118_v14 = vrot.slane %v5116_v61, 2  ;;  %v8484_v50 = vld [vmem:[%s7446_s27 + $0x80] sm:$0xff]   ;;  %v5161_v58 = vshll.u32 %v7377_v54, 16 }
 0x1bd   : > { %v2817_v20 = vadd.f32 %v2705_v17, %v2357_v15  ;;  %7100 = vmatprep.mubr.msk.bf16.mxu0 %vm407_vm0, %v4474_v6  ;;  %v2290_v24 = vadd.f32 %v2238_v19, %v1830_v18  ;;  %7140 = vmatprep.mubr.msk.bf16.mxu1 %vm407_vm0, %v5075_v11  ;;  %v5102_v11 = vsel %vm5022_vm9, %v5092_v29, %v5101_v55  ;;  %v8467_v15 = vld [vmem:[%s7446_s27 + $0x70] sm:$0xff]   ;;  %v5134_v29 = vshll.u32 %v7371_v5, 16 }
 0x1be   : > { %v6906_v25 = vpop.f32.mrf.mxu0  ;;  %v6858_v28 = vpop.f32.mrf.mxu1  ;;  %v5111_v18 = vsel %vm5022_vm9, %v5101_v55, %v5110_v63  ;;  %v5124_v19 = vrot.slane %v5122_v0, 1  ;;  %v2363_v55 = vld [vmem:[#allocation2 + $0xc0] sm:$0xff] }
 0x1bf   : > { %2858 = vst.msk [vmem:[#allocation2 + $0x90] sm:$0xff] %vm172_vm1, %v2817_v20  ;;  %2331 = vst.msk [vmem:[#allocation2 + $0x131] sm:$0xff] %vm172_vm1, %v2290_v24  ;;  %v5127_v20 = vrot.slane %v5125_v1, 2  ;;  %v2886_v25 = vld [vmem:[#allocation2] sm:$0xff]  ;;  %v5131_v28 = vshrl.u32 %v7371_v5, 16  ;;  %v5136_v46 = vrot.slane %v5134_v29, 2 }
 0x1c0   : > { %v2708_v32 = vpop.f32.mrf.mxu0  ;;  %v2241_v34 = vpop.f32.mrf.mxu1  ;;  %v4489_v1 = vrot.slane %v8484_v50, 1  ;;  %v2364_v5 = vld [vmem:[#allocation2 + $0xc8] sm:$0xff]  ;;  %v7381_v29 = vld [vmem:[%s7446_s27 + $0x90] sm:$0xff]  }
 0x1c1   : > { %v2818_v35 = vadd.f32 %v2708_v32, %v2358_v22  ;;  %v2291_v38 = vadd.f32 %v2241_v34, %v1831_v33  ;;  %v5119_v22 = vor.u32 %v5118_v14, %v5115_v13  ;;  %v4485_v32 = vrot.slane %v8467_v15, 1 }
 0x1c2   : > { %v6907_v39 = vpop.f32.mrf.mxu0  ;;  %v6859_v47 = vpop.f32.mrf.mxu1  ;;  %v5128_v34 = vor.u32 %v5127_v20, %v5124_v19  ;;  %v5133_v45 = vrot.slane %v5131_v28, 1  ;;  %v5163_v28 = vrot.slane %v5161_v58, 2 }
 0x1c3   : > { %2859 = vst.msk [vmem:[#allocation2 + $0x98] sm:$0xff] %vm172_vm1, %v2818_v35  ;;  %2332 = vst.msk [vmem:[#allocation2 + $0x139] sm:$0xff] %vm172_vm1, %v2291_v38  ;;  %v5140_v35 = vshrl.u32 %v7373_v21, 16  ;;  %v2887_v38 = vld [vmem:[#allocation2 + $0x8] sm:$0xff]  ;;  %v5120_v48 = vsel %vm5022_vm9, %v5110_v63, %v5119_v22  ;;  %v4486_v49 = vsel %vm4459_vm8, %v4483_v27, %v4485_v32 }
 0x1c4   : > { %v2713_v51 = vpop.f32.mrf.mxu0  ;;  %7101 = vmatmul.mubr.msk.bf16.gmra.mxu0 %vm407_vm0, %v4476_v36  ;;  %v2246_v52 = vpop.f32.mrf.mxu1  ;;  %7141 = vmatmul.mubr.msk.bf16.gmra.mxu1 %vm407_vm0, %v5084_v43  ;;  %v5143_v36 = vshll.u32 %v7373_v21, 16  ;;  %v4484_v43 = vsel %vm4459_vm8, %v4481_v57, %v4483_v27  ;;  %v2888_v57 = vld [vmem:[#allocation2 + $0x10] sm:$0xff] }
 0x1c5   : > { %v2819_v53 = vadd.f32 %v2713_v51, %v2359_v40  ;;  %7104 = vmatprep.mubr.msk.bf16.mxu0 %vm407_vm0, %v4478_v44  ;;  %v2292_v56 = vadd.f32 %v2246_v52, %v1832_v10  ;;  %7144 = vmatprep.mubr.msk.bf16.mxu1 %vm407_vm0, %v5093_v16  ;;  %v7370_v44 = vld [vmem:[%s7446_s27 + $0x78] sm:$0xff]   ;;  %v5129_v10 = vsel %vm5022_vm9, %v5119_v22, %v5128_v34  ;;  %v5142_v52 = vrot.slane %v5140_v35, 1 }
 0x1c6   : > { %v6910_v59 = vpop.f32.mrf.mxu0  ;;  %v6862_v62 = vpop.f32.mrf.mxu1  ;;  %v7375_v40 = vld [vmem:[%s7446_s27 + $0x78] sm:$0xff]   ;;  %v4487_v61 = vrot.slane %v7370_v44, 1  ;;  %v5176_v44 = vshrl.u32 %v7381_v29, 16 }
 0x1c7   : > { %2860 = vst.msk [vmem:[#allocation2 + $0xa0] sm:$0xff] %vm172_vm1, %v2819_v53  ;;  %v5145_v53 = vrot.slane %v5143_v36, 2  ;;  %v5137_v62 = vor.u32 %v5136_v46, %v5133_v45  ;;  %v5179_v45 = vshll.u32 %v7381_v29, 16  ;;  %v2366_v46 = vld [vmem:[#allocation2 + $0xd8] sm:$0xff] }
 0x1c8   : > { %2333 = vst.msk [vmem:[#allocation2 + $0x141] sm:$0x7] %vm1785_vm7, %v2292_v56  ;;  %v2716_v3 = vpop.f32.mrf.mxu0  ;;  %v2249_v9 = vpop.f32.mrf.mxu1  ;;  %v4488_v14 = vsel %vm4459_vm8, %v4485_v32, %v4487_v61  ;;  %v4490_v21 = vsel %vm4459_vm8, %v4487_v61, %v4489_v1  ;;  %v2890_v32 = vld [vmem:[#allocation2 + $0x20] sm:$0xff]  ;;  %v5178_v61 = vrot.slane %v5176_v44, 1  ;;  %v2370_v44 = vld [vmem:[#allocation2 + $0xf8] sm:$0xff] }
 0x1c9   : > { %v2820_v6 = vadd.f32 %v2716_v3, %v2360_v2  ;;  %v5149_v2 = vshrl.u32 %v7375_v40, 16  ;;  %v5152_v3 = vshll.u32 %v7375_v40, 16  ;;  %v5138_v15 = vsel %vm5022_vm9, %v5128_v34, %v5137_v62  ;;  %v7378_v40 = vld [vmem:[%s7446_s27 + $0x98] sm:$0xff]  }
 0x1ca   : > { %v6911_v8 = vpop.f32.mrf.mxu0  ;;  %v6863_v17 = vpop.f32.mrf.mxu1 }
 0x1cb   : > { %2861 = vst.msk [vmem:[#allocation2 + $0xa8] sm:$0xff] %vm172_vm1, %v2820_v6  ;;  %v5146_v6 = vor.u32 %v5145_v53, %v5142_v52  ;;  %v7374_v17 = vld [vmem:[%s7446_s27 + $0x88] sm:$0xff]  }
 0x1cc   : > { %v2721_v23 = vpop.f32.mrf.mxu0  ;;  %7105 = vmatmul.mubr.msk.bf16.gmra.mxu0 %vm407_vm0, %v4480_v7  ;;  %v3348_v26 = vpop.f32.mrf.mxu1  ;;  %7145 = vmatmul.mubr.msk.bf16.gmra.mxu1 %vm407_vm0, %v5102_v11  ;;  %v5158_v7 = vshrl.u32 %v7377_v54, 16  ;;  %v4491_v34 = vrot.slane %v7374_v17, 1 }
 0x1cd   : > { %v2821_v24 = vadd.f32 %v2721_v23, %v2361_v4  ;;  %7108 = vmatprep.mubr.msk.bf16.mxu0 %vm407_vm0, %v4482_v12  ;;  %v3514_v30 = vadd.f32 %v3348_v26, %v2886_v25  ;;  %7148 = vmatprep.mubr.msk.bf16.mxu1 %vm407_vm0, %v5111_v18  ;;  %v2889_v12 = vld [vmem:[#allocation2 + $0x18] sm:$0xff]  ;;  %v7379_v18 = vld [vmem:[%s7446_s27 + $0x88] sm:$0xff]   ;;  %v5151_v4 = vrot.slane %v5149_v2, 1  ;;  %v5154_v23 = vrot.slane %v5152_v3, 2  ;;  %v2892_v3 = vld [vmem:[#allocation2 + $0x30] sm:$0xff] }
 0x1ce   : > { %v6914_v31 = vpop.f32.mrf.mxu0  ;;  %v6958_v33 = vpop.f32.mrf.mxu1  ;;  %v5147_v26 = vsel %vm5022_vm9, %v5137_v62, %v5146_v6  ;;  %v5160_v27 = vrot.slane %v5158_v7, 1  ;;  %v5167_v35 = vshrl.u32 %v7379_v18, 16  ;;  %v5170_v36 = vshll.u32 %v7379_v18, 16  ;;  %v2368_v18 = vld [vmem:[#allocation2 + $0xe8] sm:$0xff] }
 0x1cf   : > { %2862 = vst.msk [vmem:[#allocation2 + $0xb0] sm:$0xff] %vm172_vm1, %v2821_v24  ;;  %3555 = vst.msk [vmem:[#allocation2] sm:$0xff] %vm172_vm1, %v3514_v30  ;;  %v8504_v24 = vld [vmem:[%s7446_s27 + $0x90] sm:$0xff]   ;;  %v4492_v50 = vsel %vm4459_vm8, %v4489_v1, %v4491_v34  ;;  %v5181_v62 = vrot.slane %v5179_v45, 2 }
 0x1d0   : > { %v2724_v37 = vpop.f32.mrf.mxu0  ;;  %v3351_v39 = vpop.f32.mrf.mxu1  ;;  %v2365_v30 = vld [vmem:[#allocation2 + $0xd0] sm:$0xff] }
 0x1d1   : > { %v2822_v42 = vadd.f32 %v2724_v37, %v2362_v41  ;;  %v3515_v47 = vadd.f32 %v3351_v39, %v2887_v38  ;;  %v4493_v38 = vrot.slane %v8504_v24, 1 }
 0x1d2   : > { %v6915_v16 = vpop.f32.mrf.mxu0  ;;  %v6959_v51 = vpop.f32.mrf.mxu1 }
 0x1d3   : > { %2863 = vst.msk [vmem:[#allocation2 + $0xb8] sm:$0xff] %vm172_vm1, %v2822_v42  ;;  %3556 = vst.msk [vmem:[#allocation2 + $0x8] sm:$0xff] %vm172_vm1, %v3515_v47  ;;  %v5155_v42 = vor.u32 %v5154_v23, %v5151_v4  ;;  %v5169_v51 = vrot.slane %v5167_v35, 1 }
 0x1d4   : > { %v2729_v56 = vpop.f32.mrf.mxu0  ;;  %7109 = vmatmul.mubr.msk.bf16.gmra.mxu0 %vm407_vm0, %v4484_v43  ;;  %v3356_v60 = vpop.f32.mrf.mxu1  ;;  %7149 = vmatmul.mubr.msk.bf16.gmra.mxu1 %vm407_vm0, %v5120_v48  ;;  %v5164_v43 = vor.u32 %v5163_v28, %v5160_v27  ;;  %v2891_v48 = vld [vmem:[#allocation2 + $0x28] sm:$0xff] }
 0x1d5   : > { %v2823_v59 = vadd.f32 %v2729_v56, %v2363_v55  ;;  %7112 = vmatprep.mubr.msk.bf16.mxu0 %vm407_vm0, %v4486_v49  ;;  %v3516_v63 = vadd.f32 %v3356_v60, %v2888_v57  ;;  %7152 = vmatprep.mubr.msk.bf16.mxu1 %vm407_vm0, %v5129_v10  ;;  %v5172_v10 = vrot.slane %v5170_v36, 2  ;;  %v5156_v54 = vsel %vm5022_vm9, %v5146_v6, %v5155_v42  ;;  %v8522_v56 = vld [vmem:[%s7446_s27 + $0xa0] ss:$0 sps:$4 sm:$0x33]  }
 0x1d6   : > { %v6918_v0 = vpop.f32.mrf.mxu0  ;;  %v6962_v9 = vpop.f32.mrf.mxu1  ;;  %v4494_v55 = vsel %vm4459_vm8, %v4491_v34, %v4493_v38  ;;  %v5165_v60 = vsel %vm5022_vm9, %v5155_v42, %v5164_v43  ;;  %v4495_v6 = vrot.slane %v7378_v40, 1  ;;  %v2894_v36 = vld [vmem:[#allocation2 + $0x40] sm:$0xff] }
 0x1d7   : > { %2864 = vst.msk [vmem:[#allocation2 + $0xc0] sm:$0xff] %vm172_vm1, %v2823_v59  ;;  %3557 = vst.msk [vmem:[#allocation2 + $0x10] sm:$0xff] %vm172_vm1, %v3516_v63  ;;  %v7382_v59 = vld [vmem:[%s7446_s27 + $0x98] sm:$0xff]   ;;  %v7383_v63 = vld [vmem:[%s7446_s27 + $0xa0] ss:$0 sps:$4 sm:$0x33]   ;;  %v5173_v7 = vor.u32 %v5172_v10, %v5169_v51 }
 0x1d8   : > { %v2732_v8 = vpop.f32.mrf.mxu0  ;;  %v3359_v13 = vpop.f32.mrf.mxu1  ;;  %v2367_v0 = vld [vmem:[#allocation2 + $0xe0] sm:$0xff]  ;;  %v5197_v17 = vshll.u32 %v7383_v63, 16  ;;  %v4496_v23 = vsel %vm4459_vm8, %v4493_v38, %v4495_v6 }
 0x1d9   : > { %v2824_v11 = vadd.f32 %v2732_v8, %v2364_v5  ;;  %v3517_v19 = vadd.f32 %v3359_v13, %v2889_v12  ;;  %v4497_v8 = vrot.slane %v8522_v56, 1  ;;  %v5188_v12 = vshll.u32 %v7382_v59, 16  ;;  %v2371_v10 = vld [vmem:[#allocation2 + $0x100] sm:$0xff] }
 0x1da   : > { %v6919_v20 = vpop.f32.mrf.mxu0  ;;  %v6963_v25 = vpop.f32.mrf.mxu1  ;;  %v5174_v24 = vsel %vm5022_vm9, %v5164_v43, %v5173_v7 }
 0x1db   : > { %2865 = vst.msk [vmem:[#allocation2 + $0xc8] sm:$0xff] %vm172_vm1, %v2824_v11  ;;  %3558 = vst.msk [vmem:[#allocation2 + $0x18] sm:$0xff] %vm172_vm1, %v3517_v19  ;;  %v5185_v11 = vshrl.u32 %v7382_v59, 16  ;;  %v4498_v27 = vsel %vm4459_vm8, %v4495_v6, %v4497_v8  ;;  %v5190_v29 = vrot.slane %v5188_v12, 2 }
 0x1dc   : > { %v2737_v31 = vpop.f32.mrf.mxu0  ;;  %7113 = vmatmul.mubr.msk.bf16.gmra.mxu0 %vm407_vm0, %v4488_v14  ;;  %v3364_v33 = vpop.f32.mrf.mxu1  ;;  %7153 = vmatmul.mubr.msk.bf16.gmra.mxu1 %vm407_vm0, %v5138_v15  ;;  %v5182_v14 = vor.u32 %v5181_v62, %v5178_v61  ;;  %v5194_v15 = vshrl.u32 %v7383_v63, 16  ;;  %v2897_v63 = vld [vmem:[#allocation2 + $0x58] sm:$0xff] }
 0x1dd   : > { %v2825_v22 = vadd.f32 %v2737_v31, %v2365_v30  ;;  %7116 = vmatprep.mubr.msk.bf16.mxu0 %vm407_vm0, %v4490_v21  ;;  %v3518_v41 = vadd.f32 %v3364_v33, %v2890_v32  ;;  %7156 = vmatprep.mubr.msk.bf16.mxu1 %vm407_vm0, %v5147_v26  ;;  %v2893_v21 = vld [vmem:[#allocation2 + $0x38] sm:$0xff]  ;;  %v5187_v28 = vrot.slane %v5185_v11, 1  ;;  %v5199_v32 = vrot.slane %v5197_v17, 2  ;;  %v2369_v33 = vld [vmem:[#allocation2 + $0xf0] sm:$0xff]  ;;  %v2899_v17 = vld [vmem:[#allocation2 + $0x68] sm:$0xff] }
 0x1de   : > { %v6922_v37 = vpop.f32.mrf.mxu0  ;;  %v6966_v39 = vpop.f32.mrf.mxu1  ;;  %v5183_v31 = vsel %vm5022_vm9, %v5173_v7, %v5182_v14 }
 0x1df   : > { %2866 = vst.msk [vmem:[#allocation2 + $0xd0] sm:$0xff] %vm172_vm1, %v2825_v22  ;;  %3559 = vst.msk [vmem:[#allocation2 + $0x20] sm:$0xff] %vm172_vm1, %v3518_v41  ;;  %v5196_v22 = vrot.slane %v5194_v15, 1  ;;  %v5191_v38 = vor.u32 %v5190_v29, %v5187_v28 }
 0x1e0   : > { %v2740_v47 = vpop.f32.mrf.mxu0  ;;  %v3367_v49 = vpop.f32.mrf.mxu1 }
 0x1e1   : > { %v2826_v16 = vadd.f32 %v2740_v47, %v2366_v46  ;;  %v3519_v52 = vadd.f32 %v3367_v49, %v2891_v48  ;;  %v5200_v43 = vor.u32 %v5199_v32, %v5196_v22  ;;  %v2895_v47 = vld [vmem:[#allocation2 + $0x48] sm:$0xff]  ;;  %v2901_v32 = vld [vmem:[#allocation2 + $0x78] sm:$0xff] }
 0x1e2   : > { %v6923_v53 = vpop.f32.mrf.mxu0  ;;  %v6967_v57 = vpop.f32.mrf.mxu1 }
 0x1e3   : > { %2867 = vst.msk [vmem:[#allocation2 + $0xd8] sm:$0xff] %vm172_vm1, %v2826_v16  ;;  %3560 = vst.msk [vmem:[#allocation2 + $0x28] sm:$0xff] %vm172_vm1, %v3519_v52  ;;  %v5201_v51 = vsel %vm5022_vm9, %v5191_v38, %v5200_v43 }
 0x1e4   : > { %v2745_v1 = vpop.f32.mrf.mxu0  ;;  %7117 = vmatmul.mubr.msk.bf16.gmra.mxu0 %vm407_vm0, %v4492_v50  ;;  %v3372_v9 = vpop.f32.mrf.mxu1  ;;  %7157 = vmatmul.mubr.msk.bf16.gmra.mxu1 %vm407_vm0, %v5156_v54  ;;  %v5192_v50 = vsel %vm5022_vm9, %v5182_v14, %v5191_v38  ;;  %v2896_v54 = vld [vmem:[#allocation2 + $0x50] sm:$0xff]  ;;  %v2902_v38 = vld [vmem:[#allocation2 + $0x80] sm:$0xff] }
 0x1e5   : > { %v2827_v2 = vadd.f32 %v2745_v1, %v2367_v0  ;;  %7120 = vmatprep.mubr.msk.bf16.mxu0 %vm407_vm0, %v4494_v55  ;;  %v3520_v58 = vadd.f32 %v3372_v9, %v2892_v3  ;;  %7160 = vmatprep.mubr.msk.bf16.mxu1 %vm407_vm0, %v5165_v60  ;;  %v2372_v60 = vld [vmem:[#allocation2 + $0x108] sm:$0xff]  ;;  %v2373_v9 = vld [vmem:[#allocation2 + $0x110] sm:$0xff] }
 0x1e6   : > { %v6926_v5 = vpop.f32.mrf.mxu0  ;;  %v6970_v13 = vpop.f32.mrf.mxu1 }
 0x1e7   : > { %2868 = vst.msk [vmem:[#allocation2 + $0xe0] sm:$0xff] %vm172_vm1, %v2827_v2  ;;  %3561 = vst.msk [vmem:[#allocation2 + $0x30] sm:$0xff] %vm172_vm1, %v3520_v58  ;;  %v2898_v58 = vld [vmem:[#allocation2 + $0x60] sm:$0xff]  ;;  %v2374_v13 = vld [vmem:[#allocation2 + $0x118] sm:$0xff] }
 0x1e8   : > { %v2748_v19 = vpop.f32.mrf.mxu0  ;;  %v3375_v4 = vpop.f32.mrf.mxu1 }
 0x1e9   : > { %v2828_v20 = vadd.f32 %v2748_v19, %v2368_v18  ;;  %v3521_v25 = vadd.f32 %v3375_v4, %v2893_v21  ;;  %v2375_v4 = vld [vmem:[#allocation2 + $0x120] sm:$0xff] }
 0x1ea   : > { %v6927_v26 = vpop.f32.mrf.mxu0  ;;  %v6971_v30 = vpop.f32.mrf.mxu1 }
 0x1eb   : > { %2869 = vst.msk [vmem:[#allocation2 + $0xe8] sm:$0xff] %vm172_vm1, %v2828_v20  ;;  %3562 = vst.msk [vmem:[#allocation2 + $0x38] sm:$0xff] %vm172_vm1, %v3521_v25  ;;  %v2900_v25 = vld [vmem:[#allocation2 + $0x70] sm:$0xff]  ;;  %v2376_v30 = vld [vmem:[#allocation2 + $0x128] sm:$0xff] }
 0x1ec   : > { %v2753_v34 = vpop.f32.mrf.mxu0  ;;  %7121 = vmatmul.mubr.msk.bf16.gmra.mxu0 %vm407_vm0, %v4496_v23  ;;  %v3380_v41 = vpop.f32.mrf.mxu1  ;;  %7161 = vmatmul.mubr.msk.bf16.gmra.mxu1 %vm407_vm0, %v5174_v24 }
 0x1ed   : > { %v2829_v35 = vadd.f32 %v2753_v34, %v2369_v33  ;;  %7124 = vmatprep.mubr.msk.bf16.mxu0 %vm407_vm0, %v4498_v27  ;;  %v3522_v37 = vadd.f32 %v3380_v41, %v2894_v36  ;;  %7164 = vmatprep.mubr.msk.bf16.mxu1 %vm407_vm0, %v5183_v31  ;;  %v2377_v41 = vld [vmem:[#allocation2 + $0x130] sm:$0xff] }
 0x1ee   : > { %v6930_v42 = vpop.f32.mrf.mxu0  ;;  %v6974_v39 = vpop.f32.mrf.mxu1 }
 0x1ef   : > { %2870 = vst.msk [vmem:[#allocation2 + $0xf0] sm:$0xff] %vm172_vm1, %v2829_v35  ;;  %3563 = vst.msk [vmem:[#allocation2 + $0x40] sm:$0xff] %vm172_vm1, %v3522_v37 }
 0x1f0   : > { %v2756_v45 = vpop.f32.mrf.mxu0  ;;  %v3383_v16 = vpop.f32.mrf.mxu1 }
 0x1f1   : > { %v2830_v46 = vadd.f32 %v2756_v45, %v2370_v44  ;;  %v3523_v48 = vadd.f32 %v3383_v16, %v2895_v47 }
 0x1f2   : > { %v6931_v49 = vpop.f32.mrf.mxu0  ;;  %v6975_v40 = vpop.f32.mrf.mxu1 }
 0x1f3   : > { %2871 = vst.msk [vmem:[#allocation2 + $0xf8] sm:$0xff] %vm172_vm1, %v2830_v46  ;;  %3564 = vst.msk [vmem:[#allocation2 + $0x48] sm:$0xff] %vm172_vm1, %v3523_v48  ;;  %v2378_v46 = vld [vmem:[#allocation2 + $0x138] sm:$0xff]  ;;  %v2903_v48 = vld [vmem:[#allocation2 + $0x88] sm:$0xff] }
 0x1f4   : > { %v2761_v52 = vpop.f32.mrf.mxu0  ;;  %7125 = vmatmul.mubr.msk.bf16.gmra.mxu0 %vm407_vm0, %v4497_v8  ;;  %v3388_v55 = vpop.f32.mrf.mxu1  ;;  %7165 = vmatmul.mubr.msk.bf16.gmra.mxu1 %vm407_vm0, %v5192_v50 }
 0x1f5   : > { %v2831_v53 = vadd.f32 %v2761_v52, %v2371_v10  ;;  %v3524_v56 = vadd.f32 %v3388_v55, %v2896_v54  ;;  %7168 = vmatprep.mubr.msk.bf16.mxu1 %vm407_vm0, %v5201_v51  ;;  %v2379_v10 = vld [vmem:[#allocation2 + $0x140] sm:$0xf]  ;;  %v2904_v54 = vld [vmem:[#allocation2 + $0x90] sm:$0xff] }
 0x1f6   : > { %v6934_v59 = vpop.f32.mrf.mxu0  ;;  %v6978_v57 = vpop.f32.mrf.mxu1 }
 0x1f7   : > { %2872 = vst.msk [vmem:[#allocation2 + $0x100] sm:$0xff] %vm172_vm1, %v2831_v53  ;;  %3565 = vst.msk [vmem:[#allocation2 + $0x50] sm:$0xff] %vm172_vm1, %v3524_v56 }
 0x1f8   : > { %v2764_v61 = vpop.f32.mrf.mxu0  ;;  %v3391_v0 = vpop.f32.mrf.mxu1 }
 0x1f9   : > { %v2832_v62 = vadd.f32 %v2764_v61, %v2372_v60  ;;  %v3525_v1 = vadd.f32 %v3391_v0, %v2897_v63  ;;  %v2905_v61 = vld [vmem:[#allocation2 + $0x98] sm:$0xff] }
 0x1fa   : > { %v6935_v2 = vpop.f32.mrf.mxu0  ;;  %v6979_v3 = vpop.f32.mrf.mxu1 }
 0x1fb   : > { %2873 = vst.msk [vmem:[#allocation2 + $0x108] sm:$0xff] %vm172_vm1, %v2832_v62  ;;  %3566 = vst.msk [vmem:[#allocation2 + $0x58] sm:$0xff] %vm172_vm1, %v3525_v1  ;;  %v3603_v2 = vld [vmem:[#allocation2 + $0x10] sm:$0xff] }
 0x1fc   : > { %v2769_v6 = vpop.f32.mrf.mxu0  ;;  %v3396_v5 = vpop.f32.mrf.mxu1  ;;  %7169 = vmatmul.mubr.msk.bf16.gmra.mxu1 %vm407_vm0, %v5196_v22 }
 0x1fd   : > { %v2833_v7 = vadd.f32 %v2769_v6, %v2373_v9  ;;  %v3526_v8 = vadd.f32 %v3396_v5, %v2898_v58  ;;  %v2906_v9 = vld [vmem:[#allocation2 + $0xa0] sm:$0xff] }
 0x1fe   : > { %v6938_v11 = vpop.f32.mrf.mxu0  ;;  %v6982_v12 = vpop.f32.mrf.mxu1  ;;  %v3601_v5 = vld [vmem:[#allocation2] sm:$0xff] }
 0x1ff   : > { %2874 = vst.msk [vmem:[#allocation2 + $0x110] sm:$0xff] %vm172_vm1, %v2833_v7  ;;  %3567 = vst.msk [vmem:[#allocation2 + $0x60] sm:$0xff] %vm172_vm1, %v3526_v8 }
 0x200   : > { %v2772_v14 = vpop.f32.mrf.mxu0  ;;  %v3399_v18 = vpop.f32.mrf.mxu1 }
 0x201   : > { %v2834_v15 = vadd.f32 %v2772_v14, %v2374_v13  ;;  %v3527_v19 = vadd.f32 %v3399_v18, %v2899_v17  ;;  %v3604_v13 = vld [vmem:[#allocation2 + $0x18] sm:$0xff] }
 0x202   : > { %v6939_v20 = vpop.f32.mrf.mxu0  ;;  %v6983_v21 = vpop.f32.mrf.mxu1 }
 0x203   : > { %2875 = vst.msk [vmem:[#allocation2 + $0x118] sm:$0xff] %vm172_vm1, %v2834_v15  ;;  %3568 = vst.msk [vmem:[#allocation2 + $0x68] sm:$0xff] %vm172_vm1, %v3527_v19  ;;  %v2907_v15 = vld [vmem:[#allocation2 + $0xa8] sm:$0xff] }
 0x204   : > { %v2777_v23 = vpop.f32.mrf.mxu0  ;;  %v3404_v26 = vpop.f32.mrf.mxu1  ;;  %v3602_v20 = vld [vmem:[#allocation2 + $0x8] sm:$0xff] }
 0x205   : > { %v2835_v24 = vadd.f32 %v2777_v23, %v2375_v4  ;;  %v3528_v27 = vadd.f32 %v3404_v26, %v2900_v25  ;;  %v2908_v26 = vld [vmem:[#allocation2 + $0xb0] sm:$0xff] }
 0x206   : > { %v6942_v28 = vpop.f32.mrf.mxu0  ;;  %v6986_v29 = vpop.f32.mrf.mxu1 }
 0x207   : > { %2876 = vst.msk [vmem:[#allocation2 + $0x120] sm:$0xff] %vm172_vm1, %v2835_v24  ;;  %3569 = vst.msk [vmem:[#allocation2 + $0x70] sm:$0xff] %vm172_vm1, %v3528_v27  ;;  %v3607_v24 = vld [vmem:[#allocation2 + $0x30] sm:$0xff] }
 0x208   : > { %v2780_v31 = vpop.f32.mrf.mxu0  ;;  %v3407_v33 = vpop.f32.mrf.mxu1 }
 0x209   : > { %v2836_v22 = vadd.f32 %v2780_v31, %v2376_v30  ;;  %v3529_v34 = vadd.f32 %v3407_v33, %v2901_v32  ;;  %v3605_v30 = vld [vmem:[#allocation2 + $0x20] sm:$0xff]  ;;  %v3608_v33 = vld [vmem:[#allocation2 + $0x38] sm:$0xff] }
 0x20a   : > { %v6943_v35 = vpop.f32.mrf.mxu0  ;;  %v6987_v36 = vpop.f32.mrf.mxu1 }
 0x20b   : > { %2877 = vst.msk [vmem:[#allocation2 + $0x128] sm:$0xff] %vm172_vm1, %v2836_v22  ;;  %3570 = vst.msk [vmem:[#allocation2 + $0x78] sm:$0xff] %vm172_vm1, %v3529_v34  ;;  %v2909_v35 = vld [vmem:[#allocation2 + $0xb8] sm:$0xff] }
 0x20c   : > { %v2785_v37 = vpop.f32.mrf.mxu0  ;;  %v3412_v39 = vpop.f32.mrf.mxu1 }
 0x20d   : > { %v2837_v42 = vadd.f32 %v2785_v37, %v2377_v41  ;;  %v3530_v43 = vadd.f32 %v3412_v39, %v2902_v38 }
 0x20e   : > { %v6946_v44 = vpop.f32.mrf.mxu0  ;;  %v6990_v45 = vpop.f32.mrf.mxu1 }
 0x20f   : > { %2878 = vst.msk [vmem:[#allocation2 + $0x130] sm:$0xff] %vm172_vm1, %v2837_v42  ;;  %3571 = vst.msk [vmem:[#allocation2 + $0x80] sm:$0xff] %vm172_vm1, %v3530_v43  ;;  %v3606_v42 = vld [vmem:[#allocation2 + $0x28] sm:$0xff]  ;;  %v3611_v44 = vld [vmem:[#allocation2 + $0x50] sm:$0xff] }
 0x210   : > { %v2788_v47 = vpop.f32.mrf.mxu0  ;;  %v3415_v49 = vpop.f32.mrf.mxu1 }
 0x211   : > { %v2838_v16 = vadd.f32 %v2788_v47, %v2378_v46  ;;  %v3531_v50 = vadd.f32 %v3415_v49, %v2903_v48  ;;  %v2910_v46 = vld [vmem:[#allocation2 + $0xc0] sm:$0xff] }
 0x212   : > { %v6947_v40 = vpop.f32.mrf.mxu0  ;;  %v6991_v51 = vpop.f32.mrf.mxu1  ;;  %v3609_v49 = vld [vmem:[#allocation2 + $0x40] sm:$0xff] }
 0x213   : > { %2879 = vst.msk [vmem:[#allocation2 + $0x138] sm:$0xff] %vm172_vm1, %v2838_v16  ;;  %3572 = vst.msk [vmem:[#allocation2 + $0x88] sm:$0xff] %vm172_vm1, %v3531_v50 }
 0x214   : > { %v2793_v52 = vpop.f32.mrf.mxu0  ;;  %v3420_v55 = vpop.f32.mrf.mxu1 }
 0x215   : > { %v2839_v53 = vadd.f32 %v2793_v52, %v2379_v10  ;;  %v3532_v56 = vadd.f32 %v3420_v55, %v2904_v54  ;;  %v3612_v10 = vld [vmem:[#allocation2 + $0x58] sm:$0xff] }
 0x216   : > { %v6950_v59 = vpop.f32.mrf.mxu0  ;;  %v6994_v57 = vpop.f32.mrf.mxu1 }
 0x217   : > { %2880 = vst.msk [vmem:[#allocation2 + $0x140] sm:$0xf] %vm213_vm3, %v2839_v53  ;;  %v2911_v53 = vld [vmem:[#allocation2 + $0xc8] sm:$0xff] }
 0x218   : > { %3573 = vst.msk [vmem:[#allocation2 + $0x90] sm:$0xff] %vm172_vm1, %v3532_v56  ;;  %v2796_v60 = vpop.f32.mrf.mxu0  ;;  %v3423_v62 = vpop.f32.mrf.mxu1  ;;  %v3610_v59 = vld [vmem:[#allocation2 + $0x48] sm:$0xff] }
 0x219   : > { %v3533_v63 = vadd.f32 %v3423_v62, %v2905_v61  ;;  %v3615_v62 = vld [vmem:[#allocation2 + $0x70] sm:$0xff] }
 0x21a   : > { %v6951_v0 = vpop.f32.mrf.mxu0  ;;  %v6995_v1 = vpop.f32.mrf.mxu1 }
 0x21b   : > { %3574 = vst.msk [vmem:[#allocation2 + $0x98] sm:$0xff] %vm172_vm1, %v3533_v63  ;;  %v2912_v0 = vld [vmem:[#allocation2 + $0xd0] sm:$0xff] }
 0x21c   : > { %v7046_v3 = vpop.f32.mrf.mxu0  ;;  %v3428_v6 = vpop.f32.mrf.mxu1 }
 0x21d   : > { %v4202_v7 = vadd.f32 %v7046_v3, %v3603_v2  ;;  %v3534_v58 = vadd.f32 %v3428_v6, %v2906_v9  ;;  %v3613_v9 = vld [vmem:[#allocation2 + $0x60] sm:$0xff] }
 0x21e   : > { %v4042_v8 = vpop.f32.mrf.mxu0  ;;  %v6998_v11 = vpop.f32.mrf.mxu1 }
 0x21f   : > { %4241 = vst.msk [vmem:[#allocation2 + $0x10] sm:$0xff] %vm172_vm1, %v4202_v7  ;;  %v4200_v12 = vadd.f32 %v4042_v8, %v3601_v5  ;;  %3575 = vst.msk [vmem:[#allocation2 + $0xa0] sm:$0xff] %vm172_vm1, %v3534_v58  ;;  %v3616_v5 = vld [vmem:[#allocation2 + $0x78] sm:$0xff] }
 0x220   : > { %v7047_v14 = vpop.f32.mrf.mxu0  ;;  %v3431_v17 = vpop.f32.mrf.mxu1  ;;  %v2913_v11 = vld [vmem:[#allocation2 + $0xd8] sm:$0xff] }
 0x221   : > { %4239 = vst.msk [vmem:[#allocation2] sm:$0xff] %vm172_vm1, %v4200_v12  ;;  %v4203_v18 = vadd.f32 %v7047_v14, %v3604_v13  ;;  %v3535_v19 = vadd.f32 %v3431_v17, %v2907_v15  ;;  %v3614_v15 = vld [vmem:[#allocation2 + $0x68] sm:$0xff] }
 0x222   : > { %v4045_v21 = vpop.f32.mrf.mxu0  ;;  %v6999_v4 = vpop.f32.mrf.mxu1 }
 0x223   : > { %4242 = vst.msk [vmem:[#allocation2 + $0x18] sm:$0xff] %vm172_vm1, %v4203_v18  ;;  %v4201_v23 = vadd.f32 %v4045_v21, %v3602_v20  ;;  %3576 = vst.msk [vmem:[#allocation2 + $0xa8] sm:$0xff] %vm172_vm1, %v3535_v19  ;;  %v3619_v20 = vld [vmem:[#allocation2 + $0x90] sm:$0xff]  ;;  %v2914_v4 = vld [vmem:[#allocation2 + $0xe0] sm:$0xff] }
 0x224   : > { %v7050_v25 = vpop.f32.mrf.mxu0  ;;  %v3436_v27 = vpop.f32.mrf.mxu1 }
 0x225   : > { %4240 = vst.msk [vmem:[#allocation2 + $0x8] sm:$0xff] %vm172_vm1, %v4201_v23  ;;  %v4206_v28 = vadd.f32 %v7050_v25, %v3607_v24  ;;  %v3536_v29 = vadd.f32 %v3436_v27, %v2908_v26  ;;  %v3617_v26 = vld [vmem:[#allocation2 + $0x80] sm:$0xff] }
 0x226   : > { %v4058_v31 = vpop.f32.mrf.mxu0  ;;  %v7002_v22 = vpop.f32.mrf.mxu1 }
 0x227   : > { %4245 = vst.msk [vmem:[#allocation2 + $0x30] sm:$0xff] %vm172_vm1, %v4206_v28  ;;  %v4204_v32 = vadd.f32 %v4058_v31, %v3605_v30  ;;  %3577 = vst.msk [vmem:[#allocation2 + $0xb0] sm:$0xff] %vm172_vm1, %v3536_v29  ;;  %v3620_v30 = vld [vmem:[#allocation2 + $0x98] sm:$0xff]  ;;  %v2915_v22 = vld [vmem:[#allocation2 + $0xe8] sm:$0xff] }
 0x228   : > { %v7051_v34 = vpop.f32.mrf.mxu0  ;;  %v3439_v36 = vpop.f32.mrf.mxu1 }
 0x229   : > { %4243 = vst.msk [vmem:[#allocation2 + $0x20] sm:$0xff] %vm172_vm1, %v4204_v32  ;;  %v4207_v41 = vadd.f32 %v7051_v34, %v3608_v33  ;;  %v3537_v37 = vadd.f32 %v3439_v36, %v2909_v35  ;;  %v3618_v35 = vld [vmem:[#allocation2 + $0x88] sm:$0xff] }
 0x22a   : > { %v4061_v38 = vpop.f32.mrf.mxu0  ;;  %v7003_v39 = vpop.f32.mrf.mxu1 }
 0x22b   : > { %4246 = vst.msk [vmem:[#allocation2 + $0x38] sm:$0xff] %vm172_vm1, %v4207_v41  ;;  %v4205_v43 = vadd.f32 %v4061_v38, %v3606_v42  ;;  %3578 = vst.msk [vmem:[#allocation2 + $0xb8] sm:$0xff] %vm172_vm1, %v3537_v37  ;;  %v2916_v39 = vld [vmem:[#allocation2 + $0xf0] sm:$0xff] }
 0x22c   : > { %v7054_v45 = vpop.f32.mrf.mxu0  ;;  %v3444_v47 = vpop.f32.mrf.mxu1 }
 0x22d   : > { %4244 = vst.msk [vmem:[#allocation2 + $0x28] sm:$0xff] %vm172_vm1, %v4205_v43  ;;  %v4210_v16 = vadd.f32 %v7054_v45, %v3611_v44  ;;  %v3538_v48 = vadd.f32 %v3444_v47, %v2910_v46  ;;  %v3621_v46 = vld [vmem:[#allocation2 + $0xa0] sm:$0xff] }
 0x22e   : > { %v4074_v50 = vpop.f32.mrf.mxu0  ;;  %v7006_v40 = vpop.f32.mrf.mxu1  ;;  %v3623_v42 = vld [vmem:[#allocation2 + $0xb0] sm:$0xff] }
 0x22f   : > { %4249 = vst.msk [vmem:[#allocation2 + $0x50] sm:$0xff] %vm172_vm1, %v4210_v16  ;;  %v4208_v51 = vadd.f32 %v4074_v50, %v3609_v49  ;;  %3579 = vst.msk [vmem:[#allocation2 + $0xc0] sm:$0xff] %vm172_vm1, %v3538_v48  ;;  %v2917_v40 = vld [vmem:[#allocation2 + $0xf8] sm:$0xff] }
 0x230   : > { %v7055_v52 = vpop.f32.mrf.mxu0  ;;  %v3447_v54 = vpop.f32.mrf.mxu1 }
 0x231   : > { %4247 = vst.msk [vmem:[#allocation2 + $0x40] sm:$0xff] %vm172_vm1, %v4208_v51  ;;  %v4211_v55 = vadd.f32 %v7055_v52, %v3612_v10  ;;  %v3539_v56 = vadd.f32 %v3447_v54, %v2911_v53  ;;  %v3622_v53 = vld [vmem:[#allocation2 + $0xa8] sm:$0xff] }
 0x232   : > { %v4077_v57 = vpop.f32.mrf.mxu0  ;;  %v7007_v60 = vpop.f32.mrf.mxu1  ;;  %v3624_v49 = vld [vmem:[#allocation2 + $0xb8] sm:$0xff] }
 0x233   : > { %4250 = vst.msk [vmem:[#allocation2 + $0x58] sm:$0xff] %vm172_vm1, %v4211_v55  ;;  %v4209_v61 = vadd.f32 %v4077_v57, %v3610_v59  ;;  %3580 = vst.msk [vmem:[#allocation2 + $0xc8] sm:$0xff] %vm172_vm1, %v3539_v56  ;;  %v2918_v60 = vld [vmem:[#allocation2 + $0x100] sm:$0xff] }
 0x234   : > { %v7058_v63 = vpop.f32.mrf.mxu0  ;;  %v3452_v1 = vpop.f32.mrf.mxu1 }
 0x235   : > { %4248 = vst.msk [vmem:[#allocation2 + $0x48] sm:$0xff] %vm172_vm1, %v4209_v61  ;;  %v4214_v2 = vadd.f32 %v7058_v63, %v3615_v62  ;;  %v3540_v3 = vadd.f32 %v3452_v1, %v2912_v0 }
 0x236   : > { %v4090_v6 = vpop.f32.mrf.mxu0  ;;  %v7010_v7 = vpop.f32.mrf.mxu1  ;;  %v3625_v0 = vld [vmem:[#allocation2 + $0xc0] sm:$0xff] }
 0x237   : > { %4253 = vst.msk [vmem:[#allocation2 + $0x70] sm:$0xff] %vm172_vm1, %v4214_v2  ;;  %v4212_v58 = vadd.f32 %v4090_v6, %v3613_v9  ;;  %3581 = vst.msk [vmem:[#allocation2 + $0xd0] sm:$0xff] %vm172_vm1, %v3540_v3  ;;  %v2919_v7 = vld [vmem:[#allocation2 + $0x108] sm:$0xff] }
 0x238   : > { %v7059_v8 = vpop.f32.mrf.mxu0  ;;  %v3455_v12 = vpop.f32.mrf.mxu1 }
 0x239   : > { %4251 = vst.msk [vmem:[#allocation2 + $0x60] sm:$0xff] %vm172_vm1, %v4212_v58  ;;  %v4215_v13 = vadd.f32 %v7059_v8, %v3616_v5  ;;  %v3541_v14 = vadd.f32 %v3455_v12, %v2913_v11 }
 0x23a   : > { %v4093_v17 = vpop.f32.mrf.mxu0  ;;  %v7011_v18 = vpop.f32.mrf.mxu1  ;;  %v3626_v11 = vld [vmem:[#allocation2 + $0xc8] sm:$0xff] }
 0x23b   : > { %4254 = vst.msk [vmem:[#allocation2 + $0x78] sm:$0xff] %vm172_vm1, %v4215_v13  ;;  %v4213_v19 = vadd.f32 %v4093_v17, %v3614_v15  ;;  %3582 = vst.msk [vmem:[#allocation2 + $0xd8] sm:$0xff] %vm172_vm1, %v3541_v14  ;;  %v2920_v18 = vld [vmem:[#allocation2 + $0x110] sm:$0xff] }
 0x23c   : > { %v7062_v21 = vpop.f32.mrf.mxu0  ;;  %v3460_v23 = vpop.f32.mrf.mxu1 }
 0x23d   : > { %4252 = vst.msk [vmem:[#allocation2 + $0x68] sm:$0xff] %vm172_vm1, %v4213_v19  ;;  %v4218_v24 = vadd.f32 %v7062_v21, %v3619_v20  ;;  %v3542_v25 = vadd.f32 %v3460_v23, %v2914_v4 }
 0x23e   : > { %v4106_v27 = vpop.f32.mrf.mxu0  ;;  %v7014_v28 = vpop.f32.mrf.mxu1  ;;  %v3627_v59 = vld [vmem:[#allocation2 + $0xd0] sm:$0xff] }
 0x23f   : > { %4257 = vst.msk [vmem:[#allocation2 + $0x90] sm:$0xff] %vm172_vm1, %v4218_v24  ;;  %v4216_v29 = vadd.f32 %v4106_v27, %v3617_v26  ;;  %3583 = vst.msk [vmem:[#allocation2 + $0xe0] sm:$0xff] %vm172_vm1, %v3542_v25  ;;  %v2921_v28 = vld [vmem:[#allocation2 + $0x118] sm:$0xff] }
 0x240   : > { %v7063_v31 = vpop.f32.mrf.mxu0  ;;  %v3463_v32 = vpop.f32.mrf.mxu1 }
 0x241   : > { %4255 = vst.msk [vmem:[#allocation2 + $0x80] sm:$0xff] %vm172_vm1, %v4216_v29  ;;  %v4219_v33 = vadd.f32 %v7063_v31, %v3620_v30  ;;  %v3543_v34 = vadd.f32 %v3463_v32, %v2915_v22 }
 0x242   : > { %v4109_v36 = vpop.f32.mrf.mxu0  ;;  %v7015_v41 = vpop.f32.mrf.mxu1  ;;  %v3628_v9 = vld [vmem:[#allocation2 + $0xd8] sm:$0xff] }
 0x243   : > { %4258 = vst.msk [vmem:[#allocation2 + $0x98] sm:$0xff] %vm172_vm1, %v4219_v33  ;;  %v4217_v37 = vadd.f32 %v4109_v36, %v3618_v35  ;;  %3584 = vst.msk [vmem:[#allocation2 + $0xe8] sm:$0xff] %vm172_vm1, %v3543_v34  ;;  %v2922_v36 = vld [vmem:[#allocation2 + $0x120] sm:$0xff] }
 0x244   : > { %v7066_v38 = vpop.f32.mrf.mxu0  ;;  %v3468_v43 = vpop.f32.mrf.mxu1 }
 0x245   : > { %4256 = vst.msk [vmem:[#allocation2 + $0x88] sm:$0xff] %vm172_vm1, %v4217_v37  ;;  %v4222_v44 = vadd.f32 %v7066_v38, %v3623_v42  ;;  %v3544_v45 = vadd.f32 %v3468_v43, %v2916_v39 }
 0x246   : > { %v4122_v47 = vpop.f32.mrf.mxu0  ;;  %v7018_v16 = vpop.f32.mrf.mxu1  ;;  %v3629_v4 = vld [vmem:[#allocation2 + $0xe0] sm:$0xff] }
 0x247   : > { %4261 = vst.msk [vmem:[#allocation2 + $0xb0] sm:$0xff] %vm172_vm1, %v4222_v44  ;;  %v4220_v48 = vadd.f32 %v4122_v47, %v3621_v46  ;;  %3585 = vst.msk [vmem:[#allocation2 + $0xf0] sm:$0xff] %vm172_vm1, %v3544_v45  ;;  %v2923_v47 = vld [vmem:[#allocation2 + $0x128] sm:$0xff] }
 0x248   : > { %v7067_v50 = vpop.f32.mrf.mxu0  ;;  %v3471_v51 = vpop.f32.mrf.mxu1 }
 0x249   : > { %4259 = vst.msk [vmem:[#allocation2 + $0xa0] sm:$0xff] %vm172_vm1, %v4220_v48  ;;  %v4223_v10 = vadd.f32 %v7067_v50, %v3624_v49  ;;  %v3545_v52 = vadd.f32 %v3471_v51, %v2917_v40 }
 0x24a   : > { %v4125_v54 = vpop.f32.mrf.mxu0  ;;  %v7019_v55 = vpop.f32.mrf.mxu1  ;;  %v3630_v22 = vld [vmem:[#allocation2 + $0xe8] sm:$0xff] }
 0x24b   : > { %4262 = vst.msk [vmem:[#allocation2 + $0xb8] sm:$0xff] %vm172_vm1, %v4223_v10  ;;  %v4221_v56 = vadd.f32 %v4125_v54, %v3622_v53  ;;  %3586 = vst.msk [vmem:[#allocation2 + $0xf8] sm:$0xff] %vm172_vm1, %v3545_v52  ;;  %v2924_v54 = vld [vmem:[#allocation2 + $0x130] sm:$0xff] }
 0x24c   : > { %v7070_v57 = vpop.f32.mrf.mxu0  ;;  %v3476_v61 = vpop.f32.mrf.mxu1 }
 0x24d   : > { %4260 = vst.msk [vmem:[#allocation2 + $0xa8] sm:$0xff] %vm172_vm1, %v4221_v56  ;;  %v4226_v62 = vadd.f32 %v7070_v57, %v3627_v59  ;;  %v3546_v63 = vadd.f32 %v3476_v61, %v2918_v60 }
 0x24e   : > { %v4138_v1 = vpop.f32.mrf.mxu0  ;;  %v7022_v2 = vpop.f32.mrf.mxu1  ;;  %v3631_v15 = vld [vmem:[#allocation2 + $0xf0] sm:$0xff] }
 0x24f   : > { %4265 = vst.msk [vmem:[#allocation2 + $0xd0] sm:$0xff] %vm172_vm1, %v4226_v62  ;;  %v4224_v3 = vadd.f32 %v4138_v1, %v3625_v0  ;;  %3587 = vst.msk [vmem:[#allocation2 + $0x100] sm:$0xff] %vm172_vm1, %v3546_v63  ;;  %v2925_v63 = vld [vmem:[#allocation2 + $0x138] sm:$0xff] }
 0x250   : > { %v7071_v6 = vpop.f32.mrf.mxu0  ;;  %v3479_v58 = vpop.f32.mrf.mxu1 }
 0x251   : > { %4263 = vst.msk [vmem:[#allocation2 + $0xc0] sm:$0xff] %vm172_vm1, %v4224_v3  ;;  %v4227_v5 = vadd.f32 %v7071_v6, %v3628_v9  ;;  %v3547_v8 = vadd.f32 %v3479_v58, %v2919_v7  ;;  %v4285_v7 = vld [vmem:[#allocation2 + $0x10] sm:$0xff] }
 0x252   : > { %v4141_v12 = vpop.f32.mrf.mxu0  ;;  %v7023_v13 = vpop.f32.mrf.mxu1  ;;  %v3632_v26 = vld [vmem:[#allocation2 + $0xf8] sm:$0xff] }
 0x253   : > { %4266 = vst.msk [vmem:[#allocation2 + $0xd8] sm:$0xff] %vm172_vm1, %v4227_v5  ;;  %v4225_v14 = vadd.f32 %v4141_v12, %v3626_v11  ;;  %3588 = vst.msk [vmem:[#allocation2 + $0x108] sm:$0xff] %vm172_vm1, %v3547_v8  ;;  %v2926_v5 = vld [vmem:[#allocation2 + $0x140] sm:$0x7] }
 0x254   : > { %v7074_v17 = vpop.f32.mrf.mxu0  ;;  %v3484_v19 = vpop.f32.mrf.mxu1  ;;  %v4283_v13 = vld [vmem:[#allocation2] sm:$0xff] }
 0x255   : > { %4264 = vst.msk [vmem:[#allocation2 + $0xc8] sm:$0xff] %vm172_vm1, %v4225_v14  ;;  %v4230_v20 = vadd.f32 %v7074_v17, %v3631_v15  ;;  %v3548_v21 = vadd.f32 %v3484_v19, %v2920_v18 }
 0x256   : > { %v4154_v23 = vpop.f32.mrf.mxu0  ;;  %v7026_v24 = vpop.f32.mrf.mxu1  ;;  %v3633_v42 = vld [vmem:[#allocation2 + $0x100] sm:$0xff] }
 0x257   : > { %4269 = vst.msk [vmem:[#allocation2 + $0xf0] sm:$0xff] %vm172_vm1, %v4230_v20  ;;  %v4228_v25 = vadd.f32 %v4154_v23, %v3629_v4  ;;  %3589 = vst.msk [vmem:[#allocation2 + $0x110] sm:$0xff] %vm172_vm1, %v3548_v21  ;;  %v4286_v20 = vld [vmem:[#allocation2 + $0x18] sm:$0xff]  ;;  %v8638_v4 = vld [vmem:[%s8853_s2] ss:$0 sm:$0xff] }
 0x258   : > { %v7075_v27 = vpop.f32.mrf.mxu0  ;;  %v3487_v29 = vpop.f32.mrf.mxu1 }
 0x259   : > { %4267 = vst.msk [vmem:[#allocation2 + $0xe0] sm:$0xff] %vm172_vm1, %v4228_v25  ;;  %v4231_v30 = vadd.f32 %v7075_v27, %v3632_v26  ;;  %v3549_v31 = vadd.f32 %v3487_v29, %v2921_v28  ;;  %v4284_v25 = vld [vmem:[#allocation2 + $0x8] sm:$0xff] }
 0x25a   : > { %v4157_v32 = vpop.f32.mrf.mxu0  ;;  %v7027_v33 = vpop.f32.mrf.mxu1  ;;  %v3634_v49 = vld [vmem:[#allocation2 + $0x108] sm:$0xff] }
 0x25b   : > { %4270 = vst.msk [vmem:[#allocation2 + $0xf8] sm:$0xff] %vm172_vm1, %v4231_v30  ;;  %v4229_v34 = vadd.f32 %v4157_v32, %v3630_v22  ;;  %3590 = vst.msk [vmem:[#allocation2 + $0x118] sm:$0xff] %vm172_vm1, %v3549_v31  ;;  %v4289_v31 = vld [vmem:[#allocation2 + $0x30] sm:$0xff] }
 0x25c   : > { %v7078_v35 = vpop.f32.mrf.mxu0  ;;  %v3492_v41 = vpop.f32.mrf.mxu1 }
 0x25d   : > { %4268 = vst.msk [vmem:[#allocation2 + $0xe8] sm:$0xff] %vm172_vm1, %v4229_v34  ;;  %v3550_v37 = vadd.f32 %v3492_v41, %v2922_v36  ;;  %v4287_v36 = vld [vmem:[#allocation2 + $0x20] sm:$0xff] }
 0x25e   : > { %v4170_v38 = vpop.f32.mrf.mxu0  ;;  %v3635_v39 = vld [vmem:[#allocation2 + $0x110] sm:$0xff]  ;;  %v7030_v43 = vpop.f32.mrf.mxu1 }
 0x25f   : > { %v4232_v44 = vadd.f32 %v4170_v38, %v3633_v42  ;;  %3591 = vst.msk [vmem:[#allocation2 + $0x120] sm:$0xff] %vm172_vm1, %v3550_v37  ;;  %v4234_v45 = vadd.f32 %v7078_v35, %v3635_v39 }
 0x260   : > { %v7079_v46 = vpop.f32.mrf.mxu0  ;;  %v3495_v16 = vpop.f32.mrf.mxu1 }
 0x261   : > { %4271 = vst.msk [vmem:[#allocation2 + $0x100] sm:$0xff] %vm172_vm1, %v4232_v44  ;;  %4273 = vst.msk [vmem:[#allocation2 + $0x110] sm:$0xff] %vm172_vm1, %v4234_v45  ;;  %v3551_v48 = vadd.f32 %v3495_v16, %v2923_v47 }
 0x262   : > { %v4173_v50 = vpop.f32.mrf.mxu0  ;;  %v3636_v40 = vld [vmem:[#allocation2 + $0x118] sm:$0xff]  ;;  %v7031_v51 = vpop.f32.mrf.mxu1 }
 0x263   : > { %v4233_v10 = vadd.f32 %v4173_v50, %v3634_v49  ;;  %3592 = vst.msk [vmem:[#allocation2 + $0x128] sm:$0xff] %vm172_vm1, %v3551_v48  ;;  %v4235_v52 = vadd.f32 %v7079_v46, %v3636_v40  ;;  %v4290_v46 = vld [vmem:[#allocation2 + $0x38] sm:$0xff]  ;;  %v4288_v51 = vld [vmem:[#allocation2 + $0x28] sm:$0xff] }
 0x264   : > { %v7082_v53 = vpop.f32.mrf.mxu0  ;;  %v3500_v55 = vpop.f32.mrf.mxu1 }
 0x265   : > { %4272 = vst.msk [vmem:[#allocation2 + $0x108] sm:$0xff] %vm172_vm1, %v4233_v10  ;;  %4274 = vst.msk [vmem:[#allocation2 + $0x118] sm:$0xff] %vm172_vm1, %v4235_v52  ;;  %v3552_v56 = vadd.f32 %v3500_v55, %v2924_v54 }
 0x266   : > { %v4186_v59 = vpop.f32.mrf.mxu0  ;;  %v7034_v57 = vpop.f32.mrf.mxu1  ;;  %v3637_v60 = vld [vmem:[#allocation2 + $0x120] sm:$0xff] }
 0x267   : > { %3593 = vst.msk [vmem:[#allocation2 + $0x130] sm:$0xff] %vm172_vm1, %v3552_v56  ;;  %v4236_v61 = vadd.f32 %v4186_v59, %v3637_v60  ;;  %v4293_v59 = vld [vmem:[#allocation2 + $0x50] sm:$0xff] }
 0x268   : > { %v7083_v62 = vpop.f32.mrf.mxu0  ;;  %v3503_v0 = vpop.f32.mrf.mxu1 }
 0x269   : > { %4275 = vst.msk [vmem:[#allocation2 + $0x120] sm:$0xff] %vm172_vm1, %v4236_v61  ;;  %v3553_v1 = vadd.f32 %v3503_v0, %v2925_v63  ;;  %v4291_v0 = vld [vmem:[#allocation2 + $0x40] sm:$0xff] }
 0x26a   : > { %v4189_v2 = vpop.f32.mrf.mxu0  ;;  %v7035_v3 = vpop.f32.mrf.mxu1  ;;  %v3638_v9 = vld [vmem:[#allocation2 + $0x128] sm:$0xff] }
 0x26b   : > { %3594 = vst.msk [vmem:[#allocation2 + $0x138] sm:$0xff] %vm172_vm1, %v3553_v1  ;;  %v4237_v6 = vadd.f32 %v4189_v2, %v3638_v9 }
 0x26c   : > { %v7090_v58 = vpop.f32.mrf.mxu0  ;;  %v3508_v8 = vpop.f32.mrf.mxu1 }
 0x26d   : > { %v4765_v11 = vadd.f32 %v7090_v58, %v4285_v7  ;;  %4276 = vst.msk [vmem:[#allocation2 + $0x128] sm:$0xff] %vm172_vm1, %v4237_v6  ;;  %v3554_v12 = vadd.f32 %v3508_v8, %v2926_v5  ;;  %v4294_v58 = vld [vmem:[#allocation2 + $0x58] sm:$0xff] }
 0x26e   : > { %v4605_v14 = vpop.f32.mrf.mxu0  ;;  %v3639_v15 = vld [vmem:[#allocation2 + $0x130] sm:$0x7]  ;;  %v7038_v17 = vpop.f32.mrf.mxu1 }
 0x26f   : > { %4804 = vst.msk [vmem:[#allocation2 + $0x10] sm:$0xff] %vm172_vm1, %v4765_v11  ;;  %v4763_v18 = vadd.f32 %v4605_v14, %v4283_v13  ;;  %v4238_v19 = vadd.f32 %v7082_v53, %v3639_v15  ;;  %v4292_v17 = vld [vmem:[#allocation2 + $0x48] sm:$0xff] }
 0x270   : > { %3595 = vst.msk [vmem:[#allocation2 + $0x140] sm:$0x7] %vm1785_vm7, %v3554_v12  ;;  %v7091_v21 = vpop.f32.mrf.mxu0  ;;  %v3511_v23 = vpop.f32.mrf.mxu1 }
 0x271   : > { %4802 = vst.msk [vmem:[#allocation2] sm:$0xff] %vm172_vm1, %v4763_v18  ;;  %v4766_v24 = vadd.f32 %v7091_v21, %v4286_v20 }
 0x272   : > { %4277 = vst.msk [vmem:[#allocation2 + $0x130] sm:$0x7] %vm1785_vm7, %v4238_v19  ;;  %v4608_v26 = vpop.f32.mrf.mxu0  ;;  %v5583_v27 = vld [vmem:[#allocation2 + $0x138] sm:$0xff]  ;;  %v7039_v28 = vpop.f32.mrf.mxu1 }
 0x273   : > { %4805 = vst.msk [vmem:[#allocation2 + $0x18] sm:$0xff] %vm172_vm1, %v4766_v24  ;;  %v4764_v29 = vadd.f32 %v4608_v26, %v4284_v25  ;;  %v5631_v30 = vadd.f32 %v8638_v4, %v5583_v27 }
 0x274   : > { %v7094_v22 = vpop.f32.mrf.mxu0  ;;  %v7134_v33 = vpop.f32.mrf.mxu1 }
 0x275   : > { %4803 = vst.msk [vmem:[#allocation2 + $0x8] sm:$0xff] %vm172_vm1, %v4764_v29  ;;  %v4769_v32 = vadd.f32 %v7094_v22, %v4289_v31  ;;  %v5672_v34 = vmax.f32 %v5631_v30, 0.0  ;;  %v4297_v22 = vld [vmem:[#allocation2 + $0x70] sm:$0xff] }
 0x276   : > { %v4848_v35 = vld [vmem:[#allocation2 + $0x10] sm:$0xff]  ;;  %v4621_v41 = vpop.f32.mrf.mxu0  ;;  %v5308_v39 = vpop.f32.mrf.mxu1 }
 0x277   : > { %v5584_v37 = vld [vmem:[#allocation2 + $0x140] sm:$0xf]  ;;  %4808 = vst.msk [vmem:[#allocation2 + $0x30] sm:$0xff] %vm172_vm1, %v4769_v32  ;;  %v5468_v42 = vadd.f32 %v7134_v33, %v4848_v35  ;;  %v4767_v38 = vadd.f32 %v4621_v41, %v4287_v36  ;;  %v6441_v43 = vpack.c.bf16 %v5672_v34, %v5672_v34 }
 0x278   : > { %v5632_v44 = vadd.f32 %v8638_v4, %v5584_v37  ;;  %v4846_v45 = vld [vmem:[#allocation2] sm:$0xff]  ;;  %v7095_v47 = vpop.f32.mrf.mxu0  ;;  %v7135_v49 = vpop.f32.mrf.mxu1 }
 0x279   : > { %5507 = vst.msk [vmem:[#allocation2 + $0x10] sm:$0xff] %vm172_vm1, %v5468_v42  ;;  %4806 = vst.msk [vmem:[#allocation2 + $0x20] sm:$0xff] %vm172_vm1, %v4767_v38  ;;  %v5466_v16 = vadd.f32 %v5308_v39, %v4846_v45  ;;  %v4770_v48 = vadd.f32 %v7095_v47, %v4290_v46  ;;  %v4295_v39 = vld [vmem:[#allocation2 + $0x60] sm:$0xff] }
 0x27a   : > { %5878 = vst.msk [vmem:[%s8650_s9 + $0x9c] sm:$0xf] %vm213_vm3, %v6441_v43  ;;  %v5673_v50 = vmax.f32 %v5632_v44, 0.0  ;;  %v4849_v40 = vld [vmem:[#allocation2 + $0x18] sm:$0xff]  ;;  %v4624_v10 = vpop.f32.mrf.mxu0  ;;  %v5311_v54 = vpop.f32.mrf.mxu1 }
 0x27b   : > { %5505 = vst.msk [vmem:[#allocation2] sm:$0xff] %vm172_vm1, %v5466_v16  ;;  %4809 = vst.msk [vmem:[#allocation2 + $0x38] sm:$0xff] %vm172_vm1, %v4770_v48  ;;  %v5469_v52 = vadd.f32 %v7135_v49, %v4849_v40  ;;  %v4768_v53 = vadd.f32 %v4624_v10, %v4288_v51  ;;  %v4298_v40 = vld [vmem:[#allocation2 + $0x78] sm:$0xff] }
 0x27c   : > { %v6442_v55 = vpack.c.bf16 %v5673_v50, %v5673_v50  ;;  %v4847_v56 = vld [vmem:[#allocation2 + $0x8] sm:$0xff]  ;;  %v7098_v57 = vpop.f32.mrf.mxu0  ;;  %v7138_v62 = vpop.f32.mrf.mxu1 }
 0x27d   : > { %5508 = vst.msk [vmem:[#allocation2 + $0x18] sm:$0xff] %vm172_vm1, %v5469_v52  ;;  %4807 = vst.msk [vmem:[#allocation2 + $0x28] sm:$0xff] %vm172_vm1, %v4768_v53  ;;  %v5467_v60 = vadd.f32 %v5311_v54, %v4847_v56  ;;  %v4773_v61 = vadd.f32 %v7098_v57, %v4293_v59 }
 0x27e   : > { %5879 = vst.msk [vmem:[%s8650_s9 + $0xa0] sm:$0x3] %vm1261_vm6, %v6442_v55  ;;  %v4852_v63 = vld [vmem:[#allocation2 + $0x30] sm:$0xff]  ;;  %v4637_v1 = vpop.f32.mrf.mxu0  ;;  %v5324_v9 = vpop.f32.mrf.mxu1 }
 0x27f   : > { %5506 = vst.msk [vmem:[#allocation2 + $0x8] sm:$0xff] %vm172_vm1, %v5467_v60  ;;  %4812 = vst.msk [vmem:[#allocation2 + $0x50] sm:$0xff] %vm172_vm1, %v4773_v61  ;;  %v5472_v2 = vadd.f32 %v7138_v62, %v4852_v63  ;;  %v4771_v3 = vadd.f32 %v4637_v1, %v4291_v0  ;;  %v4296_v60 = vld [vmem:[#allocation2 + $0x68] sm:$0xff] }
 0x280   : > { %v5546_v6 = vld [vmem:[#allocation2 + $0x10] sm:$0xff]  ;;  %v4850_v7 = vld [vmem:[#allocation2 + $0x20] sm:$0xff]  ;;  %v7099_v5 = vpop.f32.mrf.mxu0  ;;  %v7139_v13 = vpop.f32.mrf.mxu1 }
 0x281   : > { %v5594_v8 = vadd.f32 %v8638_v4, %v5546_v6  ;;  %5511 = vst.msk [vmem:[#allocation2 + $0x30] sm:$0xff] %vm172_vm1, %v5472_v2  ;;  %4810 = vst.msk [vmem:[#allocation2 + $0x40] sm:$0xff] %vm172_vm1, %v4771_v3  ;;  %v5470_v11 = vadd.f32 %v5324_v9, %v4850_v7  ;;  %v4774_v12 = vadd.f32 %v7099_v5, %v4294_v58  ;;  %v4301_v7 = vld [vmem:[#allocation2 + $0x90] sm:$0xff] }
 0x282   : > { %v5544_v14 = vld [vmem:[#allocation2] sm:$0xff]  ;;  %v4853_v15 = vld [vmem:[#allocation2 + $0x38] sm:$0xff]  ;;  %v4640_v18 = vpop.f32.mrf.mxu0  ;;  %v5327_v24 = vpop.f32.mrf.mxu1 }
 0x283   : > { %v5635_v19 = vmax.f32 %v5594_v8, 0.0  ;;  %v5592_v20 = vadd.f32 %v8638_v4, %v5544_v14  ;;  %5509 = vst.msk [vmem:[#allocation2 + $0x20] sm:$0xff] %vm172_vm1, %v5470_v11  ;;  %4813 = vst.msk [vmem:[#allocation2 + $0x58] sm:$0xff] %vm172_vm1, %v4774_v12  ;;  %v5473_v21 = vadd.f32 %v7139_v13, %v4853_v15  ;;  %v4772_v23 = vadd.f32 %v4640_v18, %v4292_v17  ;;  %v4299_v11 = vld [vmem:[#allocation2 + $0x80] sm:$0xff] }
 0x284   : > { %v5547_v25 = vld [vmem:[#allocation2 + $0x18] sm:$0xff]  ;;  %v4851_v26 = vld [vmem:[#allocation2 + $0x28] sm:$0xff]  ;;  %v7102_v27 = vpop.f32.mrf.mxu0  ;;  %v7142_v32 = vpop.f32.mrf.mxu1 }
 0x285   : > { %v6404_v28 = vpack.c.bf16 %v5635_v19, %v5635_v19  ;;  %v5633_v29 = vmax.f32 %v5592_v20, 0.0  ;;  %v5595_v30 = vadd.f32 %v8638_v4, %v5547_v25  ;;  %5512 = vst.msk [vmem:[#allocation2 + $0x38] sm:$0xff] %vm172_vm1, %v5473_v21  ;;  %4811 = vst.msk [vmem:[#allocation2 + $0x48] sm:$0xff] %vm172_vm1, %v4772_v23  ;;  %v5471_v31 = vadd.f32 %v5327_v24, %v4851_v26  ;;  %v4302_v23 = vld [vmem:[#allocation2 + $0x98] sm:$0xff] }
 0x286   : > { %v5545_v33 = vld [vmem:[#allocation2 + $0x8] sm:$0xff]  ;;  %v4777_v34 = vadd.f32 %v7102_v27, %v4297_v22  ;;  %v4856_v35 = vld [vmem:[#allocation2 + $0x50] sm:$0xff]  ;;  %v4653_v36 = vpop.f32.mrf.mxu0  ;;  %v5340_v43 = vpop.f32.mrf.mxu1 }
 0x287   : > { %5841 = vst.msk [vmem:[%s8650_s9 + $0x8] sm:$0xf] %vm213_vm3, %v6404_v28  ;;  %v6402_v41 = vpack.c.bf16 %v5633_v29, %v5633_v29  ;;  %v5636_v37 = vmax.f32 %v5595_v30, 0.0  ;;  %v5593_v42 = vadd.f32 %v8638_v4, %v5545_v33  ;;  %v5476_v38 = vadd.f32 %v7142_v32, %v4856_v35  ;;  %v4300_v32 = vld [vmem:[#allocation2 + $0x88] sm:$0xff] }
 0x288   : > { %5510 = vst.msk [vmem:[#allocation2 + $0x28] sm:$0xff] %vm172_vm1, %v5471_v31  ;;  %v5550_v44 = vld [vmem:[#allocation2 + $0x30] sm:$0xff]  ;;  %4816 = vst.msk [vmem:[#allocation2 + $0x70] sm:$0xff] %vm172_vm1, %v4777_v34  ;;  %v4775_v45 = vadd.f32 %v4653_v36, %v4295_v39  ;;  %v4854_v46 = vld [vmem:[#allocation2 + $0x40] sm:$0xff]  ;;  %v7103_v47 = vpop.f32.mrf.mxu0  ;;  %v7143_v51 = vpop.f32.mrf.mxu1 }
 0x289   : > { %5839 = vst.msk [vmem:[%s8650_s9] sm:$0xf] %vm213_vm3, %v6402_v41  ;;  %v6405_v16 = vpack.c.bf16 %v5636_v37, %v5636_v37  ;;  %v5634_v48 = vmax.f32 %v5593_v42, 0.0  ;;  %v5598_v49 = vadd.f32 %v8638_v4, %v5550_v44  ;;  %v5474_v50 = vadd.f32 %v5340_v43, %v4854_v46  ;;  %v4305_v43 = vld [vmem:[#allocation2 + $0xb0] sm:$0xff] }
 0x28a   : > { %5515 = vst.msk [vmem:[#allocation2 + $0x50] sm:$0xff] %vm172_vm1, %v5476_v38  ;;  %v5548_v10 = vld [vmem:[#allocation2 + $0x20] sm:$0xff]  ;;  %4814 = vst.msk [vmem:[#allocation2 + $0x60] sm:$0xff] %vm172_vm1, %v4775_v45  ;;  %v4778_v52 = vadd.f32 %v7103_v47, %v4298_v40  ;;  %v4857_v53 = vld [vmem:[#allocation2 + $0x58] sm:$0xff]  ;;  %v4656_v54 = vpop.f32.mrf.mxu0  ;;  %v5343_v61 = vpop.f32.mrf.mxu1 }
 0x28b   : > { %5842 = vst.msk [vmem:[%s8650_s9 + $0xc] sm:$0xf] %vm213_vm3, %v6405_v16  ;;  %v6403_v55 = vpack.c.bf16 %v5634_v48, %v5634_v48  ;;  %v5639_v56 = vmax.f32 %v5598_v49, 0.0  ;;  %v5596_v59 = vadd.f32 %v8638_v4, %v5548_v10  ;;  %v5477_v57 = vadd.f32 %v7143_v51, %v4857_v53  ;;  %v4303_v51 = vld [vmem:[#allocation2 + $0xa0] sm:$0xff] }
 0x28c   : > { %5513 = vst.msk [vmem:[#allocation2 + $0x40] sm:$0xff] %vm172_vm1, %v5474_v50  ;;  %v5551_v62 = vld [vmem:[#allocation2 + $0x38] sm:$0xff]  ;;  %4817 = vst.msk [vmem:[#allocation2 + $0x78] sm:$0xff] %vm172_vm1, %v4778_v52  ;;  %v4776_v63 = vadd.f32 %v4656_v54, %v4296_v60  ;;  %v4855_v0 = vld [vmem:[#allocation2 + $0x48] sm:$0xff]  ;;  %v7106_v1 = vpop.f32.mrf.mxu0  ;;  %v7146_v58 = vpop.f32.mrf.mxu1 }
 0x28d   : > { %5840 = vst.msk [vmem:[%s8650_s9 + $0x4] sm:$0xf] %vm213_vm3, %v6403_v55  ;;  %v6408_v2 = vpack.c.bf16 %v5639_v56, %v5639_v56  ;;  %v5637_v3 = vmax.f32 %v5596_v59, 0.0  ;;  %v5599_v9 = vadd.f32 %v8638_v4, %v5551_v62  ;;  %v5475_v6 = vadd.f32 %v5343_v61, %v4855_v0  ;;  %v4306_v61 = vld [vmem:[#allocation2 + $0xb8] sm:$0xff] }
 0x28e   : > { %5516 = vst.msk [vmem:[#allocation2 + $0x58] sm:$0xff] %vm172_vm1, %v5477_v57  ;;  %4815 = vst.msk [vmem:[#allocation2 + $0x68] sm:$0xff] %vm172_vm1, %v4776_v63  ;;  %v4781_v8 = vadd.f32 %v7106_v1, %v4301_v7  ;;  %v4669_v12 = vpop.f32.mrf.mxu0  ;;  %v5356_v19 = vpop.f32.mrf.mxu1 }
 0x28f   : > { %v5549_v5 = vld [vmem:[#allocation2 + $0x28] sm:$0xff]  ;;  %5845 = vst.msk [vmem:[%s8650_s9 + $0x18] sm:$0xf] %vm213_vm3, %v6408_v2  ;;  %v6406_v13 = vpack.c.bf16 %v5637_v3, %v5637_v3  ;;  %v5640_v14 = vmax.f32 %v5599_v9, 0.0  ;;  %v4860_v17 = vld [vmem:[#allocation2 + $0x70] sm:$0xff]  ;;  %v4779_v18 = vadd.f32 %v4669_v12, %v4299_v11 }
 0x290   : > { %v5597_v15 = vadd.f32 %v8638_v4, %v5549_v5  ;;  %5514 = vst.msk [vmem:[#allocation2 + $0x48] sm:$0xff] %vm172_vm1, %v5475_v6  ;;  %4820 = vst.msk [vmem:[#allocation2 + $0x90] sm:$0xff] %vm172_vm1, %v4781_v8  ;;  %v5480_v21 = vadd.f32 %v7146_v58, %v4860_v17  ;;  %v7107_v24 = vpop.f32.mrf.mxu0  ;;  %v7147_v30 = vpop.f32.mrf.mxu1  ;;  %v4304_v58 = vld [vmem:[#allocation2 + $0xa8] sm:$0xff] }
 0x291   : > { %v5554_v20 = vld [vmem:[#allocation2 + $0x50] sm:$0xff]  ;;  %5843 = vst.msk [vmem:[%s8650_s9 + $0x10] sm:$0xf] %vm213_vm3, %v6406_v13  ;;  %v6409_v25 = vpack.c.bf16 %v5640_v14, %v5640_v14  ;;  %v4858_v28 = vld [vmem:[#allocation2 + $0x60] sm:$0xff]  ;;  %v4782_v29 = vadd.f32 %v7107_v24, %v4302_v23 }
 0x292   : > { %v5638_v26 = vmax.f32 %v5597_v15, 0.0  ;;  %v5602_v27 = vadd.f32 %v8638_v4, %v5554_v20  ;;  %4818 = vst.msk [vmem:[#allocation2 + $0x80] sm:$0xff] %vm172_vm1, %v4779_v18  ;;  %5519 = vst.msk [vmem:[#allocation2 + $0x70] sm:$0xff] %vm172_vm1, %v5480_v21  ;;  %v5478_v22 = vadd.f32 %v5356_v19, %v4858_v28  ;;  %v4672_v33 = vpop.f32.mrf.mxu0  ;;  %v5359_v42 = vpop.f32.mrf.mxu1  ;;  %v4309_v19 = vld [vmem:[#allocation2 + $0xd0] sm:$0xff] }
 0x293   : > { %v5552_v31 = vld [vmem:[#allocation2 + $0x40] sm:$0xff]  ;;  %5846 = vst.msk [vmem:[%s8650_s9 + $0x1c] sm:$0xf] %vm213_vm3, %v6409_v25  ;;  %v4861_v41 = vld [vmem:[#allocation2 + $0x78] sm:$0xff]  ;;  %v4780_v37 = vadd.f32 %v4672_v33, %v4300_v32 }
 0x294   : > { %v6407_v34 = vpack.c.bf16 %v5638_v26, %v5638_v26  ;;  %v5643_v35 = vmax.f32 %v5602_v27, 0.0  ;;  %v5600_v36 = vadd.f32 %v8638_v4, %v5552_v31  ;;  %4821 = vst.msk [vmem:[#allocation2 + $0x98] sm:$0xff] %vm172_vm1, %v4782_v29  ;;  %5517 = vst.msk [vmem:[#allocation2 + $0x60] sm:$0xff] %vm172_vm1, %v5478_v22  ;;  %v5481_v39 = vadd.f32 %v7147_v30, %v4861_v41  ;;  %v7110_v44 = vpop.f32.mrf.mxu0  ;;  %v7150_v49 = vpop.f32.mrf.mxu1  ;;  %v4307_v30 = vld [vmem:[#allocation2 + $0xc0] sm:$0xff] }
 0x295   : > { %v5555_v38 = vld [vmem:[#allocation2 + $0x58] sm:$0xff]  ;;  %4819 = vst.msk [vmem:[#allocation2 + $0x88] sm:$0xff] %vm172_vm1, %v4780_v37  ;;  %v4859_v16 = vld [vmem:[#allocation2 + $0x68] sm:$0xff]  ;;  %v4785_v48 = vadd.f32 %v7110_v44, %v4305_v43 }
 0x296   : > { %5844 = vst.msk [vmem:[%s8650_s9 + $0x14] sm:$0xf] %vm213_vm3, %v6407_v34  ;;  %v6412_v45 = vpack.c.bf16 %v5643_v35, %v5643_v35  ;;  %v5641_v46 = vmax.f32 %v5600_v36, 0.0  ;;  %v5603_v47 = vadd.f32 %v8638_v4, %v5555_v38  ;;  %v5479_v40 = vadd.f32 %v5359_v42, %v4859_v16  ;;  %v4685_v10 = vpop.f32.mrf.mxu0  ;;  %v5372_v59 = vpop.f32.mrf.mxu1  ;;  %v4310_v42 = vld [vmem:[#allocation2 + $0xd8] sm:$0xff] }
 0x297   : > { %v5553_v50 = vld [vmem:[#allocation2 + $0x48] sm:$0xff]  ;;  %5520 = vst.msk [vmem:[#allocation2 + $0x78] sm:$0xff] %vm172_vm1, %v5481_v39  ;;  %4824 = vst.msk [vmem:[#allocation2 + $0xb0] sm:$0xff] %vm172_vm1, %v4785_v48  ;;  %v4864_v55 = vld [vmem:[#allocation2 + $0x90] sm:$0xff]  ;;  %v4783_v56 = vadd.f32 %v4685_v10, %v4303_v51 }
 0x298   : > { %5849 = vst.msk [vmem:[%s8650_s9 + $0x28] sm:$0xf] %vm213_vm3, %v6412_v45  ;;  %v6410_v52 = vpack.c.bf16 %v5641_v46, %v5641_v46  ;;  %v5644_v53 = vmax.f32 %v5603_v47, 0.0  ;;  %v5601_v54 = vadd.f32 %v8638_v4, %v5553_v50  ;;  %v5484_v57 = vadd.f32 %v7150_v49, %v4864_v55  ;;  %v7111_v62 = vpop.f32.mrf.mxu0  ;;  %v7151_v9 = vpop.f32.mrf.mxu1  ;;  %v4308_v50 = vld [vmem:[#allocation2 + $0xc8] sm:$0xff] }
 0x299   : > { %5518 = vst.msk [vmem:[#allocation2 + $0x68] sm:$0xff] %vm172_vm1, %v5479_v40  ;;  %v4862_v60 = vld [vmem:[#allocation2 + $0x80] sm:$0xff]  ;;  %v5558_v1 = vld [vmem:[#allocation2 + $0x70] sm:$0xff]  ;;  %4822 = vst.msk [vmem:[#allocation2 + $0xa0] sm:$0xff] %vm172_vm1, %v4783_v56  ;;  %v4786_v3 = vadd.f32 %v7111_v62, %v4306_v61 }
 0x29a   : > { %5847 = vst.msk [vmem:[%s8650_s9 + $0x20] sm:$0xf] %vm213_vm3, %v6410_v52  ;;  %v6413_v63 = vpack.c.bf16 %v5644_v53, %v5644_v53  ;;  %v5642_v0 = vmax.f32 %v5601_v54, 0.0  ;;  %v5482_v2 = vadd.f32 %v5372_v59, %v4862_v60  ;;  %v5606_v6 = vadd.f32 %v8638_v4, %v5558_v1  ;;  %v4688_v5 = vpop.f32.mrf.mxu0  ;;  %v5375_v14 = vpop.f32.mrf.mxu1 }
 0x29b   : > { %5523 = vst.msk [vmem:[#allocation2 + $0x90] sm:$0xff] %vm172_vm1, %v5484_v57  ;;  %v4865_v7 = vld [vmem:[#allocation2 + $0x98] sm:$0xff]  ;;  %v5556_v11 = vld [vmem:[#allocation2 + $0x60] sm:$0xff]  ;;  %4825 = vst.msk [vmem:[#allocation2 + $0xb8] sm:$0xff] %vm172_vm1, %v4786_v3  ;;  %v4784_v13 = vadd.f32 %v4688_v5, %v4304_v58 }
 0x29c   : > { %5850 = vst.msk [vmem:[%s8650_s9 + $0x2c] sm:$0xf] %vm213_vm3, %v6413_v63  ;;  %v6411_v8 = vpack.c.bf16 %v5642_v0, %v5642_v0  ;;  %v5485_v12 = vadd.f32 %v7151_v9, %v4865_v7  ;;  %v5647_v15 = vmax.f32 %v5606_v6, 0.0  ;;  %v5604_v17 = vadd.f32 %v8638_v4, %v5556_v11  ;;  %v4863_v18 = vld [vmem:[#allocation2 + $0x88] sm:$0xff]  ;;  %v7114_v20 = vpop.f32.mrf.mxu0  ;;  %v7154_v25 = vpop.f32.mrf.mxu1  ;;  %v4313_v57 = vld [vmem:[#allocation2 + $0xf0] sm:$0xff]  ;;  %v4311_v11 = vld [vmem:[#allocation2 + $0xe0] sm:$0xff] }
 0x29d   : > { %5521 = vst.msk [vmem:[#allocation2 + $0x80] sm:$0xff] %vm172_vm1, %v5482_v2  ;;  %4823 = vst.msk [vmem:[#allocation2 + $0xa8] sm:$0xff] %vm172_vm1, %v4784_v13  ;;  %v5483_v23 = vadd.f32 %v5375_v14, %v4863_v18  ;;  %v4789_v24 = vadd.f32 %v7114_v20, %v4309_v19 }
 0x29e   : > { %5848 = vst.msk [vmem:[%s8650_s9 + $0x24] sm:$0xf] %vm213_vm3, %v6411_v8  ;;  %v5559_v21 = vld [vmem:[#allocation2 + $0x78] sm:$0xff]  ;;  %v6416_v26 = vpack.c.bf16 %v5647_v15, %v5647_v15  ;;  %v5645_v27 = vmax.f32 %v5604_v17, 0.0  ;;  %v4868_v29 = vld [vmem:[#allocation2 + $0xb0] sm:$0xff]  ;;  %v4701_v31 = vpop.f32.mrf.mxu0  ;;  %v5388_v34 = vpop.f32.mrf.mxu1 }
 0x29f   : > { %5524 = vst.msk [vmem:[#allocation2 + $0x98] sm:$0xff] %vm172_vm1, %v5485_v12  ;;  %v5607_v28 = vadd.f32 %v8638_v4, %v5559_v21  ;;  %5522 = vst.msk [vmem:[#allocation2 + $0x88] sm:$0xff] %vm172_vm1, %v5483_v23  ;;  %v5488_v32 = vadd.f32 %v7154_v25, %v4868_v29  ;;  %v4787_v33 = vadd.f32 %v4701_v31, %v4307_v30  ;;  %v4314_v23 = vld [vmem:[#allocation2 + $0xf8] sm:$0xff] }
 0x2a0   : > { %v5557_v22 = vld [vmem:[#allocation2 + $0x68] sm:$0xff]  ;;  %4828 = vst.msk [vmem:[#allocation2 + $0xd0] sm:$0xff] %vm172_vm1, %v4789_v24  ;;  %v6414_v35 = vpack.c.bf16 %v5645_v27, %v5645_v27  ;;  %v4866_v37 = vld [vmem:[#allocation2 + $0xa0] sm:$0xff]  ;;  %v7115_v38 = vpop.f32.mrf.mxu0  ;;  %v7155_v45 = vpop.f32.mrf.mxu1 }
 0x2a1   : > { %5853 = vst.msk [vmem:[%s8650_s9 + $0x38] sm:$0xf] %vm213_vm3, %v6416_v26  ;;  %v5648_v36 = vmax.f32 %v5607_v28, 0.0  ;;  %v5605_v41 = vadd.f32 %v8638_v4, %v5557_v22  ;;  %v5486_v43 = vadd.f32 %v5388_v34, %v4866_v37  ;;  %v4790_v44 = vadd.f32 %v7115_v38, %v4310_v42 }
 0x2a2   : > { %v5562_v39 = vld [vmem:[#allocation2 + $0x90] sm:$0xff]  ;;  %5527 = vst.msk [vmem:[#allocation2 + $0xb0] sm:$0xff] %vm172_vm1, %v5488_v32  ;;  %4826 = vst.msk [vmem:[#allocation2 + $0xc0] sm:$0xff] %vm172_vm1, %v4787_v33  ;;  %v4869_v49 = vld [vmem:[#allocation2 + $0xb8] sm:$0xff]  ;;  %v4704_v40 = vpop.f32.mrf.mxu0  ;;  %v5391_v53 = vpop.f32.mrf.mxu1 }
 0x2a3   : > { %5851 = vst.msk [vmem:[%s8650_s9 + $0x30] sm:$0xf] %vm213_vm3, %v6414_v35  ;;  %v6417_v46 = vpack.c.bf16 %v5648_v36, %v5648_v36  ;;  %v5646_v47 = vmax.f32 %v5605_v41, 0.0  ;;  %v5610_v16 = vadd.f32 %v8638_v4, %v5562_v39  ;;  %v5489_v10 = vadd.f32 %v7155_v45, %v4869_v49  ;;  %v4312_v32 = vld [vmem:[#allocation2 + $0xe8] sm:$0xff] }
 0x2a4   : > { %v5560_v48 = vld [vmem:[#allocation2 + $0x80] sm:$0xff]  ;;  %5525 = vst.msk [vmem:[#allocation2 + $0xa0] sm:$0xff] %vm172_vm1, %v5486_v43  ;;  %4829 = vst.msk [vmem:[#allocation2 + $0xd8] sm:$0xff] %vm172_vm1, %v4790_v44  ;;  %v4788_v52 = vadd.f32 %v4704_v40, %v4308_v50  ;;  %v4867_v59 = vld [vmem:[#allocation2 + $0xa8] sm:$0xff]  ;;  %v7118_v60 = vpop.f32.mrf.mxu0  ;;  %v7158_v1 = vpop.f32.mrf.mxu1 }
 0x2a5   : > { %v5608_v51 = vadd.f32 %v8638_v4, %v5560_v48  ;;  %5854 = vst.msk [vmem:[%s8650_s9 + $0x3c] sm:$0xf] %vm213_vm3, %v6417_v46  ;;  %v6415_v54 = vpack.c.bf16 %v5646_v47, %v5646_v47  ;;  %v5651_v55 = vmax.f32 %v5610_v16, 0.0  ;;  %v5487_v63 = vadd.f32 %v5391_v53, %v4867_v59  ;;  %v4317_v43 = vld [vmem:[#allocation2 + $0x110] sm:$0xff] }
 0x2a6   : > { %v5563_v56 = vld [vmem:[#allocation2 + $0x98] sm:$0xff]  ;;  %5528 = vst.msk [vmem:[#allocation2 + $0xb8] sm:$0xff] %vm172_vm1, %v5489_v10  ;;  %4827 = vst.msk [vmem:[#allocation2 + $0xc8] sm:$0xff] %vm172_vm1, %v4788_v52  ;;  %v4793_v0 = vadd.f32 %v7118_v60, %v4313_v57  ;;  %v5561_v3 = vld [vmem:[#allocation2 + $0x88] sm:$0xff]  ;;  %v4717_v6 = vpop.f32.mrf.mxu0  ;;  %v5404_v12 = vpop.f32.mrf.mxu1 }
 0x2a7   : > { %v5649_v61 = vmax.f32 %v5608_v51, 0.0  ;;  %v5611_v62 = vadd.f32 %v8638_v4, %v5563_v56  ;;  %5852 = vst.msk [vmem:[%s8650_s9 + $0x34] sm:$0xf] %vm213_vm3, %v6415_v54  ;;  %v6420_v2 = vpack.c.bf16 %v5651_v55, %v5651_v55  ;;  %v4872_v9 = vld [vmem:[#allocation2 + $0xd0] sm:$0xff]  ;;  %v5609_v5 = vadd.f32 %v8638_v4, %v5561_v3  ;;  %v4315_v51 = vld [vmem:[#allocation2 + $0x100] sm:$0xff]  ;;  %v4318_v54 = vld [vmem:[#allocation2 + $0x118] sm:$0xff] }
 0x2a8   : > { %5526 = vst.msk [vmem:[#allocation2 + $0xa8] sm:$0xff] %vm172_vm1, %v5487_v63  ;;  %4832 = vst.msk [vmem:[#allocation2 + $0xf0] sm:$0xff] %vm172_vm1, %v4793_v0  ;;  %v5492_v8 = vadd.f32 %v7158_v1, %v4872_v9  ;;  %v4791_v14 = vadd.f32 %v4717_v6, %v4311_v11  ;;  %v7119_v17 = vpop.f32.mrf.mxu0  ;;  %v7159_v24 = vpop.f32.mrf.mxu1  ;;  %v4316_v1 = vld [vmem:[#allocation2 + $0x108] sm:$0xff] }
 0x2a9   : > { %v6418_v7 = vpack.c.bf16 %v5649_v61, %v5649_v61  ;;  %v5652_v58 = vmax.f32 %v5611_v62, 0.0  ;;  %5857 = vst.msk [vmem:[%s8650_s9 + $0x48] sm:$0xf] %vm213_vm3, %v6420_v2  ;;  %v5566_v13 = vld [vmem:[#allocation2 + $0xb0] sm:$0xff]  ;;  %v4870_v15 = vld [vmem:[#allocation2 + $0xc0] sm:$0xff]  ;;  %v5650_v19 = vmax.f32 %v5609_v5, 0.0  ;;  %v4794_v26 = vadd.f32 %v7119_v17, %v4314_v23 }
 0x2aa   : > { %v5614_v20 = vadd.f32 %v8638_v4, %v5566_v13  ;;  %5531 = vst.msk [vmem:[#allocation2 + $0xd0] sm:$0xff] %vm172_vm1, %v5492_v8  ;;  %v5490_v21 = vadd.f32 %v5404_v12, %v4870_v15  ;;  %4830 = vst.msk [vmem:[#allocation2 + $0xe0] sm:$0xff] %vm172_vm1, %v4791_v14  ;;  %v4720_v28 = vpop.f32.mrf.mxu0  ;;  %v5407_v33 = vpop.f32.mrf.mxu1  ;;  %v4321_v12 = vld [vmem:[#allocation2 + $0x130] sm:$0x3] }
 0x2ab   : > { %5855 = vst.msk [vmem:[%s8650_s9 + $0x40] sm:$0xf] %vm213_vm3, %v6418_v7  ;;  %v6421_v18 = vpack.c.bf16 %v5652_v58, %v5652_v58  ;;  %v5564_v25 = vld [vmem:[#allocation2 + $0xa0] sm:$0xff]  ;;  %v4873_v27 = vld [vmem:[#allocation2 + $0xd8] sm:$0xff]  ;;  %v6419_v29 = vpack.c.bf16 %v5650_v19, %v5650_v19  ;;  %v4792_v35 = vadd.f32 %v4720_v28, %v4312_v32 }
 0x2ac   : > { %v5655_v30 = vmax.f32 %v5614_v20, 0.0  ;;  %v5612_v31 = vadd.f32 %v8638_v4, %v5564_v25  ;;  %5529 = vst.msk [vmem:[#allocation2 + $0xc0] sm:$0xff] %vm172_vm1, %v5490_v21  ;;  %v5493_v22 = vadd.f32 %v7159_v24, %v4873_v27  ;;  %4833 = vst.msk [vmem:[#allocation2 + $0xf8] sm:$0xff] %vm172_vm1, %v4794_v26  ;;  %v7122_v41 = vpop.f32.mrf.mxu0  ;;  %v7162_v44 = vpop.f32.mrf.mxu1  ;;  %v4319_v24 = vld [vmem:[#allocation2 + $0x120] sm:$0xff] }
 0x2ad   : > { %5858 = vst.msk [vmem:[%s8650_s9 + $0x4c] sm:$0xf] %vm213_vm3, %v6421_v18  ;;  %v5567_v34 = vld [vmem:[#allocation2 + $0xb8] sm:$0xff]  ;;  %v4871_v36 = vld [vmem:[#allocation2 + $0xc8] sm:$0xff]  ;;  %5856 = vst.msk [vmem:[%s8650_s9 + $0x44] sm:$0xf] %vm213_vm3, %v6419_v29  ;;  %v4797_v46 = vadd.f32 %v7122_v41, %v4317_v43 }
 0x2ae   : > { %v6424_v37 = vpack.c.bf16 %v5655_v30, %v5655_v30  ;;  %v5653_v42 = vmax.f32 %v5612_v31, 0.0  ;;  %v5615_v38 = vadd.f32 %v8638_v4, %v5567_v34  ;;  %5532 = vst.msk [vmem:[#allocation2 + $0xd8] sm:$0xff] %vm172_vm1, %v5493_v22  ;;  %v5491_v39 = vadd.f32 %v5407_v33, %v4871_v36  ;;  %4831 = vst.msk [vmem:[#allocation2 + $0xe8] sm:$0xff] %vm172_vm1, %v4792_v35  ;;  %v4733_v16 = vpop.f32.mrf.mxu0  ;;  %v5420_v10 = vpop.f32.mrf.mxu1 }
 0x2af   : > { %v5565_v45 = vld [vmem:[#allocation2 + $0xa8] sm:$0xff]  ;;  %v4876_v47 = vld [vmem:[#allocation2 + $0xf0] sm:$0xff]  ;;  %4836 = vst.msk [vmem:[#allocation2 + $0x110] sm:$0xff] %vm172_vm1, %v4797_v46  ;;  %v4795_v53 = vadd.f32 %v4733_v16, %v4315_v51 }
 0x2b0   : > { %5861 = vst.msk [vmem:[%s8650_s9 + $0x58] sm:$0xf] %vm213_vm3, %v6424_v37  ;;  %v6422_v48 = vpack.c.bf16 %v5653_v42, %v5653_v42  ;;  %v5656_v49 = vmax.f32 %v5615_v38, 0.0  ;;  %v5613_v50 = vadd.f32 %v8638_v4, %v5565_v45  ;;  %v5496_v40 = vadd.f32 %v7162_v44, %v4876_v47  ;;  %v7123_v55 = vpop.f32.mrf.mxu0  ;;  %v7163_v62 = vpop.f32.mrf.mxu1 }
 0x2b1   : > { %5530 = vst.msk [vmem:[#allocation2 + $0xc8] sm:$0xff] %vm172_vm1, %v5491_v39  ;;  %v5570_v52 = vld [vmem:[#allocation2 + $0xd0] sm:$0xff]  ;;  %v4874_v60 = vld [vmem:[#allocation2 + $0xe0] sm:$0xff]  ;;  %v4798_v61 = vadd.f32 %v7123_v55, %v4318_v54  ;;  %4834 = vst.msk [vmem:[#allocation2 + $0x100] sm:$0xff] %vm172_vm1, %v4795_v53 }
 0x2b2   : > { %5859 = vst.msk [vmem:[%s8650_s9 + $0x50] sm:$0xf] %vm213_vm3, %v6422_v48  ;;  %v6425_v56 = vpack.c.bf16 %v5656_v49, %v5656_v49  ;;  %v5654_v59 = vmax.f32 %v5613_v50, 0.0  ;;  %v5618_v57 = vadd.f32 %v8638_v4, %v5570_v52  ;;  %v5494_v0 = vadd.f32 %v5420_v10, %v4874_v60  ;;  %v4736_v2 = vpop.f32.mrf.mxu0  ;;  %v5423_v5 = vpop.f32.mrf.mxu1  ;;  %v4320_v39 = vld [vmem:[#allocation2 + $0x128] sm:$0xff] }
 0x2b3   : > { %5535 = vst.msk [vmem:[#allocation2 + $0xf0] sm:$0xff] %vm172_vm1, %v5496_v40  ;;  %v5568_v63 = vld [vmem:[#allocation2 + $0xc0] sm:$0xff]  ;;  %4837 = vst.msk [vmem:[#allocation2 + $0x118] sm:$0xff] %vm172_vm1, %v4798_v61  ;;  %v4877_v7 = vld [vmem:[#allocation2 + $0xf8] sm:$0xff]  ;;  %v4796_v58 = vadd.f32 %v4736_v2, %v4316_v1 }
 0x2b4   : > { %5862 = vst.msk [vmem:[%s8650_s9 + $0x5c] sm:$0xf] %vm213_vm3, %v6425_v56  ;;  %v6423_v3 = vpack.c.bf16 %v5654_v59, %v5654_v59  ;;  %v5659_v9 = vmax.f32 %v5618_v57, 0.0  ;;  %v5616_v6 = vadd.f32 %v8638_v4, %v5568_v63  ;;  %v5497_v11 = vadd.f32 %v7163_v62, %v4877_v7  ;;  %v7126_v13 = vpop.f32.mrf.mxu0  ;;  %v7166_v20 = vpop.f32.mrf.mxu1 }
 0x2b5   : > { %v5571_v8 = vld [vmem:[#allocation2 + $0xd8] sm:$0xff]  ;;  %5533 = vst.msk [vmem:[#allocation2 + $0xe0] sm:$0xff] %vm172_vm1, %v5494_v0  ;;  %4835 = vst.msk [vmem:[#allocation2 + $0x108] sm:$0xff] %vm172_vm1, %v4796_v58  ;;  %v4875_v18 = vld [vmem:[#allocation2 + $0xe8] sm:$0xff]  ;;  %v4801_v19 = vadd.f32 %v7126_v13, %v4321_v12 }
 0x2b6   : > { %5860 = vst.msk [vmem:[%s8650_s9 + $0x54] sm:$0xf] %vm213_vm3, %v6423_v3  ;;  %v6428_v14 = vpack.c.bf16 %v5659_v9, %v5659_v9  ;;  %v5657_v15 = vmax.f32 %v5616_v6, 0.0  ;;  %v5619_v17 = vadd.f32 %v8638_v4, %v5571_v8  ;;  %v5495_v23 = vadd.f32 %v5423_v5, %v4875_v18  ;;  %v4749_v25 = vpop.f32.mrf.mxu0  ;;  %v4880_v29 = vld [vmem:[#allocation2 + $0x110] sm:$0xff]  ;;  %v5436_v31 = vpop.f32.mrf.mxu1 }
 0x2b7   : > { %5536 = vst.msk [vmem:[#allocation2 + $0xf8] sm:$0xff] %vm172_vm1, %v5497_v11  ;;  %v4799_v30 = vadd.f32 %v4749_v25, %v4319_v24  ;;  %v5500_v32 = vadd.f32 %v7166_v20, %v4880_v29 }
 0x2b8   : > { %v5569_v21 = vld [vmem:[#allocation2 + $0xc8] sm:$0xff]  ;;  %5865 = vst.msk [vmem:[%s8650_s9 + $0x68] sm:$0xf] %vm213_vm3, %v6428_v14  ;;  %v6426_v26 = vpack.c.bf16 %v5657_v15, %v5657_v15  ;;  %v5660_v27 = vmax.f32 %v5619_v17, 0.0  ;;  %v7127_v33 = vpop.f32.mrf.mxu0  ;;  %v4878_v41 = vld [vmem:[#allocation2 + $0x100] sm:$0xff]  ;;  %v7167_v37 = vpop.f32.mrf.mxu1 }
 0x2b9   : > { %v5617_v28 = vadd.f32 %v8638_v4, %v5569_v21  ;;  %4840 = vst.msk [vmem:[#allocation2 + $0x130] sm:$0x3] %vm1261_vm6, %v4801_v19  ;;  %v5498_v42 = vadd.f32 %v5436_v31, %v4878_v41 }
 0x2ba   : > { %v5574_v22 = vld [vmem:[#allocation2 + $0xf0] sm:$0xff]  ;;  %5534 = vst.msk [vmem:[#allocation2 + $0xe8] sm:$0xff] %vm172_vm1, %v5495_v23  ;;  %v6429_v34 = vpack.c.bf16 %v5660_v27, %v5660_v27  ;;  %4838 = vst.msk [vmem:[#allocation2 + $0x120] sm:$0xff] %vm172_vm1, %v4799_v30  ;;  %v4881_v38 = vld [vmem:[#allocation2 + $0x118] sm:$0xff]  ;;  %v4752_v43 = vpop.f32.mrf.mxu0  ;;  %v5439_v48 = vpop.f32.mrf.mxu1 }
 0x2bb   : > { %5863 = vst.msk [vmem:[%s8650_s9 + $0x60] sm:$0xf] %vm213_vm3, %v6426_v26  ;;  %v5658_v35 = vmax.f32 %v5617_v28, 0.0  ;;  %v5622_v36 = vadd.f32 %v8638_v4, %v5574_v22  ;;  %v5501_v47 = vadd.f32 %v7167_v37, %v4881_v38  ;;  %v4800_v16 = vadd.f32 %v4752_v43, %v4320_v39 }
 0x2bc   : > { %5539 = vst.msk [vmem:[#allocation2 + $0x110] sm:$0xff] %vm172_vm1, %v5500_v32  ;;  %v5572_v46 = vld [vmem:[#allocation2 + $0xe0] sm:$0xff]  ;;  %5537 = vst.msk [vmem:[#allocation2 + $0x100] sm:$0xff] %vm172_vm1, %v5498_v42  ;;  %v4879_v50 = vld [vmem:[#allocation2 + $0x108] sm:$0xff]  ;;  %v7170_v52 = vpop.f32.mrf.mxu1 }
 0x2bd   : > { %5866 = vst.msk [vmem:[%s8650_s9 + $0x6c] sm:$0xf] %vm213_vm3, %v6429_v34  ;;  %v6427_v44 = vpack.c.bf16 %v5658_v35, %v5658_v35  ;;  %v5663_v45 = vmax.f32 %v5622_v36, 0.0  ;;  %v5620_v49 = vadd.f32 %v8638_v4, %v5572_v46  ;;  %v5499_v10 = vadd.f32 %v5439_v48, %v4879_v50 }
 0x2be   : > { %v5575_v51 = vld [vmem:[#allocation2 + $0xf8] sm:$0xff]  ;;  %5540 = vst.msk [vmem:[#allocation2 + $0x118] sm:$0xff] %vm172_vm1, %v5501_v47  ;;  %4839 = vst.msk [vmem:[#allocation2 + $0x128] sm:$0xff] %vm172_vm1, %v4800_v16  ;;  %v5452_v57 = vpop.f32.mrf.mxu1 }
 0x2bf   : > { %5864 = vst.msk [vmem:[%s8650_s9 + $0x64] sm:$0xf] %vm213_vm3, %v6427_v44  ;;  %v6432_v40 = vpack.c.bf16 %v5663_v45, %v5663_v45  ;;  %v5661_v53 = vmax.f32 %v5620_v49, 0.0  ;;  %v5623_v54 = vadd.f32 %v8638_v4, %v5575_v51 }
 0x2c0   : > { %v4884_v55 = vld [vmem:[#allocation2 + $0x130] sm:$0x1]  ;;  %5538 = vst.msk [vmem:[#allocation2 + $0x108] sm:$0xff] %vm172_vm1, %v5499_v10  ;;  %v7171_v2 = vpop.f32.mrf.mxu1 }
 0x2c1   : > { %5869 = vst.msk [vmem:[%s8650_s9 + $0x78] sm:$0xf] %vm213_vm3, %v6432_v40  ;;  %v5573_v56 = vld [vmem:[#allocation2 + $0xe8] sm:$0xff]  ;;  %v5504_v59 = vadd.f32 %v7170_v52, %v4884_v55  ;;  %v6430_v60 = vpack.c.bf16 %v5661_v53, %v5661_v53  ;;  %v5664_v61 = vmax.f32 %v5623_v54, 0.0  ;;  %v4882_v63 = vld [vmem:[#allocation2 + $0x120] sm:$0xff] }
 0x2c2   : > { %v5621_v62 = vadd.f32 %v8638_v4, %v5573_v56  ;;  %v5502_v1 = vadd.f32 %v5452_v57, %v4882_v63  ;;  %v5455_v13 = vpop.f32.mrf.mxu1 }
 0x2c3   : > { %v5578_v0 = vld [vmem:[#allocation2 + $0x110] sm:$0xff]  ;;  %5543 = vst.msk [vmem:[#allocation2 + $0x130] sm:$0x1] %vm737_vm5, %v5504_v59  ;;  %v6433_v3 = vpack.c.bf16 %v5664_v61, %v5664_v61  ;;  %v5576_v7 = vld [vmem:[#allocation2 + $0x100] sm:$0xff] }
 0x2c4   : > { %5867 = vst.msk [vmem:[%s8650_s9 + $0x70] sm:$0xf] %vm213_vm3, %v6430_v60  ;;  %v5662_v9 = vmax.f32 %v5621_v62, 0.0  ;;  %v5626_v6 = vadd.f32 %v8638_v4, %v5578_v0  ;;  %v5624_v8 = vadd.f32 %v8638_v4, %v5576_v7 }
 0x2c5   : > { %5541 = vst.msk [vmem:[#allocation2 + $0x120] sm:$0xff] %vm172_vm1, %v5502_v1  ;;  %v5579_v11 = vld [vmem:[#allocation2 + $0x118] sm:$0xff]  ;;  %v4883_v12 = vld [vmem:[#allocation2 + $0x128] sm:$0xff] }
 0x2c6   : > { %5870 = vst.msk [vmem:[%s8650_s9 + $0x7c] sm:$0xf] %vm213_vm3, %v6433_v3  ;;  %v6431_v58 = vpack.c.bf16 %v5662_v9, %v5662_v9  ;;  %v5667_v5 = vmax.f32 %v5626_v6, 0.0  ;;  %v5627_v14 = vadd.f32 %v8638_v4, %v5579_v11  ;;  %v5503_v15 = vadd.f32 %v5455_v13, %v4883_v12 }
 0x2c7   : > { %v5665_v18 = vmax.f32 %v5624_v8, 0.0  ;;  %v5577_v19 = vld [vmem:[#allocation2 + $0x108] sm:$0xff] }
 0x2c8   : > { %5868 = vst.msk [vmem:[%s8650_s9 + $0x74] sm:$0xf] %vm213_vm3, %v6431_v58  ;;  %v6436_v17 = vpack.c.bf16 %v5667_v5, %v5667_v5  ;;  %v5668_v20 = vmax.f32 %v5627_v14, 0.0  ;;  %v5625_v21 = vadd.f32 %v8638_v4, %v5577_v19 }
 0x2c9   : > { %5542 = vst.msk [vmem:[#allocation2 + $0x128] sm:$0xff] %vm172_vm1, %v5503_v15  ;;  %v6434_v23 = vpack.c.bf16 %v5665_v18, %v5665_v18 }
 0x2ca   : > { %5873 = vst.msk [vmem:[%s8650_s9 + $0x88] sm:$0xf] %vm213_vm3, %v6436_v17  ;;  %v5582_v24 = vld [vmem:[#allocation2 + $0x130] sm:$0xff]  ;;  %v6437_v25 = vpack.c.bf16 %v5668_v20, %v5668_v20  ;;  %v5666_v26 = vmax.f32 %v5625_v21, 0.0 }
 0x2cb   : > { %v5630_v27 = vadd.f32 %v8638_v4, %v5582_v24  ;;  %5871 = vst.msk [vmem:[%s8650_s9 + $0x80] sm:$0xf] %vm213_vm3, %v6434_v23 }
 0x2cc   : > { %v5580_v28 = vld [vmem:[#allocation2 + $0x120] sm:$0xff]  ;;  %5874 = vst.msk [vmem:[%s8650_s9 + $0x8c] sm:$0xf] %vm213_vm3, %v6437_v25  ;;  %v6435_v29 = vpack.c.bf16 %v5666_v26, %v5666_v26 }
 0x2cd   : > { %v5671_v30 = vmax.f32 %v5630_v27, 0.0  ;;  %v5628_v31 = vadd.f32 %v8638_v4, %v5580_v28 }
 0x2ce   : > { %5872 = vst.msk [vmem:[%s8650_s9 + $0x84] sm:$0xf] %vm213_vm3, %v6435_v29 }
 0x2cf   : > { %v6440_v22 = vpack.c.bf16 %v5671_v30, %v5671_v30  ;;  %v5669_v32 = vmax.f32 %v5628_v31, 0.0 }
 0x2d0   : > { %v5581_v33 = vld [vmem:[#allocation2 + $0x128] sm:$0xff] }
 0x2d1   : > { %5877 = vst.msk [vmem:[%s8650_s9 + $0x98] sm:$0xf] %vm213_vm3, %v6440_v22  ;;  %v6438_v34 = vpack.c.bf16 %v5669_v32, %v5669_v32  ;;  %v5629_v35 = vadd.f32 %v8638_v4, %v5581_v33 }
 0x2d3   : > { %5875 = vst.msk [vmem:[%s8650_s9 + $0x90] sm:$0xf] %vm213_vm3, %v6438_v34  ;;  %v5670_v36 = vmax.f32 %v5629_v35, 0.0 }
 0x2d5   : > { %v6439_v41 = vpack.c.bf16 %v5670_v36, %v5670_v36 }
 0x2d7   : > { %5876 = vst.msk [vmem:[%s8650_s9 + $0x94] sm:$0xf] %vm213_vm3, %v6439_v41 }
 0x2d8 PF: > { %s13_s12 = sadd.s32 1, %s7391_s12  }
 0x2d9   : > { %p10_p4 = scmp.ge.s32.totalorder %s13_s12, 4  }
 0x2db   :  { %12 = sbr.rel (!%p10_p4) target bundleno = 1 (0x1), region = 70 }

</bundles_post_ra>
